<compile_context>
chip_gen: v6e
topology: v6e:2x2x1
jax: 0.10.0
libtpu: 0.0.40
codegen_flags: <defaults>
</compile_context>

<pallas_src>
import math

import jax
import jax.numpy as jnp
from jax.experimental import pallas as pl
from jax.experimental.pallas import tpu as pltpu

# ---- static problem sizes (small, consistent with the module) ----
B = 2                      # batch
OBS_DIM = 32               # obs_dim
OLD_DIM = 16               # old_dim (LSTM input size)
T = 8                      # old_state sequence length
HID = 100                  # logical hidden size fixed by the module
HEADS = 4
HEAD_DIM = HID // HEADS    # 25 (real head dim, used for the softmax scale)

HIDP = 128                 # padded hidden (lane-aligned)
HEADP = HIDP // HEADS      # 32 (padded per-head lane width)
BP = 8                     # padded batch rows per timestep (one sublane tile)
ACT_DIM = OLD_DIM + OBS_DIM        # 48  (old | obs packed into one slab)
XW_W = 4 * HIDP                    # 512 (fused LSTM gate width)
IN_W = XW_W + HIDP                 # 640 (gates | query)

# Set to jnp.bfloat16 on v6e/v7x for ~3x fewer MXU passes on the serial
# recurrence, after re-verifying the 5e-3 tolerance. Gate math stays f32.
MXU_DTYPE = jnp.float32


def mlp_critic_kernel(act_ref, w_in_ref, w_h_ref, bias_ref, out_ref):
    f32 = jnp.float32

    act = act_ref[...]                                  # (T*BP, ACT_DIM) t-major
    w_in = w_in_ref[...]                                # (ACT_DIM, IN_W)
    bias0 = bias_ref[0:1, :]                            # (1, IN_W)

    # One fused input matmul: LSTM input projection (+ bias) and the attention
    # query with l1 folded in (qh = obs @ (w1 @ wq) + (b1 @ wq + bq)).
    r = jnp.dot(act, w_in, preferred_element_type=f32) + bias0   # (64, 640)
    xw = r[:, :XW_W]                                    # (64, 512) per-step gates input
    qh = r[:, XW_W:]                                    # (64, 128) query, replicated per t

    # ---- LSTM recurrence: one fused gate matmul per step, 8-row aligned ----
    whh = w_h_ref[:, 0:XW_W].astype(MXU_DTYPE)          # (128, 512)
    h = jnp.zeros((BP, HIDP), f32)
    c = jnp.zeros((BP, HIDP), f32)
    hs = []
    for t in range(T):                                  # fully unrolled (LLO visibility)
        gates = xw[t * BP:(t + 1) * BP, :] + jnp.dot(
            h.astype(MXU_DTYPE), whh, preferred_element_type=f32)
        i_g = jax.nn.sigmoid(gates[:, 0 * HIDP:1 * HIDP])
        f_g = jax.nn.sigmoid(gates[:, 1 * HIDP:2 * HIDP])
        g_g = jnp.tanh(gates[:, 2 * HIDP:3 * HIDP])
        o_g = jax.nn.sigmoid(gates[:, 3 * HIDP:4 * HIDP])
        c = f_g * c + i_g * g_g
        h = o_g * jnp.tanh(c)
        hs.append(h)
    out1 = jnp.concatenate(hs, axis=0)                  # (64, 128), aligned t-major blocks

    # ---- attention: fused K|V projection + selector matmuls ----
    wkv = w_h_ref[:, XW_W:XW_W + 2 * HIDP]              # (128, 256)
    bkv = bias_ref[1:2, 0:2 * HIDP]                     # (1, 256)
    kvh = jnp.dot(out1, wkv, preferred_element_type=f32) + bkv    # (64, 256)
    kh = kvh[:, 0:HIDP]
    vh = kvh[:, HIDP:2 * HIDP]

    scale = 1.0 / math.sqrt(HEAD_DIM)
    hsel = w_h_ref[:, XW_W + 3 * HIDP:XW_W + 4 * HIDP]  # (128, 128) lane->head collapse
    hselt = w_h_ref[:, XW_W + 4 * HIDP:XW_W + 5 * HIDP] # (128, 128) head->lane broadcast

    qk = (qh * scale) * kh                              # padded lanes stay exactly 0
    scores = jnp.dot(qk, hsel, preferred_element_type=f32)        # (64, 128); col = head

    # per-batch softmax over t, done on aligned (8, 128) blocks (pure VPU/EUP)
    blocks = [scores[t * BP:(t + 1) * BP, :] for t in range(T)]
    m = blocks[0]
    for t in range(1, T):
        m = jnp.maximum(m, blocks[t])
    es = [jnp.exp(blk - m) for blk in blocks]
    den = es[0]
    for t in range(1, T):
        den = den + es[t]
    inv = pl.reciprocal(den, approx=True)               # EUP slot
    p = jnp.concatenate([e * inv for e in es], axis=0)  # (64, 128)

    p_full = jnp.dot(p, hselt, preferred_element_type=f32)        # (64, 128)
    wctx = p_full * vh                                  # (64, 128)
    ctx = wctx[0:BP, :]
    for t in range(1, T):                               # per-batch sum over keys
        ctx = ctx + wctx[t * BP:(t + 1) * BP, :]        # (8, 128)

    # ---- attention out-proj folded with the value head (wov = wo @ wval) ----
    wov = w_h_ref[:, XW_W + 2 * HIDP:XW_W + 3 * HIDP]   # (128, 128), col 0 real
    bov = bias_ref[1:2, 2 * HIDP:3 * HIDP]              # (1, 128)
    val = jnp.dot(ctx, wov, preferred_element_type=f32) + bov     # (8, 128)
    out_ref[...] = val.astype(out_ref.dtype)


def prepare_weights(p):
    """Pad, fuse and pack the logical (PyTorch-layout) params. Run ONCE and cache."""
    f32 = jnp.float32
    z = lambda *s: jnp.zeros(s, f32)

    w1 = z(OBS_DIM, HIDP).at[:, :HID].set(p["w1"])
    b1 = z(1, HIDP).at[:, :HID].set(p["b1"])

    wih = z(OLD_DIM, XW_W)
    whh = z(HIDP, XW_W)
    blstm = z(1, XW_W)
    for g in range(4):
        wih = wih.at[:, g * HIDP:g * HIDP + HID].set(p["wih"][g])
        whh = whh.at[:HID, g * HIDP:g * HIDP + HID].set(p["whh"][g])
        blstm = blstm.at[:, g * HIDP:g * HIDP + HID].set(p["blstm"][g])

    def fuse_in_proj(w, bvec):
        wf = z(HIDP, HIDP)
        bf = z(1, HIDP)
        for hd in range(HEADS):
            wf = wf.at[:HID, hd * HEADP:hd * HEADP + HEAD_DIM].set(w[hd])
            bf = bf.at[:, hd * HEADP:hd * HEADP + HEAD_DIM].set(bvec[hd])
        return wf, bf

    wq, bq = fuse_in_proj(p["wq"], p["bq"])
    wk, bk = fuse_in_proj(p["wk"], p["bk"])
    wv, bv = fuse_in_proj(p["wv"], p["bv"])

    wo = z(HIDP, HIDP)
    for hd in range(HEADS):
        wo = wo.at[hd * HEADP:hd * HEADP + HEAD_DIM, :HID].set(p["wo"][hd])
    bo = z(1, HIDP).at[:, :HID].set(p["bo"])
    wval = z(HIDP, 1).at[:HID, :].set(p["wval"])

    # fold l1 into the attention query projection
    wq_eff = w1 @ wq                        # (OBS_DIM, HIDP)
    bq_eff = b1 @ wq + bq                   # (1, HIDP)

    # fold the value head into the attention output projection
    wov = z(HIDP, HIDP).at[:, 0:1].set(wo @ wval)
    bov = z(1, HIDP).at[:, 0:1].set(bo @ wval + p["bval"])

    # head-selector matmuls (full lane width, zero-padded)
    hsel = z(HIDP, HIDP)
    hselt = z(HIDP, HIDP)
    for hd in range(HEADS):
        hsel = hsel.at[hd * HEADP:(hd + 1) * HEADP, hd].set(1.0)
        hselt = hselt.at[hd, hd * HEADP:(hd + 1) * HEADP].set(1.0)

    # slab 1: input-side weights (ACT_DIM, IN_W)
    w_in = z(ACT_DIM, IN_W)
    w_in = w_in.at[:OLD_DIM, :XW_W].set(wih)
    w_in = w_in.at[OLD_DIM:OLD_DIM + OBS_DIM, XW_W:].set(wq_eff)

    # slab 2: hidden-side weights (HIDP, 1152): whh | wk | wv | wov | hsel | hselt
    w_h = jnp.concatenate([whh, wk, wv, wov, hsel, hselt], axis=1)

    # slab 3: biases (8, IN_W)
    bias = z(8, IN_W)
    bias = bias.at[0:1, :XW_W].set(blstm)
    bias = bias.at[0:1, XW_W:].set(bq_eff)
    bias = bias.at[1:2, 0:HIDP].set(bk)
    bias = bias.at[1:2, HIDP:2 * HIDP].set(bv)
    bias = bias.at[1:2, 2 * HIDP:3 * HIDP].set(bov)

    return w_in, w_h, bias


def mlp_critic_forward(obs, old_state, w_in, w_h, bias):
    b, t = old_state.shape[0], old_state.shape[1]
    # t-major layout with batch padded to 8 rows per step: row = t*BP + b
    old_tm = jnp.transpose(old_state, (1, 0, 2))                     # (T, B, OLD_DIM)
    old_p = jnp.pad(old_tm, ((0, 0), (0, BP - b), (0, 0)))           # (T, BP, OLD_DIM)
    obs_p = jnp.pad(obs, ((0, BP - b), (0, 0)))                      # (BP, OBS_DIM)
    obs_rep = jnp.broadcast_to(obs_p[None], (t, BP, OBS_DIM))        # query replicated per t
    act = jnp.concatenate([old_p, obs_rep], axis=-1).reshape(t * BP, ACT_DIM)

    vmem = pl.BlockSpec(memory_space=pltpu.MemorySpace.VMEM)
    out = pl.pallas_call(
        mlp_critic_kernel,
        out_shape=jax.ShapeDtypeStruct((BP, HIDP), jnp.float32),
        in_specs=[vmem, vmem, vmem, vmem],
        out_specs=vmem,
    )(act, w_in, w_h, bias)
    return out[:b, :1]


def make_params(key):
    ks = jax.random.split(key, 16)
    f32 = jnp.float32
    k_lstm = 1.0 / math.sqrt(HID)
    k_v = 1.0 / math.sqrt(HID)
    return {
        # l1: nn.init.normal_(w, std=0.01), bias = 0.01  (stored as (in, out))
        "w1": jax.random.normal(ks[0], (OBS_DIM, HID), f32) * 0.01,
        "b1": jnp.full((1, HID), 0.01, f32),
        # LSTM, per-gate (i, f, g, o); combined bias = b_ih + b_hh
        "wih": jax.random.uniform(ks[1], (4, OLD_DIM, HID), f32, -k_lstm, k_lstm),
        "whh": jax.random.uniform(ks[2], (4, HID, HID), f32, -k_lstm, k_lstm),
        "blstm": (jax.random.uniform(ks[3], (4, 1, HID), f32, -k_lstm, k_lstm)
                  + jax.random.uniform(ks[4], (4, 1, HID), f32, -k_lstm, k_lstm)),
        # MultiheadAttention: per-head in-projections (in_proj_bias starts at 0)
        "wq": jax.random.normal(ks[5], (HEADS, HID, HEAD_DIM), f32) * 0.05,
        "bq": jnp.zeros((HEADS, 1, HEAD_DIM), f32),
        "wk": jax.random.normal(ks[6], (HEADS, HID, HEAD_DIM), f32) * 0.05,
        "bk": jnp.zeros((HEADS, 1, HEAD_DIM), f32),
        "wv": jax.random.normal(ks[7], (HEADS, HID, HEAD_DIM), f32) * 0.05,
        "bv": jnp.zeros((HEADS, 1, HEAD_DIM), f32),
        # out_proj split per head: (HEADS, HEAD_DIM, HID)
        "wo": jax.random.normal(ks[8], (HEADS, HEAD_DIM, HID), f32) * 0.05,
        "bo": jnp.zeros((1, HID), f32),
        # value head v: Linear(100, 1)
        "wval": jax.random.uniform(ks[9], (HID, 1), f32, -k_v, k_v),
        "bval": jax.random.uniform(ks[10], (1, 1), f32, -k_v, k_v),
    }


def reference_forward(obs, old_state, p):
    """Pure-JAX reference mirroring the PyTorch forward semantics (unpadded)."""
    q_in = obs @ p["w1"] + p["b1"]                               # (B, HID)
    b = obs.shape[0]
    h = jnp.zeros((b, HID), jnp.float32)
    c = jnp.zeros((b, HID), jnp.float32)
    outs = []
    for t in range(T):
        x_t = old_state[:, t, :]
        gates = [x_t @ p["wih"][g] + h @ p["whh"][g] + p["blstm"][g] for g in range(4)]
        i_g = jax.nn.sigmoid(gates[0])
        f_g = jax.nn.sigmoid(gates[1])
        g_g = jnp.tanh(gates[2])
        o_g = jax.nn.sigmoid(gates[3])
        c = f_g * c + i_g * g_g
        h = o_g * jnp.tanh(c)
        outs.append(h)
    out1 = jnp.stack(outs, axis=1)                               # (B, T, HID)

    scale = 1.0 / math.sqrt(HEAD_DIM)
    ctx = jnp.zeros((b, HID), jnp.float32)
    for hd in range(HEADS):
        q_h = (q_in @ p["wq"][hd] + p["bq"][hd]) * scale         # (B, HD)
        k_h = jnp.einsum("btd,de->bte", out1, p["wk"][hd]) + p["bk"][hd]
        v_h = jnp.einsum("btd,de->bte", out1, p["wv"][hd]) + p["bv"][hd]
        scores = jnp.einsum("bd,btd->bt", q_h, k_h)
        pr = jax.nn.softmax(scores, axis=-1)
        attn_h = jnp.einsum("bt,btd->bd", pr, v_h)
        ctx = ctx + attn_h @ p["wo"][hd]
    attn_out = ctx + p["bo"]
    return attn_out @ p["wval"] + p["bval"]                      # (B, 1)


if __name__ == "__main__":
    key = jax.random.PRNGKey(0)
    k_obs, k_old, k_par = jax.random.split(key, 3)

    obs = jax.random.normal(k_obs, (B, OBS_DIM), jnp.float32)
    old_state = jax.random.normal(k_old, (B, T, OLD_DIM), jnp.float32)
    params = make_params(k_par)

    # Weight padding / fusion hoisted out of the forward path and cached.
    slabs = jax.block_until_ready(prepare_weights(params))

    fwd = jax.jit(mlp_critic_forward)
    out = jax.block_until_ready(fwd(obs, old_state, *slabs))

    ref = jax.block_until_ready(reference_forward(obs, old_state, params))
    assert out.shape == (B, 1)
    assert jnp.allclose(out, ref, atol=5e-3, rtol=5e-3), (out, ref)

    print("KERNEL_OK")
</pallas_src>

<mosaic_0001>
module attributes {stable_mosaic.version = 11 : i64} {
  func.func @mlp_critic_kernel(%arg0: memref<64x48xf32, #tpu.memory_space<vmem>>, %arg1: memref<48x640xf32, #tpu.memory_space<vmem>>, %arg2: memref<128x1152xf32, #tpu.memory_space<vmem>>, %arg3: memref<8x640xf32, #tpu.memory_space<vmem>>, %arg4: memref<8x128xf32, #tpu.memory_space<vmem>>) attributes {dimension_semantics = [], scalar_prefetch = 0 : i64, scratch_operands = 0 : i64, tpu.core_type = #tpu.core_type<tc>} {
    %c0 = arith.constant 0 : index
    %c0_0 = arith.constant 0 : index
    %0 = vector.load %arg0[%c0, %c0_0] : memref<64x48xf32, #tpu.memory_space<vmem>>, vector<64x48xf32>
    %c0_1 = arith.constant 0 : index
    %c0_2 = arith.constant 0 : index
    %1 = vector.load %arg1[%c0_1, %c0_2] : memref<48x640xf32, #tpu.memory_space<vmem>>, vector<48x640xf32>
    %c0_3 = arith.constant 0 : index
    %c0_4 = arith.constant 0 : index
    %2 = vector.load %arg3[%c0_3, %c0_4] : memref<8x640xf32, #tpu.memory_space<vmem>>, vector<1x640xf32>
    %cst = arith.constant dense<0.000000e+00> : vector<64x640xf32>
    %3 = tpu.matmul %0, %1, %cst {dimension_numbers = #tpu.dot_dimension_numbers<[1], [0], [0], [1], [0, 0, 1, 1], [], []>} : vector<64x48xf32>, vector<48x640xf32>, vector<64x640xf32> -> vector<64x640xf32>
    %4 = vector.broadcast %2 : vector<1x640xf32> to vector<64x640xf32>
    %5 = arith.addf %3, %4 : vector<64x640xf32>
    %6 = vector.extract_strided_slice %5 {offsets = [0, 0], sizes = [64, 512], strides = [1, 1]} : vector<64x640xf32> to vector<64x512xf32>
    %7 = vector.extract_strided_slice %5 {offsets = [0, 512], sizes = [64, 128], strides = [1, 1]} : vector<64x640xf32> to vector<64x128xf32>
    %c0_5 = arith.constant 0 : index
    %c0_6 = arith.constant 0 : index
    %8 = vector.load %arg2[%c0_5, %c0_6] : memref<128x1152xf32, #tpu.memory_space<vmem>>, vector<128x512xf32>
    %cst_7 = arith.constant 0.000000e+00 : f32
    %9 = vector.broadcast %cst_7 : f32 to vector<8x128xf32>
    %cst_8 = arith.constant 0.000000e+00 : f32
    %10 = vector.broadcast %cst_8 : f32 to vector<8x128xf32>
    %11 = vector.extract_strided_slice %6 {offsets = [0, 0], sizes = [8, 512], strides = [1, 1]} : vector<64x512xf32> to vector<8x512xf32>
    %cst_9 = arith.constant dense<0.000000e+00> : vector<8x512xf32>
    %12 = tpu.matmul %9, %8, %cst_9 {dimension_numbers = #tpu.dot_dimension_numbers<[1], [0], [0], [1], [0, 0, 1, 1], [], []>} : vector<8x128xf32>, vector<128x512xf32>, vector<8x512xf32> -> vector<8x512xf32>
    %13 = arith.addf %11, %12 : vector<8x512xf32>
    %14 = vector.extract_strided_slice %13 {offsets = [0, 0], sizes = [8, 128], strides = [1, 1]} : vector<8x512xf32> to vector<8x128xf32>
    %15 = arith.negf %14 : vector<8x128xf32>
    %16 = math.exp %15 : vector<8x128xf32>
    %cst_10 = arith.constant 1.000000e+00 : f32
    %17 = vector.broadcast %cst_10 : f32 to vector<8x128xf32>
    %18 = arith.addf %17, %16 : vector<8x128xf32>
    %19 = arith.divf %17, %18 : vector<8x128xf32>
    %20 = vector.extract_strided_slice %13 {offsets = [0, 128], sizes = [8, 128], strides = [1, 1]} : vector<8x512xf32> to vector<8x128xf32>
    %21 = arith.negf %20 : vector<8x128xf32>
    %22 = math.exp %21 : vector<8x128xf32>
    %cst_11 = arith.constant 1.000000e+00 : f32
    %23 = vector.broadcast %cst_11 : f32 to vector<8x128xf32>
    %24 = arith.addf %23, %22 : vector<8x128xf32>
    %25 = arith.divf %23, %24 : vector<8x128xf32>
    %26 = vector.extract_strided_slice %13 {offsets = [0, 256], sizes = [8, 128], strides = [1, 1]} : vector<8x512xf32> to vector<8x128xf32>
    %27 = math.tanh %26 : vector<8x128xf32>
    %28 = vector.extract_strided_slice %13 {offsets = [0, 384], sizes = [8, 128], strides = [1, 1]} : vector<8x512xf32> to vector<8x128xf32>
    %29 = arith.negf %28 : vector<8x128xf32>
    %30 = math.exp %29 : vector<8x128xf32>
    %cst_12 = arith.constant 1.000000e+00 : f32
    %31 = vector.broadcast %cst_12 : f32 to vector<8x128xf32>
    %32 = arith.addf %31, %30 : vector<8x128xf32>
    %33 = arith.divf %31, %32 : vector<8x128xf32>
    %34 = arith.mulf %25, %10 : vector<8x128xf32>
    %35 = arith.mulf %19, %27 : vector<8x128xf32>
    %36 = arith.addf %34, %35 : vector<8x128xf32>
    %37 = math.tanh %36 : vector<8x128xf32>
    %38 = arith.mulf %33, %37 : vector<8x128xf32>
    %39 = vector.extract_strided_slice %6 {offsets = [8, 0], sizes = [8, 512], strides = [1, 1]} : vector<64x512xf32> to vector<8x512xf32>
    %cst_13 = arith.constant dense<0.000000e+00> : vector<8x512xf32>
    %40 = tpu.matmul %38, %8, %cst_13 {dimension_numbers = #tpu.dot_dimension_numbers<[1], [0], [0], [1], [0, 0, 1, 1], [], []>} : vector<8x128xf32>, vector<128x512xf32>, vector<8x512xf32> -> vector<8x512xf32>
    %41 = arith.addf %39, %40 : vector<8x512xf32>
    %42 = vector.extract_strided_slice %41 {offsets = [0, 0], sizes = [8, 128], strides = [1, 1]} : vector<8x512xf32> to vector<8x128xf32>
    %43 = arith.negf %42 : vector<8x128xf32>
    %44 = math.exp %43 : vector<8x128xf32>
    %cst_14 = arith.constant 1.000000e+00 : f32
    %45 = vector.broadcast %cst_14 : f32 to vector<8x128xf32>
    %46 = arith.addf %45, %44 : vector<8x128xf32>
    %47 = arith.divf %45, %46 : vector<8x128xf32>
    %48 = vector.extract_strided_slice %41 {offsets = [0, 128], sizes = [8, 128], strides = [1, 1]} : vector<8x512xf32> to vector<8x128xf32>
    %49 = arith.negf %48 : vector<8x128xf32>
    %50 = math.exp %49 : vector<8x128xf32>
    %cst_15 = arith.constant 1.000000e+00 : f32
    %51 = vector.broadcast %cst_15 : f32 to vector<8x128xf32>
    %52 = arith.addf %51, %50 : vector<8x128xf32>
    %53 = arith.divf %51, %52 : vector<8x128xf32>
    %54 = vector.extract_strided_slice %41 {offsets = [0, 256], sizes = [8, 128], strides = [1, 1]} : vector<8x512xf32> to vector<8x128xf32>
    %55 = math.tanh %54 : vector<8x128xf32>
    %56 = vector.extract_strided_slice %41 {offsets = [0, 384], sizes = [8, 128], strides = [1, 1]} : vector<8x512xf32> to vector<8x128xf32>
    %57 = arith.negf %56 : vector<8x128xf32>
    %58 = math.exp %57 : vector<8x128xf32>
    %cst_16 = arith.constant 1.000000e+00 : f32
    %59 = vector.broadcast %cst_16 : f32 to vector<8x128xf32>
    %60 = arith.addf %59, %58 : vector<8x128xf32>
    %61 = arith.divf %59, %60 : vector<8x128xf32>
    %62 = arith.mulf %53, %36 : vector<8x128xf32>
    %63 = arith.mulf %47, %55 : vector<8x128xf32>
    %64 = arith.addf %62, %63 : vector<8x128xf32>
    %65 = math.tanh %64 : vector<8x128xf32>
    %66 = arith.mulf %61, %65 : vector<8x128xf32>
    %67 = vector.extract_strided_slice %6 {offsets = [16, 0], sizes = [8, 512], strides = [1, 1]} : vector<64x512xf32> to vector<8x512xf32>
    %cst_17 = arith.constant dense<0.000000e+00> : vector<8x512xf32>
    %68 = tpu.matmul %66, %8, %cst_17 {dimension_numbers = #tpu.dot_dimension_numbers<[1], [0], [0], [1], [0, 0, 1, 1], [], []>} : vector<8x128xf32>, vector<128x512xf32>, vector<8x512xf32> -> vector<8x512xf32>
    %69 = arith.addf %67, %68 : vector<8x512xf32>
    %70 = vector.extract_strided_slice %69 {offsets = [0, 0], sizes = [8, 128], strides = [1, 1]} : vector<8x512xf32> to vector<8x128xf32>
    %71 = arith.negf %70 : vector<8x128xf32>
    %72 = math.exp %71 : vector<8x128xf32>
    %cst_18 = arith.constant 1.000000e+00 : f32
    %73 = vector.broadcast %cst_18 : f32 to vector<8x128xf32>
    %74 = arith.addf %73, %72 : vector<8x128xf32>
    %75 = arith.divf %73, %74 : vector<8x128xf32>
    %76 = vector.extract_strided_slice %69 {offsets = [0, 128], sizes = [8, 128], strides = [1, 1]} : vector<8x512xf32> to vector<8x128xf32>
    %77 = arith.negf %76 : vector<8x128xf32>
    %78 = math.exp %77 : vector<8x128xf32>
    %cst_19 = arith.constant 1.000000e+00 : f32
    %79 = vector.broadcast %cst_19 : f32 to vector<8x128xf32>
    %80 = arith.addf %79, %78 : vector<8x128xf32>
    %81 = arith.divf %79, %80 : vector<8x128xf32>
    %82 = vector.extract_strided_slice %69 {offsets = [0, 256], sizes = [8, 128], strides = [1, 1]} : vector<8x512xf32> to vector<8x128xf32>
    %83 = math.tanh %82 : vector<8x128xf32>
    %84 = vector.extract_strided_slice %69 {offsets = [0, 384], sizes = [8, 128], strides = [1, 1]} : vector<8x512xf32> to vector<8x128xf32>
    %85 = arith.negf %84 : vector<8x128xf32>
    %86 = math.exp %85 : vector<8x128xf32>
    %cst_20 = arith.constant 1.000000e+00 : f32
    %87 = vector.broadcast %cst_20 : f32 to vector<8x128xf32>
    %88 = arith.addf %87, %86 : vector<8x128xf32>
    %89 = arith.divf %87, %88 : vector<8x128xf32>
    %90 = arith.mulf %81, %64 : vector<8x128xf32>
    %91 = arith.mulf %75, %83 : vector<8x128xf32>
    %92 = arith.addf %90, %91 : vector<8x128xf32>
    %93 = math.tanh %92 : vector<8x128xf32>
    %94 = arith.mulf %89, %93 : vector<8x128xf32>
    %95 = vector.extract_strided_slice %6 {offsets = [24, 0], sizes = [8, 512], strides = [1, 1]} : vector<64x512xf32> to vector<8x512xf32>
    %cst_21 = arith.constant dense<0.000000e+00> : vector<8x512xf32>
    %96 = tpu.matmul %94, %8, %cst_21 {dimension_numbers = #tpu.dot_dimension_numbers<[1], [0], [0], [1], [0, 0, 1, 1], [], []>} : vector<8x128xf32>, vector<128x512xf32>, vector<8x512xf32> -> vector<8x512xf32>
    %97 = arith.addf %95, %96 : vector<8x512xf32>
    %98 = vector.extract_strided_slice %97 {offsets = [0, 0], sizes = [8, 128], strides = [1, 1]} : vector<8x512xf32> to vector<8x128xf32>
    %99 = arith.negf %98 : vector<8x128xf32>
    %100 = math.exp %99 : vector<8x128xf32>
    %cst_22 = arith.constant 1.000000e+00 : f32
    %101 = vector.broadcast %cst_22 : f32 to vector<8x128xf32>
    %102 = arith.addf %101, %100 : vector<8x128xf32>
    %103 = arith.divf %101, %102 : vector<8x128xf32>
    %104 = vector.extract_strided_slice %97 {offsets = [0, 128], sizes = [8, 128], strides = [1, 1]} : vector<8x512xf32> to vector<8x128xf32>
    %105 = arith.negf %104 : vector<8x128xf32>
    %106 = math.exp %105 : vector<8x128xf32>
    %cst_23 = arith.constant 1.000000e+00 : f32
    %107 = vector.broadcast %cst_23 : f32 to vector<8x128xf32>
    %108 = arith.addf %107, %106 : vector<8x128xf32>
    %109 = arith.divf %107, %108 : vector<8x128xf32>
    %110 = vector.extract_strided_slice %97 {offsets = [0, 256], sizes = [8, 128], strides = [1, 1]} : vector<8x512xf32> to vector<8x128xf32>
    %111 = math.tanh %110 : vector<8x128xf32>
    %112 = vector.extract_strided_slice %97 {offsets = [0, 384], sizes = [8, 128], strides = [1, 1]} : vector<8x512xf32> to vector<8x128xf32>
    %113 = arith.negf %112 : vector<8x128xf32>
    %114 = math.exp %113 : vector<8x128xf32>
    %cst_24 = arith.constant 1.000000e+00 : f32
    %115 = vector.broadcast %cst_24 : f32 to vector<8x128xf32>
    %116 = arith.addf %115, %114 : vector<8x128xf32>
    %117 = arith.divf %115, %116 : vector<8x128xf32>
    %118 = arith.mulf %109, %92 : vector<8x128xf32>
    %119 = arith.mulf %103, %111 : vector<8x128xf32>
    %120 = arith.addf %118, %119 : vector<8x128xf32>
    %121 = math.tanh %120 : vector<8x128xf32>
    %122 = arith.mulf %117, %121 : vector<8x128xf32>
    %123 = vector.extract_strided_slice %6 {offsets = [32, 0], sizes = [8, 512], strides = [1, 1]} : vector<64x512xf32> to vector<8x512xf32>
    %cst_25 = arith.constant dense<0.000000e+00> : vector<8x512xf32>
    %124 = tpu.matmul %122, %8, %cst_25 {dimension_numbers = #tpu.dot_dimension_numbers<[1], [0], [0], [1], [0, 0, 1, 1], [], []>} : vector<8x128xf32>, vector<128x512xf32>, vector<8x512xf32> -> vector<8x512xf32>
    %125 = arith.addf %123, %124 : vector<8x512xf32>
    %126 = vector.extract_strided_slice %125 {offsets = [0, 0], sizes = [8, 128], strides = [1, 1]} : vector<8x512xf32> to vector<8x128xf32>
    %127 = arith.negf %126 : vector<8x128xf32>
    %128 = math.exp %127 : vector<8x128xf32>
    %cst_26 = arith.constant 1.000000e+00 : f32
    %129 = vector.broadcast %cst_26 : f32 to vector<8x128xf32>
    %130 = arith.addf %129, %128 : vector<8x128xf32>
    %131 = arith.divf %129, %130 : vector<8x128xf32>
    %132 = vector.extract_strided_slice %125 {offsets = [0, 128], sizes = [8, 128], strides = [1, 1]} : vector<8x512xf32> to vector<8x128xf32>
    %133 = arith.negf %132 : vector<8x128xf32>
    %134 = math.exp %133 : vector<8x128xf32>
    %cst_27 = arith.constant 1.000000e+00 : f32
    %135 = vector.broadcast %cst_27 : f32 to vector<8x128xf32>
    %136 = arith.addf %135, %134 : vector<8x128xf32>
    %137 = arith.divf %135, %136 : vector<8x128xf32>
    %138 = vector.extract_strided_slice %125 {offsets = [0, 256], sizes = [8, 128], strides = [1, 1]} : vector<8x512xf32> to vector<8x128xf32>
    %139 = math.tanh %138 : vector<8x128xf32>
    %140 = vector.extract_strided_slice %125 {offsets = [0, 384], sizes = [8, 128], strides = [1, 1]} : vector<8x512xf32> to vector<8x128xf32>
    %141 = arith.negf %140 : vector<8x128xf32>
    %142 = math.exp %141 : vector<8x128xf32>
    %cst_28 = arith.constant 1.000000e+00 : f32
    %143 = vector.broadcast %cst_28 : f32 to vector<8x128xf32>
    %144 = arith.addf %143, %142 : vector<8x128xf32>
    %145 = arith.divf %143, %144 : vector<8x128xf32>
    %146 = arith.mulf %137, %120 : vector<8x128xf32>
    %147 = arith.mulf %131, %139 : vector<8x128xf32>
    %148 = arith.addf %146, %147 : vector<8x128xf32>
    %149 = math.tanh %148 : vector<8x128xf32>
    %150 = arith.mulf %145, %149 : vector<8x128xf32>
    %151 = vector.extract_strided_slice %6 {offsets = [40, 0], sizes = [8, 512], strides = [1, 1]} : vector<64x512xf32> to vector<8x512xf32>
    %cst_29 = arith.constant dense<0.000000e+00> : vector<8x512xf32>
    %152 = tpu.matmul %150, %8, %cst_29 {dimension_numbers = #tpu.dot_dimension_numbers<[1], [0], [0], [1], [0, 0, 1, 1], [], []>} : vector<8x128xf32>, vector<128x512xf32>, vector<8x512xf32> -> vector<8x512xf32>
    %153 = arith.addf %151, %152 : vector<8x512xf32>
    %154 = vector.extract_strided_slice %153 {offsets = [0, 0], sizes = [8, 128], strides = [1, 1]} : vector<8x512xf32> to vector<8x128xf32>
    %155 = arith.negf %154 : vector<8x128xf32>
    %156 = math.exp %155 : vector<8x128xf32>
    %cst_30 = arith.constant 1.000000e+00 : f32
    %157 = vector.broadcast %cst_30 : f32 to vector<8x128xf32>
    %158 = arith.addf %157, %156 : vector<8x128xf32>
    %159 = arith.divf %157, %158 : vector<8x128xf32>
    %160 = vector.extract_strided_slice %153 {offsets = [0, 128], sizes = [8, 128], strides = [1, 1]} : vector<8x512xf32> to vector<8x128xf32>
    %161 = arith.negf %160 : vector<8x128xf32>
    %162 = math.exp %161 : vector<8x128xf32>
    %cst_31 = arith.constant 1.000000e+00 : f32
    %163 = vector.broadcast %cst_31 : f32 to vector<8x128xf32>
    %164 = arith.addf %163, %162 : vector<8x128xf32>
    %165 = arith.divf %163, %164 : vector<8x128xf32>
    %166 = vector.extract_strided_slice %153 {offsets = [0, 256], sizes = [8, 128], strides = [1, 1]} : vector<8x512xf32> to vector<8x128xf32>
    %167 = math.tanh %166 : vector<8x128xf32>
    %168 = vector.extract_strided_slice %153 {offsets = [0, 384], sizes = [8, 128], strides = [1, 1]} : vector<8x512xf32> to vector<8x128xf32>
    %169 = arith.negf %168 : vector<8x128xf32>
    %170 = math.exp %169 : vector<8x128xf32>
    %cst_32 = arith.constant 1.000000e+00 : f32
    %171 = vector.broadcast %cst_32 : f32 to vector<8x128xf32>
    %172 = arith.addf %171, %170 : vector<8x128xf32>
    %173 = arith.divf %171, %172 : vector<8x128xf32>
    %174 = arith.mulf %165, %148 : vector<8x128xf32>
    %175 = arith.mulf %159, %167 : vector<8x128xf32>
    %176 = arith.addf %174, %175 : vector<8x128xf32>
    %177 = math.tanh %176 : vector<8x128xf32>
    %178 = arith.mulf %173, %177 : vector<8x128xf32>
    %179 = vector.extract_strided_slice %6 {offsets = [48, 0], sizes = [8, 512], strides = [1, 1]} : vector<64x512xf32> to vector<8x512xf32>
    %cst_33 = arith.constant dense<0.000000e+00> : vector<8x512xf32>
    %180 = tpu.matmul %178, %8, %cst_33 {dimension_numbers = #tpu.dot_dimension_numbers<[1], [0], [0], [1], [0, 0, 1, 1], [], []>} : vector<8x128xf32>, vector<128x512xf32>, vector<8x512xf32> -> vector<8x512xf32>
    %181 = arith.addf %179, %180 : vector<8x512xf32>
    %182 = vector.extract_strided_slice %181 {offsets = [0, 0], sizes = [8, 128], strides = [1, 1]} : vector<8x512xf32> to vector<8x128xf32>
    %183 = arith.negf %182 : vector<8x128xf32>
    %184 = math.exp %183 : vector<8x128xf32>
    %cst_34 = arith.constant 1.000000e+00 : f32
    %185 = vector.broadcast %cst_34 : f32 to vector<8x128xf32>
    %186 = arith.addf %185, %184 : vector<8x128xf32>
    %187 = arith.divf %185, %186 : vector<8x128xf32>
    %188 = vector.extract_strided_slice %181 {offsets = [0, 128], sizes = [8, 128], strides = [1, 1]} : vector<8x512xf32> to vector<8x128xf32>
    %189 = arith.negf %188 : vector<8x128xf32>
    %190 = math.exp %189 : vector<8x128xf32>
    %cst_35 = arith.constant 1.000000e+00 : f32
    %191 = vector.broadcast %cst_35 : f32 to vector<8x128xf32>
    %192 = arith.addf %191, %190 : vector<8x128xf32>
    %193 = arith.divf %191, %192 : vector<8x128xf32>
    %194 = vector.extract_strided_slice %181 {offsets = [0, 256], sizes = [8, 128], strides = [1, 1]} : vector<8x512xf32> to vector<8x128xf32>
    %195 = math.tanh %194 : vector<8x128xf32>
    %196 = vector.extract_strided_slice %181 {offsets = [0, 384], sizes = [8, 128], strides = [1, 1]} : vector<8x512xf32> to vector<8x128xf32>
    %197 = arith.negf %196 : vector<8x128xf32>
    %198 = math.exp %197 : vector<8x128xf32>
    %cst_36 = arith.constant 1.000000e+00 : f32
    %199 = vector.broadcast %cst_36 : f32 to vector<8x128xf32>
    %200 = arith.addf %199, %198 : vector<8x128xf32>
    %201 = arith.divf %199, %200 : vector<8x128xf32>
    %202 = arith.mulf %193, %176 : vector<8x128xf32>
    %203 = arith.mulf %187, %195 : vector<8x128xf32>
    %204 = arith.addf %202, %203 : vector<8x128xf32>
    %205 = math.tanh %204 : vector<8x128xf32>
    %206 = arith.mulf %201, %205 : vector<8x128xf32>
    %207 = vector.extract_strided_slice %6 {offsets = [56, 0], sizes = [8, 512], strides = [1, 1]} : vector<64x512xf32> to vector<8x512xf32>
    %cst_37 = arith.constant dense<0.000000e+00> : vector<8x512xf32>
    %208 = tpu.matmul %206, %8, %cst_37 {dimension_numbers = #tpu.dot_dimension_numbers<[1], [0], [0], [1], [0, 0, 1, 1], [], []>} : vector<8x128xf32>, vector<128x512xf32>, vector<8x512xf32> -> vector<8x512xf32>
    %209 = arith.addf %207, %208 : vector<8x512xf32>
    %210 = vector.extract_strided_slice %209 {offsets = [0, 0], sizes = [8, 128], strides = [1, 1]} : vector<8x512xf32> to vector<8x128xf32>
    %211 = arith.negf %210 : vector<8x128xf32>
    %212 = math.exp %211 : vector<8x128xf32>
    %cst_38 = arith.constant 1.000000e+00 : f32
    %213 = vector.broadcast %cst_38 : f32 to vector<8x128xf32>
    %214 = arith.addf %213, %212 : vector<8x128xf32>
    %215 = arith.divf %213, %214 : vector<8x128xf32>
    %216 = vector.extract_strided_slice %209 {offsets = [0, 128], sizes = [8, 128], strides = [1, 1]} : vector<8x512xf32> to vector<8x128xf32>
    %217 = arith.negf %216 : vector<8x128xf32>
    %218 = math.exp %217 : vector<8x128xf32>
    %cst_39 = arith.constant 1.000000e+00 : f32
    %219 = vector.broadcast %cst_39 : f32 to vector<8x128xf32>
    %220 = arith.addf %219, %218 : vector<8x128xf32>
    %221 = arith.divf %219, %220 : vector<8x128xf32>
    %222 = vector.extract_strided_slice %209 {offsets = [0, 256], sizes = [8, 128], strides = [1, 1]} : vector<8x512xf32> to vector<8x128xf32>
    %223 = math.tanh %222 : vector<8x128xf32>
    %224 = vector.extract_strided_slice %209 {offsets = [0, 384], sizes = [8, 128], strides = [1, 1]} : vector<8x512xf32> to vector<8x128xf32>
    %225 = arith.negf %224 : vector<8x128xf32>
    %226 = math.exp %225 : vector<8x128xf32>
    %cst_40 = arith.constant 1.000000e+00 : f32
    %227 = vector.broadcast %cst_40 : f32 to vector<8x128xf32>
    %228 = arith.addf %227, %226 : vector<8x128xf32>
    %229 = arith.divf %227, %228 : vector<8x128xf32>
    %230 = arith.mulf %221, %204 : vector<8x128xf32>
    %231 = arith.mulf %215, %223 : vector<8x128xf32>
    %232 = arith.addf %230, %231 : vector<8x128xf32>
    %233 = math.tanh %232 : vector<8x128xf32>
    %234 = arith.mulf %229, %233 : vector<8x128xf32>
    %235 = tpu.concatenate %38, %66, %94, %122, %150, %178, %206, %234 in 0 : vector<8x128xf32>, vector<8x128xf32>, vector<8x128xf32>, vector<8x128xf32>, vector<8x128xf32>, vector<8x128xf32>, vector<8x128xf32>, vector<8x128xf32> -> vector<64x128xf32>
    %c0_41 = arith.constant 0 : index
    %c512 = arith.constant 512 : index
    %236 = vector.load %arg2[%c0_41, %c512] : memref<128x1152xf32, #tpu.memory_space<vmem>>, vector<128x256xf32>
    %c1 = arith.constant 1 : index
    %c0_42 = arith.constant 0 : index
    %237 = vector.load %arg3[%c1, %c0_42] : memref<8x640xf32, #tpu.memory_space<vmem>>, vector<1x256xf32>
    %cst_43 = arith.constant dense<0.000000e+00> : vector<64x256xf32>
    %238 = tpu.matmul %235, %236, %cst_43 {dimension_numbers = #tpu.dot_dimension_numbers<[1], [0], [0], [1], [0, 0, 1, 1], [], []>} : vector<64x128xf32>, vector<128x256xf32>, vector<64x256xf32> -> vector<64x256xf32>
    %239 = vector.broadcast %237 : vector<1x256xf32> to vector<64x256xf32>
    %240 = arith.addf %238, %239 : vector<64x256xf32>
    %241 = vector.extract_strided_slice %240 {offsets = [0, 0], sizes = [64, 128], strides = [1, 1]} : vector<64x256xf32> to vector<64x128xf32>
    %242 = vector.extract_strided_slice %240 {offsets = [0, 128], sizes = [64, 128], strides = [1, 1]} : vector<64x256xf32> to vector<64x128xf32>
    %c0_44 = arith.constant 0 : index
    %c896 = arith.constant 896 : index
    %243 = vector.load %arg2[%c0_44, %c896] : memref<128x1152xf32, #tpu.memory_space<vmem>>, vector<128x128xf32>
    %c0_45 = arith.constant 0 : index
    %c1024 = arith.constant 1024 : index
    %244 = vector.load %arg2[%c0_45, %c1024] : memref<128x1152xf32, #tpu.memory_space<vmem>>, vector<128x128xf32>
    %cst_46 = arith.constant 2.000000e-01 : f32
    %245 = vector.broadcast %cst_46 : f32 to vector<64x128xf32>
    %246 = arith.mulf %7, %245 : vector<64x128xf32>
    %247 = arith.mulf %246, %241 : vector<64x128xf32>
    %cst_47 = arith.constant dense<0.000000e+00> : vector<64x128xf32>
    %248 = tpu.matmul %247, %243, %cst_47 {dimension_numbers = #tpu.dot_dimension_numbers<[1], [0], [0], [1], [0, 0, 1, 1], [], []>} : vector<64x128xf32>, vector<128x128xf32>, vector<64x128xf32> -> vector<64x128xf32>
    %249 = vector.extract_strided_slice %248 {offsets = [0, 0], sizes = [8, 128], strides = [1, 1]} : vector<64x128xf32> to vector<8x128xf32>
    %250 = vector.extract_strided_slice %248 {offsets = [8, 0], sizes = [8, 128], strides = [1, 1]} : vector<64x128xf32> to vector<8x128xf32>
    %251 = vector.extract_strided_slice %248 {offsets = [16, 0], sizes = [8, 128], strides = [1, 1]} : vector<64x128xf32> to vector<8x128xf32>
    %252 = vector.extract_strided_slice %248 {offsets = [24, 0], sizes = [8, 128], strides = [1, 1]} : vector<64x128xf32> to vector<8x128xf32>
    %253 = vector.extract_strided_slice %248 {offsets = [32, 0], sizes = [8, 128], strides = [1, 1]} : vector<64x128xf32> to vector<8x128xf32>
    %254 = vector.extract_strided_slice %248 {offsets = [40, 0], sizes = [8, 128], strides = [1, 1]} : vector<64x128xf32> to vector<8x128xf32>
    %255 = vector.extract_strided_slice %248 {offsets = [48, 0], sizes = [8, 128], strides = [1, 1]} : vector<64x128xf32> to vector<8x128xf32>
    %256 = vector.extract_strided_slice %248 {offsets = [56, 0], sizes = [8, 128], strides = [1, 1]} : vector<64x128xf32> to vector<8x128xf32>
    %257 = arith.maximumf %249, %250 : vector<8x128xf32>
    %258 = arith.maximumf %257, %251 : vector<8x128xf32>
    %259 = arith.maximumf %258, %252 : vector<8x128xf32>
    %260 = arith.maximumf %259, %253 : vector<8x128xf32>
    %261 = arith.maximumf %260, %254 : vector<8x128xf32>
    %262 = arith.maximumf %261, %255 : vector<8x128xf32>
    %263 = arith.maximumf %262, %256 : vector<8x128xf32>
    %264 = arith.subf %249, %263 : vector<8x128xf32>
    %265 = math.exp %264 : vector<8x128xf32>
    %266 = arith.subf %250, %263 : vector<8x128xf32>
    %267 = math.exp %266 : vector<8x128xf32>
    %268 = arith.subf %251, %263 : vector<8x128xf32>
    %269 = math.exp %268 : vector<8x128xf32>
    %270 = arith.subf %252, %263 : vector<8x128xf32>
    %271 = math.exp %270 : vector<8x128xf32>
    %272 = arith.subf %253, %263 : vector<8x128xf32>
    %273 = math.exp %272 : vector<8x128xf32>
    %274 = arith.subf %254, %263 : vector<8x128xf32>
    %275 = math.exp %274 : vector<8x128xf32>
    %276 = arith.subf %255, %263 : vector<8x128xf32>
    %277 = math.exp %276 : vector<8x128xf32>
    %278 = arith.subf %256, %263 : vector<8x128xf32>
    %279 = math.exp %278 : vector<8x128xf32>
    %280 = arith.addf %265, %267 : vector<8x128xf32>
    %281 = arith.addf %280, %269 : vector<8x128xf32>
    %282 = arith.addf %281, %271 : vector<8x128xf32>
    %283 = arith.addf %282, %273 : vector<8x128xf32>
    %284 = arith.addf %283, %275 : vector<8x128xf32>
    %285 = arith.addf %284, %277 : vector<8x128xf32>
    %286 = arith.addf %285, %279 : vector<8x128xf32>
    %287 = tpu.reciprocal %286 {approx = true} : vector<8x128xf32> -> vector<8x128xf32>
    %288 = arith.mulf %265, %287 : vector<8x128xf32>
    %289 = arith.mulf %267, %287 : vector<8x128xf32>
    %290 = arith.mulf %269, %287 : vector<8x128xf32>
    %291 = arith.mulf %271, %287 : vector<8x128xf32>
    %292 = arith.mulf %273, %287 : vector<8x128xf32>
    %293 = arith.mulf %275, %287 : vector<8x128xf32>
    %294 = arith.mulf %277, %287 : vector<8x128xf32>
    %295 = arith.mulf %279, %287 : vector<8x128xf32>
    %296 = tpu.concatenate %288, %289, %290, %291, %292, %293, %294, %295 in 0 : vector<8x128xf32>, vector<8x128xf32>, vector<8x128xf32>, vector<8x128xf32>, vector<8x128xf32>, vector<8x128xf32>, vector<8x128xf32>, vector<8x128xf32> -> vector<64x128xf32>
    %cst_48 = arith.constant dense<0.000000e+00> : vector<64x128xf32>
    %297 = tpu.matmul %296, %244, %cst_48 {dimension_numbers = #tpu.dot_dimension_numbers<[1], [0], [0], [1], [0, 0, 1, 1], [], []>} : vector<64x128xf32>, vector<128x128xf32>, vector<64x128xf32> -> vector<64x128xf32>
    %298 = arith.mulf %297, %242 : vector<64x128xf32>
    %299 = vector.extract_strided_slice %298 {offsets = [0, 0], sizes = [8, 128], strides = [1, 1]} : vector<64x128xf32> to vector<8x128xf32>
    %300 = vector.extract_strided_slice %298 {offsets = [8, 0], sizes = [8, 128], strides = [1, 1]} : vector<64x128xf32> to vector<8x128xf32>
    %301 = arith.addf %299, %300 : vector<8x128xf32>
    %302 = vector.extract_strided_slice %298 {offsets = [16, 0], sizes = [8, 128], strides = [1, 1]} : vector<64x128xf32> to vector<8x128xf32>
    %303 = arith.addf %301, %302 : vector<8x128xf32>
    %304 = vector.extract_strided_slice %298 {offsets = [24, 0], sizes = [8, 128], strides = [1, 1]} : vector<64x128xf32> to vector<8x128xf32>
    %305 = arith.addf %303, %304 : vector<8x128xf32>
    %306 = vector.extract_strided_slice %298 {offsets = [32, 0], sizes = [8, 128], strides = [1, 1]} : vector<64x128xf32> to vector<8x128xf32>
    %307 = arith.addf %305, %306 : vector<8x128xf32>
    %308 = vector.extract_strided_slice %298 {offsets = [40, 0], sizes = [8, 128], strides = [1, 1]} : vector<64x128xf32> to vector<8x128xf32>
    %309 = arith.addf %307, %308 : vector<8x128xf32>
    %310 = vector.extract_strided_slice %298 {offsets = [48, 0], sizes = [8, 128], strides = [1, 1]} : vector<64x128xf32> to vector<8x128xf32>
    %311 = arith.addf %309, %310 : vector<8x128xf32>
    %312 = vector.extract_strided_slice %298 {offsets = [56, 0], sizes = [8, 128], strides = [1, 1]} : vector<64x128xf32> to vector<8x128xf32>
    %313 = arith.addf %311, %312 : vector<8x128xf32>
    %c0_49 = arith.constant 0 : index
    %c768 = arith.constant 768 : index
    %314 = vector.load %arg2[%c0_49, %c768] : memref<128x1152xf32, #tpu.memory_space<vmem>>, vector<128x128xf32>
    %c1_50 = arith.constant 1 : index
    %c256 = arith.constant 256 : index
    %315 = vector.load %arg3[%c1_50, %c256] : memref<8x640xf32, #tpu.memory_space<vmem>>, vector<1x128xf32>
    %cst_51 = arith.constant dense<0.000000e+00> : vector<8x128xf32>
    %316 = tpu.matmul %313, %314, %cst_51 {dimension_numbers = #tpu.dot_dimension_numbers<[1], [0], [0], [1], [0, 0, 1, 1], [], []>} : vector<8x128xf32>, vector<128x128xf32>, vector<8x128xf32> -> vector<8x128xf32>
    %317 = vector.broadcast %315 : vector<1x128xf32> to vector<8x128xf32>
    %318 = arith.addf %316, %317 : vector<8x128xf32>
    %c0_52 = arith.constant 0 : index
    %c0_53 = arith.constant 0 : index
    %319 = vector.load %arg4[%c0_52, %c0_53] : memref<8x128xf32, #tpu.memory_space<vmem>>, vector<8x128xf32>
    tpu.vector_store %arg4[%c0_52, %c0_53], %318 {strides = array<i32>} : memref<8x128xf32, #tpu.memory_space<vmem>>, vector<8x128xf32>,
    return
  }
}

</mosaic_0001>

<bundles_post_ra>
// kernel: mlp_critic_forward.1
= control target key start
LH: loop header
LB: loop body
LE: loop exit
PB: predicated region body
PF: predicated region fallthrough
CT: control target
= control target key end

     0   :  { %9 = vsyncpa [#allocation3], 0  ;;  %s4322_s0 = inlined_call_operand.vmem [shape: f32[64,48], index: 0, kind: input, shape index: {}]   ;;  %s4323_s1 = inlined_call_operand.vmem [shape: f32[48,640], index: 1, kind: input, shape index: {}]   ;;  %s4324_s2 = inlined_call_operand.hbm [shape: f32[128,1152], index: 2, kind: input, shape index: {}]   ;;  %s4325_s3 = inlined_call_operand.hbm [shape: f32[8,640], index: 3, kind: input, shape index: {}]   ;;  %s4326_s4 = inlined_call_operand.vmem [shape: f32[8,128], index: 4, kind: output, shape index: {}]  }
   0x1   :  { %10 = vsyncpa [#allocation5], 0  ;;  %s2996_s15 = smov [#allocation2]  }
   0x2   :  { %s20_s16 = sshll.u32 %s2996_s15, 4  ;;  %s21_s16 = int_to_ptr.vmem [resolvable:$true] %s20_s16 }
   0x3   :  { %s2960_s17 = scalar_lea.vmem %s21_s16, 18432  ;;  %p2965_p1 = scmp.lt.s32.totalorder %s21_s16, %s21_s16 }
   0x4   :  { %p2961_p0 = scmp.ne.s32.totalorder %s21_s16, %s2960_s17  ;;  %p2966_p2 = scmp.lt.s32.totalorder %s2960_s17, %s2960_s17 }
   0x6   :  { %p2967_p3 = por %p2966_p2, %p2965_p1 }
   0x8   :  { %p2968_p4 = pnand %p2967_p3, %p2961_p0 }
   0xa   :  { %2971 = shalt.err (!%p2968_p4)
}
   0xb   :  { %s2997_s18 = smov 1152   ;;  %s2998_s19 = smov 72  }
   0xc   :  { %26 = dma.hbm_to_vmem [thread:$0]  %s4324_s2, 18432, %s21_s16, [#allocation3], %s2997_s18, %s2997_s18, %s2998_s19  }
   0xd   :  { %s2999_s22 = smov [#allocation4]  }
   0xe   :  { %s33_s23 = sshll.u32 %s2999_s22, 4  ;;  %s34_s23 = int_to_ptr.vmem [resolvable:$true] %s33_s23 }
   0xf   :  { %s2980_s24 = scalar_lea.vmem %s34_s23, 640  ;;  %p2985_p6 = scmp.lt.s32.totalorder %s34_s23, %s34_s23 }
  0x10   :  { %p2981_p5 = scmp.ne.s32.totalorder %s34_s23, %s2980_s24  ;;  %p2986_p7 = scmp.lt.s32.totalorder %s2980_s24, %s2980_s24 }
  0x12   :  { %p2987_p8 = por %p2986_p7, %p2985_p6 }
  0x14   :  { %p2988_p9 = pnand %p2987_p8, %p2981_p5 }
  0x16   :  { %2991 = shalt.err (!%p2988_p9)
}
  0x17   :  { %36 = dma.hbm_to_vmem [thread:$0]  %s4325_s3, 640, %s34_s23, [#allocation5]  }
  0x18   :  { %2992 = dma.done.wait [#allocation3], 18432  }
  0x19   :  { %2993 = vsyncadd [#allocation3], 4294948864 }
  0x1a   :  { %2994 = dma.done.wait [#allocation5], 640  }
  0x1b   :  { %2995 = vsyncadd [#allocation5], 4294966656  ;;  %v4327_v0 = vmov 0.0   ;;  %v77_v1 = vld [vmem:[%s4323_s1 + $0xd0] sm:$0xff]  ;;  %v79_v2 = vld [vmem:[%s4323_s1 + $0xe0] sm:$0xff]  ;;  %vm110_vm0 = vcmask 392192  }
  0x1c   :  { %199 = vmatprep.mubr.f32.mxu0 %v4327_v0  ;;  %312 = vmatprep.mubr.f32.mxu1 %v4327_v0  ;;  %v76_v3 = vld [vmem:[%s4323_s1 + $0xc8] sm:$0xff]  ;;  %v78_v4 = vld [vmem:[%s4323_s1 + $0xd8] sm:$0xff]  ;;  %v71_v7 = vld [vmem:[%s4323_s1 + $0xa0] sm:$0xff]  ;;  %vm3001_vm1 = vmmov 0  }
  0x1d   :  { %155 = vmatprep.subr.mxu0 %v77_v1  ;;  %268 = vmatprep.subr.mxu1 %v79_v2  ;;  %v72_v5 = vld [vmem:[%s4323_s1 + $0xa8] sm:$0xff]  ;;  %v74_v6 = vld [vmem:[%s4323_s1 + $0xb8] sm:$0xff]  ;;  %v73_v8 = vld [vmem:[%s4323_s1 + $0xb0] sm:$0xff] }
  0x1e   :  { %156 = vmatpush1.msra.mxu0 %v76_v3  ;;  %269 = vmatpush1.msra.mxu1 %v78_v4  ;;  %v67_v9 = vld [vmem:[%s4323_s1 + $0x80] sm:$0xff]  ;;  %v69_v10 = vld [vmem:[%s4323_s1 + $0x90] sm:$0xff]  ;;  %v66_v11 = vld [vmem:[%s4323_s1 + $0x78] sm:$0xff] }
  0x1f   :  { %157 = vmatprep.subr.mxu0 %v72_v5  ;;  %270 = vmatprep.subr.mxu1 %v74_v6  ;;  %v68_v12 = vld [vmem:[%s4323_s1 + $0x88] sm:$0xff]  ;;  %v62_v13 = vld [vmem:[%s4323_s1 + $0x58] sm:$0xff]  ;;  %v61_v15 = vld [vmem:[%s4323_s1 + $0x50] sm:$0xff] }
  0x20   :  { %158 = vmatpush1.msra.mxu0 %v71_v7  ;;  %271 = vmatpush1.msra.mxu1 %v73_v8  ;;  %v64_v14 = vld [vmem:[%s4323_s1 + $0x68] sm:$0xff]  ;;  %v63_v16 = vld [vmem:[%s4323_s1 + $0x60] sm:$0xff]  ;;  %v57_v17 = vld [vmem:[%s4323_s1 + $0x30] sm:$0xff] }
  0x21   :  { %159 = vmatprep.subr.mxu0 %v67_v9  ;;  %272 = vmatprep.subr.mxu1 %v69_v10  ;;  %v59_v18 = vld [vmem:[%s4323_s1 + $0x40] sm:$0xff]  ;;  %v56_v19 = vld [vmem:[%s4323_s1 + $0x28] sm:$0xff]  ;;  %v58_v20 = vld [vmem:[%s4323_s1 + $0x38] sm:$0xff] }
  0x22   :  { %160 = vmatpush1.msra.mxu0 %v66_v11  ;;  %273 = vmatpush1.msra.mxu1 %v68_v12  ;;  %v52_v21 = vld [vmem:[%s4323_s1 + $0x8] sm:$0xff]  ;;  %v54_v22 = vld [vmem:[%s4323_s1 + $0x18] sm:$0xff]  ;;  %v51_v23 = vld [vmem:[%s4323_s1] sm:$0xff] }
  0x23   :  { %161 = vmatprep.subr.mxu0 %v62_v13  ;;  %274 = vmatprep.subr.mxu1 %v64_v14  ;;  %v53_v24 = vld [vmem:[%s4323_s1 + $0x10] sm:$0xff]  ;;  %v3110_v25 = vld [vmem:[%s4322_s0] sm:$0xff]  ;;  %v80_v26 = vld [vmem:[%s4323_s1 + $0xe8] sm:$0xff] }
  0x24   :  { %162 = vmatpush1.msra.mxu0 %v61_v15  ;;  %275 = vmatpush1.msra.mxu1 %v63_v16  ;;  %v3115_v27 = vld [vmem:[#allocation2 + $0x440] sm:$0xff]  ;;  %v3117_v28 = vld [vmem:[#allocation2 + $0x438] sm:$0xff]  ;;  %v3126_v30 = vld [vmem:[#allocation2 + $0x3f0] sm:$0xff] }
  0x25   :  { %163 = vmatprep.subr.mxu0 %v57_v17  ;;  %276 = vmatprep.subr.mxu1 %v59_v18  ;;  %4427 = vst [vmem:[#allocation8_spill] sm:$0xff] %v3115_v27  ;;  %v3123_v29 = vld [vmem:[#allocation2 + $0x3f8] sm:$0xff]  ;;  %v3132_v31 = vld [vmem:[%s4322_s0 + $0x8] sm:$0xff]  ;;  %v3136_v32 = vld [vmem:[#allocation2 + $0x3b0] sm:$0xff] }
  0x26   :  { %164 = vmatpush1.msra.mxu0 %v56_v19  ;;  %277 = vmatpush1.msra.mxu1 %v58_v20  ;;  %v75_v33 = vld [vmem:[%s4323_s1 + $0xc0] sm:$0xff]  ;;  %v3143_v34 = vld [vmem:[#allocation2 + $0x3a8] sm:$0xff]  ;;  %v3159_v37 = vld [vmem:[%s4322_s0 + $0x10] sm:$0xff] }
  0x27   :  { %165 = vmatprep.subr.mxu0 %v52_v21  ;;  %278 = vmatprep.subr.mxu1 %v54_v22  ;;  %v3149_v35 = vld [vmem:[#allocation2 + $0x368] sm:$0xff]  ;;  %v3152_v36 = vld [vmem:[#allocation2 + $0x360] sm:$0xff]  ;;  %v3166_v39 = vld [vmem:[#allocation2 + $0x318] sm:$0xff] }
  0x28   :  { %166 = vmatpush1.msra.mxu0 %v51_v23  ;;  %279 = vmatpush1.msra.mxu1 %v53_v24  ;;  %v3163_v38 = vld [vmem:[#allocation2 + $0x320] sm:$0xff]  ;;  %v3172_v40 = vld [vmem:[#allocation2 + $0x2d8] sm:$0xff]  ;;  %v3179_v42 = vld [vmem:[#allocation2 + $0x2d0] sm:$0xff] }
  0x29   :  { %2462 = vmatmul.mubr.msk.f32.vlgmr.msra.gmra.mxu0 %vm110_vm0, %v3110_v25  ;;  %2470 = vmatmul.mubr.msk.f32.vlgmr.msra.gmra.mxu1 %vm110_vm0, %v3110_v25  ;;  %v70_v41 = vld [vmem:[%s4323_s1 + $0x98] sm:$0xff]  ;;  %v3189_v44 = vld [vmem:[#allocation2 + $0x290] sm:$0xff]  ;;  %v3194_v45 = vld [vmem:[#allocation2 + $0x288] sm:$0xff] }
  0x2a   :  { %2589 = vmatprep.subr.mxu0 %v80_v26  ;;  %530 = vmatprep.subr.mxu1 %v3115_v27  ;;  %v3184_v43 = vld [vmem:[%s4322_s0 + $0x18] sm:$0xff]  ;;  %v3198_v46 = vld [vmem:[#allocation2 + $0x248] sm:$0xff]  ;;  %v3203_v47 = vld [vmem:[%s4322_s0 + $0x20] sm:$0xff] }
  0x2b   :  { %2590 = vmatpush3.msra.mxu0 %v80_v26  ;;  %531 = vmatpush1.msra.mxu1 %v3117_v28  ;;  %v3207_v48 = vld [vmem:[#allocation2 + $0x240] sm:$0xff]  ;;  %v65_v49 = vld [vmem:[%s4323_s1 + $0x70] sm:$0xff]  ;;  %v3219_v51 = vld [vmem:[#allocation2 + $0x1f8] sm:$0xff] }
  0x2c   :  { %532 = vmatprep.subr.mxu1 %v3123_v29  ;;  %205 = vmatprep.mubr.f32.mxu0 %v4327_v0  ;;  %v3214_v50 = vld [vmem:[#allocation2 + $0x200] sm:$0xff]  ;;  %4428 = vst [vmem:[#allocation9_spill] sm:$0xff] %v3219_v51  ;;  %v3222_v52 = vld [vmem:[#allocation2 + $0x1b8] sm:$0xff]  ;;  %v3227_v53 = vld [vmem:[#allocation2 + $0x1b0] sm:$0xff] }
  0x2d   :  { %318 = vmatprep.mubr.f32.mxu1 %v4327_v0  ;;  %533 = vmatpush1.msra.mxu1 %v3126_v30  ;;  %v3233_v54 = vld [vmem:[%s4322_s0 + $0x28] sm:$0xff]  ;;  %v3237_v55 = vld [vmem:[#allocation2 + $0x170] sm:$0xff]  ;;  %v3253_v59 = vld [vmem:[#allocation2 + $0x120] sm:$0xff] }
  0x2e   :  { %2463 = vmatmul.mubr.msk.f32.gmra.mxu0 %vm110_vm0, %v3132_v31  ;;  %2471 = vmatmul.mubr.msk.f32.gmra.mxu1 %vm110_vm0, %v3132_v31  ;;  %v60_v56 = vld [vmem:[%s4323_s1 + $0x48] sm:$0xff]  ;;  %4430 = vst [vmem:[#allocation11_spill] sm:$0xff] %v3253_v59  ;;  %v3260_v60 = vld [vmem:[%s4322_s0 + $0x30] sm:$0xff]  ;;  %v3264_v61 = vld [vmem:[#allocation2 + $0xe0] sm:$0xff] }
  0x2f   :  { %534 = vmatprep.subr.mxu1 %v3136_v32  ;;  %2591 = vmatprep.subr.mxu0 %v75_v33  ;;  %v3244_v57 = vld [vmem:[#allocation2 + $0x168] sm:$0xff]  ;;  %4431 = vst [vmem:[#allocation12_spill] sm:$0xff] %v3264_v61  ;;  %v3267_v62 = vld [vmem:[#allocation2 + $0xd8] sm:$0xff]  ;;  %v55_v1 = vld [vmem:[%s4323_s1 + $0x20] sm:$0xff] }
  0x30   :  { %535 = vmatpush1.msra.mxu1 %v3143_v34  ;;  %211 = vmatprep.mubr.f32.mxu0 %v4327_v0  ;;  %v3250_v58 = vld [vmem:[#allocation2 + $0x128] sm:$0xff]  ;;  %4432 = vst [vmem:[#allocation13_spill] sm:$0xff] %v3267_v62  ;;  %v3273_v63 = vld [vmem:[#allocation2 + $0x98] sm:$0xff]  ;;  %v3280_v2 = vld [vmem:[#allocation2 + $0x90] sm:$0xff] }
  0x31   :  { %536 = vmatprep.subr.mxu1 %v3149_v35  ;;  %324 = vmatprep.mubr.f32.mxu1 %v4327_v0  ;;  %4429 = vst [vmem:[#allocation10_spill] sm:$0xff] %v3250_v58  ;;  %4433 = vst [vmem:[#allocation14_spill] sm:$0xff] %v3273_v63  ;;  %v50_v3 = vld [vmem:[%s4322_s0 + $0x38] sm:$0xff]  ;;  %v3288_v4 = vld [vmem:[#allocation2 + $0x50] sm:$0xff] }
  0x32   :  { %2592 = vmatpush3.msra.mxu0 %v75_v33  ;;  %537 = vmatpush1.msra.mxu1 %v3152_v36  ;;  %4434 = vst [vmem:[#allocation15_spill] sm:$0xff] %v3280_v2  ;;  %4435 = vst [vmem:[#allocation16_spill] sm:$0xff] %v3288_v4  ;;  %v3292_v5 = vld [vmem:[#allocation2 + $0x48] sm:$0xff]  ;;  %v3297_v7 = vld [vmem:[#allocation2 + $0x450] sm:$0xff] }
  0x33   :  { %2464 = vmatmul.mubr.msk.f32.gmra.mxu0 %vm110_vm0, %v3159_v37  ;;  %2472 = vmatmul.mubr.msk.f32.gmra.mxu1 %vm110_vm0, %v3159_v37  ;;  %4436 = vst [vmem:[#allocation17_spill] sm:$0xff] %v3292_v5  ;;  %v3295_v6 = vld [vmem:[#allocation2 + $0x8] sm:$0xff]  ;;  %4438 = vst [vmem:[#allocation19_spill] sm:$0xff] %v3297_v7  ;;  %v3302_v8 = vld [vmem:[#allocation2] sm:$0xff] }
  0x34   :  { %538 = vmatprep.subr.mxu1 %v3163_v38  ;;  %217 = vmatprep.mubr.f32.mxu0 %v4327_v0  ;;  %4437 = vst [vmem:[#allocation18_spill] sm:$0xff] %v3295_v6  ;;  %4439 = vst [vmem:[#allocation20_spill] sm:$0xff] %v3302_v8  ;;  %v3306_v9 = vld [vmem:[#allocation2 + $0x448] sm:$0xff]  ;;  %v3315_v11 = vld [vmem:[#allocation2 + $0x400] sm:$0xff] }
  0x35   :  { %539 = vmatpush1.msra.mxu1 %v3166_v39  ;;  %330 = vmatprep.mubr.f32.mxu1 %v4327_v0  ;;  %v3310_v10 = vld [vmem:[#allocation2 + $0x408] sm:$0xff]  ;;  %v3319_v12 = vld [vmem:[#allocation2 + $0x3c0] sm:$0xff]  ;;  %v3322_v13 = vld [vmem:[#allocation2 + $0x3b8] sm:$0xff] }
  0x36   :  { %540 = vmatprep.subr.mxu1 %v3172_v40  ;;  %2593 = vmatprep.subr.mxu0 %v70_v41  ;;  %v3327_v14 = vld [vmem:[#allocation2 + $0x378] sm:$0xff]  ;;  %v3331_v15 = vld [vmem:[#allocation2 + $0x370] sm:$0xff]  ;;  %v3341_v17 = vld [vmem:[#allocation2 + $0x328] sm:$0xff] }
  0x37   :  { %541 = vmatpush1.msra.mxu1 %v3179_v42  ;;  %2465 = vmatmul.mubr.msk.f32.gmra.mxu0 %vm110_vm0, %v3184_v43  ;;  %v3336_v16 = vld [vmem:[#allocation2 + $0x330] sm:$0xff]  ;;  %v3345_v18 = vld [vmem:[#allocation2 + $0x2e8] sm:$0xff]  ;;  %v3349_v19 = vld [vmem:[#allocation2 + $0x2e0] sm:$0xff] }
  0x38   :  { %2473 = vmatmul.mubr.msk.f32.gmra.mxu1 %vm110_vm0, %v3184_v43  ;;  %2594 = vmatpush3.msra.mxu0 %v70_v41  ;;  %v3354_v20 = vld [vmem:[#allocation2 + $0x2a0] sm:$0xff]  ;;  %v3359_v21 = vld [vmem:[#allocation2 + $0x298] sm:$0xff]  ;;  %v3367_v23 = vld [vmem:[#allocation2 + $0x250] sm:$0xff] }
  0x39   :  { %542 = vmatprep.subr.mxu1 %v3189_v44  ;;  %223 = vmatprep.mubr.f32.mxu0 %v4327_v0  ;;  %v3363_v22 = vld [vmem:[#allocation2 + $0x258] sm:$0xff]  ;;  %v3371_v24 = vld [vmem:[#allocation2 + $0x210] sm:$0xff]  ;;  %v3379_v26 = vld [vmem:[#allocation2 + $0x1c8] sm:$0xff] }
  0x3a   :  { %543 = vmatpush1.msra.mxu1 %v3194_v45  ;;  %336 = vmatprep.mubr.f32.mxu1 %v4327_v0  ;;  %v3387_v33 = vld [vmem:[#allocation2 + $0x180] sm:$0xff]  ;;  %v3395_v41 = vld [vmem:[#allocation2 + $0x138] sm:$0xff] }
  0x3b   :  { %544 = vmatprep.subr.mxu1 %v3198_v46  ;;  %2466 = vmatmul.mubr.msk.f32.gmra.mxu0 %vm110_vm0, %v3203_v47  ;;  %4441 = vst [vmem:[#allocation22_spill] sm:$0xff] %v3395_v41 }
  0x3c   :  { %545 = vmatpush1.msra.mxu1 %v3207_v48  ;;  %2595 = vmatprep.subr.mxu0 %v65_v49 }
  0x3d   :  { %2474 = vmatmul.mubr.msk.f32.gmra.mxu1 %vm110_vm0, %v3203_v47  ;;  %546 = vmatprep.subr.mxu1 %v3214_v50 }
  0x3e   :  { %2596 = vmatpush3.msra.mxu0 %v65_v49  ;;  %547 = vmatpush1.msra.mxu1 %v3219_v51  ;;  %v3407_v49 = vld [vmem:[#allocation2 + $0xe8] sm:$0xff] }
  0x3f   :  { %548 = vmatprep.subr.mxu1 %v3222_v52  ;;  %229 = vmatprep.mubr.f32.mxu0 %v4327_v0  ;;  %4444 = vst [vmem:[#allocation25_spill] sm:$0xff] %v3407_v49 }
  0x40   :  { %342 = vmatprep.mubr.f32.mxu1 %v4327_v0  ;;  %549 = vmatpush1.msra.mxu1 %v3227_v53 }
  0x41   :  { %2467 = vmatmul.mubr.msk.f32.gmra.mxu0 %vm110_vm0, %v3233_v54  ;;  %2475 = vmatmul.mubr.msk.f32.gmra.mxu1 %vm110_vm0, %v3233_v54 }
  0x42   :  { %550 = vmatprep.subr.mxu1 %v3237_v55  ;;  %2597 = vmatprep.subr.mxu0 %v60_v56 }
  0x43   :  { %551 = vmatpush1.msra.mxu1 %v3244_v57  ;;  %235 = vmatprep.mubr.f32.mxu0 %v4327_v0 }
  0x44   :  { %552 = vmatprep.subr.mxu1 %v3250_v58  ;;  %348 = vmatprep.mubr.f32.mxu1 %v4327_v0 }
  0x45   :  { %2598 = vmatpush3.msra.mxu0 %v60_v56  ;;  %553 = vmatpush1.msra.mxu1 %v3253_v59  ;;  %v3415_v56 = vld [vmem:[#allocation2 + $0xa0] sm:$0xff] }
  0x46   :  { %2468 = vmatmul.mubr.msk.f32.gmra.mxu0 %vm110_vm0, %v3260_v60  ;;  %2476 = vmatmul.mubr.msk.f32.gmra.mxu1 %vm110_vm0, %v3260_v60  ;;  %4446 = vst [vmem:[#allocation27_spill] sm:$0xff] %v3415_v56 }
  0x47   :  { %554 = vmatprep.subr.mxu1 %v3264_v61  ;;  %241 = vmatprep.mubr.f32.mxu0 %v4327_v0 }
  0x48   :  { %555 = vmatpush1.msra.mxu1 %v3267_v62  ;;  %354 = vmatprep.mubr.f32.mxu1 %v4327_v0 }
  0x49   :  { %556 = vmatprep.subr.mxu1 %v3273_v63  ;;  %2599 = vmatprep.subr.mxu0 %v55_v1 }
  0x4a   :  { %557 = vmatpush1.msra.mxu1 %v3280_v2  ;;  %2469 = vmatmul.mubr.msk.f32.gmra.mxu0 %vm110_vm0, %v50_v3 }
  0x4b   :  { %2477 = vmatmul.mubr.msk.f32.gmra.mxu1 %vm110_vm0, %v50_v3  ;;  %2600 = vmatpush3.msra.mxu0 %v55_v1  ;;  %v3423_v1 = vld [vmem:[#allocation2 + $0x58] sm:$0xff] }
  0x4c   :  { %558 = vmatprep.subr.mxu1 %v3288_v4  ;;  %2601 = vmatprep.mubr.msk.f32.mxu0 %vm110_vm0, %v3110_v25  ;;  %v3375_v25 = vld [vmem:[#allocation2 + $0x208] sm:$0xff]  ;;  %4448 = vst [vmem:[#allocation29_spill] sm:$0xff] %v3423_v1 }
  0x4d   :  { %559 = vmatpush1.msra.mxu1 %v3292_v5  ;;  %594 = vmatprep.mubr.f32.mxu1 %v4327_v0 }
  0x4e   :  { %560 = vmatprep.subr.mxu1 %v3295_v6  ;;  %601 = vmatprep.subr.mxu0 %v3297_v7 }
  0x4f   :  { %561 = vmatpush1.msra.mxu1 %v3302_v8  ;;  %2602 = vmatmul.mubr.msk.f32.vlgmr.msra.gmra.mxu0 %vm110_vm0, %v3132_v31  ;;  %v3383_v31 = vld [vmem:[#allocation2 + $0x1c0] sm:$0xff] }
  0x50   :  { %595 = vmatmul.mubr.f32.vlgmr.msra.gmra.mxu1 %v4327_v0  ;;  %602 = vmatpush1.msra.mxu0 %v3306_v9 }
  0x51   :  { %603 = vmatprep.subr.mxu0 %v3310_v10  ;;  %2604 = vmatprep.mubr.msk.f32.mxu0 %vm110_vm0, %v3159_v37  ;;  %v3391_v37 = vld [vmem:[#allocation2 + $0x178] sm:$0xff] }
  0x52   :  { %604 = vmatpush1.msra.mxu0 %v3315_v11  ;;  %700 = vmatprep.subr.mxu1 %v3115_v27  ;;  %4440 = vst [vmem:[#allocation21_spill] sm:$0xff] %v3391_v37 }
  0x53   :  { %605 = vmatprep.subr.mxu0 %v3319_v12  ;;  %2605 = vmatmul.mubr.msk.f32.gmra.mxu0 %vm110_vm0, %v3184_v43  ;;  %v3399_v43 = vld [vmem:[#allocation2 + $0x130] sm:$0xff] }
  0x54   :  { %606 = vmatpush1.msra.mxu0 %v3322_v13  ;;  %2607 = vmatprep.mubr.msk.f32.mxu0 %vm110_vm0, %v3203_v47  ;;  %4442 = vst [vmem:[#allocation23_spill] sm:$0xff] %v3399_v43  ;;  %v3403_v47 = vld [vmem:[#allocation2 + $0xf0] sm:$0xff] }
  0x55   :  { %607 = vmatprep.subr.mxu0 %v3327_v14  ;;  %701 = vmatpush1.msra.mxu1 %v3117_v28  ;;  %4443 = vst [vmem:[#allocation24_spill] sm:$0xff] %v3403_v47 }
  0x56   :  { %608 = vmatpush1.msra.mxu0 %v3331_v15  ;;  %702 = vmatprep.subr.mxu1 %v3123_v29 }
  0x57   :  { %609 = vmatprep.subr.mxu0 %v3336_v16  ;;  %2608 = vmatmul.mubr.msk.f32.gmra.mxu0 %vm110_vm0, %v3233_v54  ;;  %v3411_v54 = vld [vmem:[#allocation2 + $0xa8] sm:$0xff] }
  0x58   :  { %610 = vmatpush1.msra.mxu0 %v3341_v17  ;;  %2610 = vmatprep.mubr.msk.f32.mxu0 %vm110_vm0, %v3260_v60  ;;  %4445 = vst [vmem:[#allocation26_spill] sm:$0xff] %v3411_v54  ;;  %v3419_v60 = vld [vmem:[#allocation2 + $0x60] sm:$0xff] }
  0x59   :  { %611 = vmatprep.subr.mxu0 %v3345_v18  ;;  %703 = vmatpush1.msra.mxu1 %v3126_v30  ;;  %4447 = vst [vmem:[#allocation28_spill] sm:$0xff] %v3419_v60 }
  0x5a   :  { %612 = vmatpush1.msra.mxu0 %v3349_v19  ;;  %704 = vmatprep.subr.mxu1 %v3136_v32 }
  0x5b   :  { %613 = vmatprep.subr.mxu0 %v3354_v20  ;;  %2611 = vmatmul.mubr.msk.f32.gmra.mxu0 %vm110_vm0, %v50_v3  ;;  %v3427_v3 = vld [vmem:[#allocation2 + $0x18] sm:$0xff] }
  0x5c   :  { %614 = vmatpush1.msra.mxu0 %v3359_v21  ;;  %665 = vmatprep.mubr.f32.mxu0 %v4327_v0  ;;  %4449 = vst [vmem:[#allocation30_spill] sm:$0xff] %v3427_v3  ;;  %v3431_v0 = vld [vmem:[#allocation2 + $0x10] sm:$0xff] }
  0x5d   :  { %615 = vmatprep.subr.mxu0 %v3363_v22  ;;  %705 = vmatpush1.msra.mxu1 %v3143_v34  ;;  %4450 = vst [vmem:[#allocation31_spill] sm:$0xff] %v3431_v0 }
  0x5e   :  { %616 = vmatpush1.msra.mxu0 %v3367_v23  ;;  %706 = vmatprep.subr.mxu1 %v3149_v35 }
  0x5f   :  { %617 = vmatprep.subr.mxu0 %v3371_v24  ;;  %707 = vmatpush1.msra.mxu1 %v3152_v36 }
  0x60   :  { %618 = vmatpush1.msra.mxu0 %v3375_v25  ;;  %708 = vmatprep.subr.mxu1 %v3163_v38 }
  0x61   :  { %619 = vmatprep.subr.mxu0 %v3379_v26  ;;  %709 = vmatpush1.msra.mxu1 %v3166_v39 }
  0x62   :  { %620 = vmatpush1.msra.mxu0 %v3383_v31  ;;  %710 = vmatprep.subr.mxu1 %v3172_v40 }
  0x63   :  { %621 = vmatprep.subr.mxu0 %v3387_v33  ;;  %711 = vmatpush1.msra.mxu1 %v3179_v42 }
  0x64   :  { %622 = vmatpush1.msra.mxu0 %v3391_v37  ;;  %712 = vmatprep.subr.mxu1 %v3189_v44 }
  0x65   :  { %623 = vmatprep.subr.mxu0 %v3395_v41  ;;  %713 = vmatpush1.msra.mxu1 %v3194_v45 }
  0x66   :  { %624 = vmatpush1.msra.mxu0 %v3399_v43  ;;  %714 = vmatprep.subr.mxu1 %v3198_v46 }
  0x67   :  { %625 = vmatprep.subr.mxu0 %v3403_v47  ;;  %715 = vmatpush1.msra.mxu1 %v3207_v48 }
  0x68   :  { %626 = vmatpush1.msra.mxu0 %v3407_v49  ;;  %716 = vmatprep.subr.mxu1 %v3214_v50 }
  0x69   :  { %627 = vmatprep.subr.mxu0 %v3411_v54  ;;  %717 = vmatpush1.msra.mxu1 %v3219_v51  ;;  %v4451_v51 = vmov 0.0  }
  0x6a   :  { %628 = vmatpush1.msra.mxu0 %v3415_v56  ;;  %718 = vmatprep.subr.mxu1 %v3222_v52 }
  0x6b   :  { %629 = vmatprep.subr.mxu0 %v3419_v60  ;;  %719 = vmatpush1.msra.mxu1 %v3227_v53 }
  0x6c   :  { %630 = vmatpush1.msra.mxu0 %v3423_v1  ;;  %720 = vmatprep.subr.mxu1 %v3237_v55 }
  0x6d   :  { %631 = vmatprep.subr.mxu0 %v3427_v3  ;;  %721 = vmatpush1.msra.mxu1 %v3244_v57 }
  0x6e   :  { %632 = vmatpush1.msra.mxu0 %v3431_v0  ;;  %722 = vmatprep.subr.mxu1 %v3250_v58 }
  0x6f   :  { %666 = vmatmul.mubr.f32.vlgmr.msra.gmra.mxu0 %v4451_v51  ;;  %771 = vmatprep.subr.mxu0 %v3297_v7 }
  0x70   :  { %772 = vmatpush1.msra.mxu0 %v3306_v9  ;;  %723 = vmatpush1.msra.mxu1 %v3253_v59 }
  0x71   :  { %773 = vmatprep.subr.mxu0 %v3310_v10  ;;  %724 = vmatprep.subr.mxu1 %v3264_v61 }
  0x72   :  { %774 = vmatpush1.msra.mxu0 %v3315_v11  ;;  %725 = vmatpush1.msra.mxu1 %v3267_v62 }
  0x73   :  { %775 = vmatprep.subr.mxu0 %v3319_v12  ;;  %726 = vmatprep.subr.mxu1 %v3273_v63 }
  0x74   :  { %776 = vmatpush1.msra.mxu0 %v3322_v13  ;;  %727 = vmatpush1.msra.mxu1 %v3280_v2 }
  0x75   :  { %777 = vmatprep.subr.mxu0 %v3327_v14  ;;  %728 = vmatprep.subr.mxu1 %v3288_v4 }
  0x76   :  { %778 = vmatpush1.msra.mxu0 %v3331_v15  ;;  %729 = vmatpush1.msra.mxu1 %v3292_v5 }
  0x77   :  { %779 = vmatprep.subr.mxu0 %v3336_v16  ;;  %730 = vmatprep.subr.mxu1 %v3295_v6  ;;  %v82_v6 = vld [vmem:[#allocation4] ss:$8 sm:$0x10] }
  0x78   :  { %780 = vmatpush1.msra.mxu0 %v3341_v17  ;;  %731 = vmatpush1.msra.mxu1 %v3302_v8  ;;  %v81_v8 = vld [vmem:[#allocation4] ss:$8 sm:$0xf] }
  0x79   :  { %781 = vmatprep.subr.mxu0 %v3345_v18  ;;  %764 = vmatprep.mubr.f32.mxu1 %v4451_v51  ;;  %v3488_v5 = vor.u32 %v82_v6, %v81_v8 }
  0x7a   :  { %782 = vmatpush1.msra.mxu0 %v3349_v19  ;;  %835 = vmatprep.mubr.f32.mxu0 %v4451_v51 }
  0x7b   :  { %783 = vmatprep.subr.mxu0 %v3354_v20  ;;  %870 = vmatprep.subr.mxu1 %v3115_v27  ;;  %v85_v27 = vlaneseq }
  0x7c   :  { %784 = vmatpush1.msra.mxu0 %v3359_v21 }
  0x7d   :  { %785 = vmatprep.subr.mxu0 %v3363_v22  ;;  %v3486_v51 = vshrl.u32 %v85_v27, 7 }
  0x7e   :  { %786 = vmatpush1.msra.mxu0 %v3367_v23 }
  0x7f   :  { %787 = vmatprep.subr.mxu0 %v3371_v24  ;;  %4452 = vst [vmem:[#allocation32_spill] sm:$0xff] %v3486_v51  ;;  %v4365_v4 = vsub.s32 0, %v3486_v51 }
  0x80   :  { %788 = vmatpush1.msra.mxu0 %v3375_v25 }
  0x81   :  { %789 = vmatprep.subr.mxu0 %v3379_v26  ;;  %v3505_v6 = vrot.slane %v3488_v5, %v4365_v4 }
  0x82   :  { %790 = vmatpush1.msra.mxu0 %v3383_v31 }
  0x83   :  { %791 = vmatprep.subr.mxu0 %v3387_v33 }
  0x84   :  { %792 = vmatpush1.msra.mxu0 %v3391_v37 }
  0x85   :  { %793 = vmatprep.subr.mxu0 %v3395_v41 }
  0x86   :  { %794 = vmatpush1.msra.mxu0 %v3399_v43 }
  0x87   :  { %795 = vmatprep.subr.mxu0 %v3403_v47 }
  0x88   :  { %796 = vmatpush1.msra.mxu0 %v3407_v49 }
  0x89   :  { %797 = vmatprep.subr.mxu0 %v3411_v54 }
  0x8a   :  { %798 = vmatpush1.msra.mxu0 %v3415_v56 }
  0x8b   :  { %799 = vmatprep.subr.mxu0 %v3419_v60  ;;  %v95_v60 = vsub.s32 2, %v3486_v51 }
  0x8c   :  { %800 = vmatpush1.msra.mxu0 %v3423_v1 }
  0x8d   :  { %801 = vmatprep.subr.mxu0 %v3427_v3  ;;  %v4374_v3 = vsub.s32 1, %v3486_v51  ;;  %v3508_v8 = vrot.slane %v3488_v5, %v95_v60 }
  0x8e   :  { %802 = vmatpush1.msra.mxu0 %v3431_v0 }
  0x8f   :  { %941 = vmatprep.subr.mxu0 %v3297_v7  ;;  %v99_v7 = vsub.s32 3, %v3486_v51  ;;  %v92_v63 = vrot.slane %v3488_v5, %v4374_v3 }
  0x91   :  { %v3514_v49 = vrot.slane %v3488_v5, %v99_v7 }
  0xe9   :  { %v3491_v56 = vpop.f32.mrf.mxu0  ;;  %v3494_v1 = vpop.f32.mrf.mxu1 }
  0xeb   :  { %v3497_v0 = vpop.f32.mrf.mxu0  ;;  %v3500_v27 = vpop.f32.mrf.mxu1 }
  0xee   :  { %v207_v2 = vpop.f32.mrf.mxu0  ;;  %v320_v54 = vpop.f32.mrf.mxu1 }
  0xef   :  { %v3517_v62 = vadd.f32 %v207_v2, %v3505_v6  ;;  %v3520_v47 = vadd.f32 %v320_v54, %v3508_v8 }
  0xf0   :  { %v209_v4 = vpop.f32.mrf.mxu0  ;;  %v322_v61 = vpop.f32.mrf.mxu1 }
  0xf1   :  { %4453 = vst [vmem:[#allocation33_spill] sm:$0xff] %v3517_v62  ;;  %4454 = vst [vmem:[#allocation34_spill] sm:$0xff] %v3520_v47  ;;  %v3522_v43 = vadd.f32 %v209_v4, %v92_v63  ;;  %v3525_v60 = vadd.f32 %v322_v61, %v3514_v49 }
  0xf3   :  { %4455 = vst [vmem:[#allocation35_spill] sm:$0xff] %v3522_v43  ;;  %4456 = vst [vmem:[#allocation36_spill] sm:$0xff] %v3525_v60  ;;  %v213_v59 = vpop.f32.mrf.mxu0  ;;  %v326_v41 = vpop.f32.mrf.mxu1 }
  0xf4   :  { %v3528_v3 = vadd.f32 %v213_v59, %v3505_v6  ;;  %v3531_v7 = vadd.f32 %v326_v41, %v3508_v8 }
  0xf5   :  { %v215_v2 = vpop.f32.mrf.mxu0  ;;  %v328_v62 = vpop.f32.mrf.mxu1 }
  0xf6   :  { %4457 = vst [vmem:[#allocation37_spill] sm:$0xff] %v3528_v3  ;;  %4458 = vst [vmem:[#allocation38_spill] sm:$0xff] %v3531_v7  ;;  %v3533_v58 = vadd.f32 %v215_v2, %v92_v63  ;;  %v3536_v54 = vadd.f32 %v328_v62, %v3514_v49 }
  0xf7   :  { %v219_v4 = vpop.f32.mrf.mxu0 }
  0xf8   :  { %4459 = vst [vmem:[#allocation39_spill] sm:$0xff] %v3533_v58  ;;  %4460 = vst [vmem:[#allocation40_spill] sm:$0xff] %v3536_v54  ;;  %v3539_v47 = vadd.f32 %v219_v4, %v3505_v6  ;;  %v332_v61 = vpop.f32.mrf.mxu1 }
  0xf9   :  { %v3542_v60 = vadd.f32 %v332_v61, %v3508_v8  ;;  %v221_v59 = vpop.f32.mrf.mxu0 }
  0xfa   :  { %4461 = vst [vmem:[#allocation41_spill] sm:$0xff] %v3539_v47  ;;  %v3544_v3 = vadd.f32 %v221_v59, %v92_v63  ;;  %v334_v41 = vpop.f32.mrf.mxu1 }
  0xfb   :  { %4462 = vst [vmem:[#allocation42_spill] sm:$0xff] %v3542_v60  ;;  %v3547_v7 = vadd.f32 %v334_v41, %v3514_v49  ;;  %v225_v2 = vpop.f32.mrf.mxu0 }
  0xfc   :  { %4463 = vst [vmem:[#allocation43_spill] sm:$0xff] %v3544_v3  ;;  %v3550_v58 = vadd.f32 %v225_v2, %v3505_v6 }
  0xfd   :  { %4464 = vst [vmem:[#allocation44_spill] sm:$0xff] %v3547_v7  ;;  %v338_v62 = vpop.f32.mrf.mxu1  ;;  %v227_v54 = vpop.f32.mrf.mxu0 }
  0xfe   :  { %4465 = vst [vmem:[#allocation45_spill] sm:$0xff] %v3550_v58  ;;  %v3553_v4 = vadd.f32 %v338_v62, %v3508_v8  ;;  %v3555_v47 = vadd.f32 %v227_v54, %v92_v63 }
  0xff   :  { %v340_v61 = vpop.f32.mrf.mxu1 }
 0x100   :  { %4466 = vst [vmem:[#allocation46_spill] sm:$0xff] %v3553_v4  ;;  %4467 = vst [vmem:[#allocation47_spill] sm:$0xff] %v3555_v47  ;;  %v3558_v60 = vadd.f32 %v340_v61, %v3514_v49 }
 0x101   :  { %v231_v59 = vpop.f32.mrf.mxu0  ;;  %v344_v3 = vpop.f32.mrf.mxu1 }
 0x102   :  { %4468 = vst [vmem:[#allocation48_spill] sm:$0xff] %v3558_v60  ;;  %v3561_v41 = vadd.f32 %v231_v59, %v3505_v6  ;;  %v3564_v7 = vadd.f32 %v344_v3, %v3508_v8 }
 0x103   :  { %v233_v2 = vpop.f32.mrf.mxu0  ;;  %v346_v58 = vpop.f32.mrf.mxu1 }
 0x104   :  { %4469 = vst [vmem:[#allocation49_spill] sm:$0xff] %v3561_v41  ;;  %4470 = vst [vmem:[#allocation50_spill] sm:$0xff] %v3564_v7  ;;  %v3566_v43 = vadd.f32 %v233_v2, %v92_v63  ;;  %v3569_v62 = vadd.f32 %v346_v58, %v3514_v49 }
 0x106   :  { %4471 = vst [vmem:[#allocation51_spill] sm:$0xff] %v3566_v43  ;;  %4472 = vst [vmem:[#allocation52_spill] sm:$0xff] %v3569_v62  ;;  %v237_v54 = vpop.f32.mrf.mxu0  ;;  %v350_v4 = vpop.f32.mrf.mxu1 }
 0x107   :  { %v3572_v61 = vadd.f32 %v237_v54, %v3505_v6  ;;  %v3575_v60 = vadd.f32 %v350_v4, %v3508_v8 }
 0x108   :  { %v239_v59 = vpop.f32.mrf.mxu0  ;;  %v352_v41 = vpop.f32.mrf.mxu1 }
 0x109   :  { %4473 = vst [vmem:[#allocation53_spill] sm:$0xff] %v3572_v61  ;;  %4474 = vst [vmem:[#allocation54_spill] sm:$0xff] %v3575_v60  ;;  %v3577_v47 = vadd.f32 %v239_v59, %v92_v63  ;;  %v3580_v3 = vadd.f32 %v352_v41, %v3514_v49 }
 0x10a   :  { %v243_v2 = vpop.f32.mrf.mxu0 }
 0x10b   :  { %4475 = vst [vmem:[#allocation55_spill] sm:$0xff] %v3577_v47  ;;  %4476 = vst [vmem:[#allocation56_spill] sm:$0xff] %v3580_v3  ;;  %v3583_v7 = vadd.f32 %v243_v2, %v3505_v6  ;;  %v356_v58 = vpop.f32.mrf.mxu1  ;;  %v204_v3 = vadd.f32 %v3497_v0, %v92_v63 }
 0x10c   :  { %v3586_v62 = vadd.f32 %v356_v58, %v3508_v8  ;;  %v245_v54 = vpop.f32.mrf.mxu0 }
 0x10d   :  { %4477 = vst [vmem:[#allocation57_spill] sm:$0xff] %v3583_v7  ;;  %v3588_v61 = vadd.f32 %v245_v54, %v92_v63  ;;  %v358_v4 = vpop.f32.mrf.mxu1  ;;  %v202_v7 = vadd.f32 %v3491_v56, %v3505_v6 }
 0x10e   :  { %4478 = vst [vmem:[#allocation58_spill] sm:$0xff] %v3586_v62  ;;  %v3591_v60 = vadd.f32 %v358_v4, %v3514_v49  ;;  %v103_v4 = vsub.s32 4, %v3486_v51  ;;  %v4510_v51 = vld [vmem:[#allocation30_spill] sm:$0xff] }
 0x10f   :  { %4479 = vst [vmem:[#allocation59_spill] sm:$0xff] %v3588_v61  ;;  %v3593_v59 = vpop.f32.mrf.mxu0 }
 0x110   :  { %4480 = vst [vmem:[#allocation60_spill] sm:$0xff] %v3591_v60  ;;  %4481 = vst [vmem:[#allocation61_spill] sm:$0xff] %v3593_v59  ;;  %v596_v47 = vpop.f32.mrf.mxu1  ;;  %v3610_v0 = vrot.slane %v3488_v5, %v103_v4  ;;  %v317_v5 = vadd.f32 %v3500_v27, %v3514_v49 }
 0x111   :  { %v3595_v41 = vpop.f32.mrf.mxu0  ;;  %v672_v54 = vadd.f32 %v596_v47, %v202_v7 }
 0x112   :  { %4482 = vst [vmem:[#allocation62_spill] sm:$0xff] %v3595_v41  ;;  %v598_v2 = vpop.f32.mrf.mxu1  ;;  %4487 = vst [vmem:[#allocation67_spill] sm:$0xff] %v3610_v0  ;;  %v4511_v41 = vld [vmem:[#allocation20_spill] sm:$0xff] }
 0x113   :  { %v3600_v58 = vpop.f32.mrf.mxu0  ;;  %v673_v62 = vadd.f32 %v598_v2, %v204_v3  ;;  %v2486_v43 = vmul.f32 -1.442695, %v672_v54 }
 0x114   :  { %4483 = vst [vmem:[#allocation63_spill] sm:$0xff] %v3600_v58  ;;  %v4508_v58 = vld [vmem:[#allocation29_spill] sm:$0xff] }
 0x115   :  { %v3602_v61 = vpop.f32.mrf.mxu0  ;;  %v2487_v59 = vmul.f32 -1.442695, %v673_v62  ;;  %v315_v62 = vadd.f32 %v3494_v1, %v3508_v8 }
 0x116   :  { %4484 = vst [vmem:[#allocation64_spill] sm:$0xff] %v3602_v61  ;;  %v4509_v61 = vld [vmem:[#allocation18_spill] sm:$0xff] }
 0x117   :  { %v3605_v60 = vpop.f32.mrf.mxu0  ;;  %2742 = vpow2.f32 %v2487_v59 }
 0x118   :  { %4485 = vst [vmem:[#allocation65_spill] sm:$0xff] %v3605_v60  ;;  %2744 = vpow2.f32 %v2486_v43 }
 0x119   :  { %v3607_v37 = vpop.f32.mrf.mxu0 }
 0x11a   :  { %4486 = vst [vmem:[#allocation66_spill] sm:$0xff] %v3607_v37 }
 0x11b   :  { %v2612_v63 = vpop.f32.mrf.mxu0 }
 0x11c   :  { %v3613_v56 = vadd.f32 %v2612_v63, %v3610_v0  ;;  %v4512_v0 = vmov 0.0  }
 0x11d   :  { %v3615_v2 = vpop.f32.mrf.mxu0 }
 0x11e   :  { %4488 = vst [vmem:[#allocation68_spill] sm:$0xff] %v3613_v56  ;;  %4489 = vst [vmem:[#allocation69_spill] sm:$0xff] %v3615_v2 }
 0x124   :  { %v2743_v47 = vpop.eup %2742 }
 0x125   :  { %v2745_v6 = vpop.eup %2744  ;;  %v685_v7 = vadd.f32 1.0, %v2743_v47 }
 0x126   :  { %v679_v3 = vadd.f32 1.0, %v2745_v6 }
 0x127   :  { %2746 = vrcp.f32 %v685_v7 }
 0x128   :  { %2748 = vrcp.f32 %v679_v3  ;;  %v4493_v3 = vld [vmem:[#allocation10_spill] sm:$0xff] }
 0x12f   :  { %v667_v54 = vpop.f32.mrf.mxu0 }
 0x130   :  { %v674_v4 = vadd.f32 %v667_v54, %v315_v62  ;;  %v4495_v62 = vld [vmem:[#allocation11_spill] sm:$0xff] }
 0x131   :  { %v669_v59 = vpop.f32.mrf.mxu0  ;;  %v4496_v54 = vld [vmem:[#allocation23_spill] sm:$0xff] }
 0x132   :  { %2750 = vtanh.f32 %v674_v4  ;;  %v675_v63 = vadd.f32 %v669_v59, %v317_v5  ;;  %v4497_v5 = vld [vmem:[#allocation12_spill] sm:$0xff]  ;;  %v4499_v59 = vld [vmem:[#allocation13_spill] sm:$0xff] }
 0x133   :  { %v4498_v4 = vld [vmem:[#allocation24_spill] sm:$0xff] }
 0x134   :  { %v2488_v43 = vmul.f32 -1.442695, %v675_v63  ;;  %v2747_v56 = vpop.eup %2746  ;;  %v4500_v63 = vld [vmem:[#allocation25_spill] sm:$0xff] }
 0x135   :  { %v2749_v47 = vpop.eup %2748  ;;  %v695_v60 = vmul.f32 0.0, %v2747_v56  ;;  %v4492_v56 = vld [vmem:[#allocation21_spill] sm:$0xff] }
 0x136   :  { %2752 = vpow2.f32 %v2488_v43  ;;  %v4501_v43 = vld [vmem:[#allocation14_spill] sm:$0xff] }
 0x13f   :  { %v2751_v6 = vpop.eup %2750 }
 0x140   :  { %v696_v2 = vmul.f32 %v2751_v6, %v2749_v47  ;;  %v4502_v47 = vld [vmem:[#allocation26_spill] sm:$0xff]  ;;  %v4503_v6 = vld [vmem:[#allocation15_spill] sm:$0xff] }
 0x142   :  { %v3621_v37 = vadd.f32 %v696_v2, %v695_v60  ;;  %v4491_v60 = vld [vmem:[#allocation9_spill] sm:$0xff]  ;;  %v4494_v2 = vld [vmem:[#allocation22_spill] sm:$0xff] }
 0x143   :  { %v2753_v1 = vpop.eup %2752 }
 0x144   :  { %v692_v8 = vadd.f32 1.0, %v2753_v1  ;;  %2754 = vtanh.f32 %v3621_v37  ;;  %v4504_v1 = vld [vmem:[#allocation27_spill] sm:$0xff] }
 0x146   :  { %2756 = vrcp.f32 %v692_v8  ;;  %v4505_v8 = vld [vmem:[#allocation16_spill] sm:$0xff] }
 0x151   :  { %v2755_v49 = vpop.eup %2754 }
 0x153   :  { %v2757_v27 = vpop.eup %2756 }
 0x154   :  { %v3624_v7 = vmul.f32 %v2757_v27, %v2755_v49  ;;  %v4506_v49 = vld [vmem:[#allocation28_spill] sm:$0xff]  ;;  %v4507_v27 = vld [vmem:[#allocation17_spill] sm:$0xff] }
 0x156   :  { %4490 = vst [vmem:[#allocation70_spill] sm:$0xff] %v3624_v7  ;;  %765 = vmatmul.mubr.f32.vlgmr.msra.gmra.mxu1 %v3624_v7  ;;  %836 = vmatmul.mubr.f32.vlgmr.msra.gmra.mxu0 %v3624_v7  ;;  %v4513_v7 = vld [vmem:[#allocation31_spill] sm:$0xff] }
 0x157   :  { %871 = vmatpush1.msra.mxu1 %v3117_v28  ;;  %942 = vmatpush1.msra.mxu0 %v3306_v9 }
 0x158   :  { %872 = vmatprep.subr.mxu1 %v3123_v29  ;;  %943 = vmatprep.subr.mxu0 %v3310_v10 }
 0x159   :  { %873 = vmatpush1.msra.mxu1 %v3126_v30  ;;  %944 = vmatpush1.msra.mxu0 %v3315_v11 }
 0x15a   :  { %874 = vmatprep.subr.mxu1 %v3136_v32  ;;  %945 = vmatprep.subr.mxu0 %v3319_v12 }
 0x15b   :  { %875 = vmatpush1.msra.mxu1 %v3143_v34  ;;  %946 = vmatpush1.msra.mxu0 %v3322_v13 }
 0x15c   :  { %876 = vmatprep.subr.mxu1 %v3149_v35  ;;  %947 = vmatprep.subr.mxu0 %v3327_v14 }
 0x15d   :  { %877 = vmatpush1.msra.mxu1 %v3152_v36  ;;  %948 = vmatpush1.msra.mxu0 %v3331_v15 }
 0x15e   :  { %878 = vmatprep.subr.mxu1 %v3163_v38  ;;  %949 = vmatprep.subr.mxu0 %v3336_v16 }
 0x15f   :  { %879 = vmatpush1.msra.mxu1 %v3166_v39  ;;  %950 = vmatpush1.msra.mxu0 %v3341_v17 }
 0x160   :  { %880 = vmatprep.subr.mxu1 %v3172_v40  ;;  %951 = vmatprep.subr.mxu0 %v3345_v18 }
 0x161   :  { %881 = vmatpush1.msra.mxu1 %v3179_v42  ;;  %952 = vmatpush1.msra.mxu0 %v3349_v19 }
 0x162   :  { %882 = vmatprep.subr.mxu1 %v3189_v44  ;;  %953 = vmatprep.subr.mxu0 %v3354_v20 }
 0x163   :  { %883 = vmatpush1.msra.mxu1 %v3194_v45  ;;  %954 = vmatpush1.msra.mxu0 %v3359_v21 }
 0x164   :  { %884 = vmatprep.subr.mxu1 %v3198_v46  ;;  %955 = vmatprep.subr.mxu0 %v3363_v22 }
 0x165   :  { %885 = vmatpush1.msra.mxu1 %v3207_v48  ;;  %956 = vmatpush1.msra.mxu0 %v3367_v23 }
 0x166   :  { %886 = vmatprep.subr.mxu1 %v3214_v50  ;;  %957 = vmatprep.subr.mxu0 %v3371_v24 }
 0x167   :  { %887 = vmatpush1.msra.mxu1 %v4491_v60  ;;  %958 = vmatpush1.msra.mxu0 %v3375_v25 }
 0x168   :  { %888 = vmatprep.subr.mxu1 %v3222_v52  ;;  %959 = vmatprep.subr.mxu0 %v3379_v26 }
 0x169   :  { %889 = vmatpush1.msra.mxu1 %v3227_v53  ;;  %960 = vmatpush1.msra.mxu0 %v3383_v31 }
 0x16a   :  { %890 = vmatprep.subr.mxu1 %v3237_v55  ;;  %961 = vmatprep.subr.mxu0 %v3387_v33 }
 0x16b   :  { %891 = vmatpush1.msra.mxu1 %v3244_v57  ;;  %962 = vmatpush1.msra.mxu0 %v4492_v56 }
 0x16c   :  { %892 = vmatprep.subr.mxu1 %v4493_v3  ;;  %963 = vmatprep.subr.mxu0 %v4494_v2 }
 0x16d   :  { %893 = vmatpush1.msra.mxu1 %v4495_v62  ;;  %964 = vmatpush1.msra.mxu0 %v4496_v54 }
 0x16e   :  { %894 = vmatprep.subr.mxu1 %v4497_v5  ;;  %965 = vmatprep.subr.mxu0 %v4498_v4  ;;  %v4519_v4 = vld [vmem:[#allocation34_spill] sm:$0xff] }
 0x16f   :  { %895 = vmatpush1.msra.mxu1 %v4499_v59  ;;  %966 = vmatpush1.msra.mxu0 %v4500_v63  ;;  %v4518_v59 = vld [vmem:[#allocation36_spill] sm:$0xff] }
 0x170   :  { %896 = vmatprep.subr.mxu1 %v4501_v43  ;;  %967 = vmatprep.subr.mxu0 %v4502_v47 }
 0x171   :  { %897 = vmatpush1.msra.mxu1 %v4503_v6  ;;  %968 = vmatpush1.msra.mxu0 %v4504_v1  ;;  %v4514_v1 = vld [vmem:[#allocation8_spill] sm:$0xff] }
 0x172   :  { %898 = vmatprep.subr.mxu1 %v4505_v8  ;;  %969 = vmatprep.subr.mxu0 %v4506_v49  ;;  %v4515_v8 = vld [vmem:[#allocation19_spill] sm:$0xff] }
 0x173   :  { %899 = vmatpush1.msra.mxu1 %v4507_v27  ;;  %970 = vmatpush1.msra.mxu0 %v4508_v58  ;;  %v4516_v27 = vld [vmem:[#allocation33_spill] sm:$0xff] }
 0x174   :  { %900 = vmatprep.subr.mxu1 %v4509_v61  ;;  %971 = vmatprep.subr.mxu0 %v4510_v51  ;;  %v4517_v61 = vld [vmem:[#allocation35_spill] sm:$0xff] }
 0x175   :  { %901 = vmatpush1.msra.mxu1 %v4511_v41  ;;  %934 = vmatprep.mubr.f32.mxu1 %v4512_v0 }
 0x176   :  { %972 = vmatpush1.msra.mxu0 %v4513_v7  ;;  %1005 = vmatprep.mubr.f32.mxu0 %v4512_v0 }
 0x177   :  { %1040 = vmatprep.subr.mxu1 %v4514_v1  ;;  %1111 = vmatprep.subr.mxu0 %v4515_v8 }
 0x216   :  { %v766_v49 = vpop.f32.mrf.mxu1  ;;  %v837_v51 = vpop.f32.mrf.mxu0 }
 0x217   :  { %v842_v6 = vadd.f32 %v766_v49, %v4516_v27  ;;  %v844_v0 = vadd.f32 %v837_v51, %v4519_v4 }
 0x218   :  { %v768_v58 = vpop.f32.mrf.mxu1  ;;  %v839_v63 = vpop.f32.mrf.mxu0 }
 0x219   :  { %v2489_v47 = vmul.f32 -1.442695, %v842_v6  ;;  %v843_v43 = vadd.f32 %v768_v58, %v4517_v61  ;;  %v845_v7 = vadd.f32 %v839_v63, %v4518_v59 }
 0x21b   :  { %2758 = vpow2.f32 %v2489_v47  ;;  %v2490_v41 = vmul.f32 -1.442695, %v843_v43  ;;  %v2491_v5 = vmul.f32 -1.442695, %v845_v7 }
 0x21d   :  { %2760 = vpow2.f32 %v2490_v41 }
 0x21e   :  { %2762 = vtanh.f32 %v844_v0 }
 0x21f   :  { %2764 = vpow2.f32 %v2491_v5  ;;  %v4542_v5 = vld [vmem:[#allocation39_spill] sm:$0xff] }
 0x228   :  { %v2759_v1 = vpop.eup %2758 }
 0x229   :  { %v849_v54 = vadd.f32 1.0, %v2759_v1 }
 0x22a   :  { %v2761_v8 = vpop.eup %2760 }
 0x22b   :  { %2766 = vrcp.f32 %v849_v54  ;;  %v855_v49 = vadd.f32 1.0, %v2761_v8  ;;  %v2763_v6 = vpop.eup %2762 }
 0x22c   :  { %v2765_v61 = vpop.eup %2764 }
 0x22d   :  { %2768 = vrcp.f32 %v855_v49  ;;  %v862_v41 = vadd.f32 1.0, %v2765_v61  ;;  %v4543_v49 = vld [vmem:[#allocation40_spill] sm:$0xff]  ;;  %v4544_v61 = vld [vmem:[#allocation38_spill] sm:$0xff] }
 0x22f   :  { %2770 = vrcp.f32 %v862_v41 }
 0x238   :  { %v2767_v58 = vpop.eup %2766 }
 0x239   :  { %v866_v47 = vmul.f32 %v2767_v58, %v2763_v6 }
 0x23a   :  { %v2769_v43 = vpop.eup %2768 }
 0x23b   :  { %v865_v27 = vmul.f32 %v2769_v43, %v3621_v37 }
 0x23c   :  { %v2771_v51 = vpop.eup %2770 }
 0x23d   :  { %v3699_v59 = vadd.f32 %v866_v47, %v865_v27 }
 0x23f   :  { %2772 = vtanh.f32 %v3699_v59 }
 0x24c   :  { %v2773_v0 = vpop.eup %2772 }
 0x24d   :  { %v3702_v7 = vmul.f32 %v2773_v0, %v2771_v51 }
 0x24f   :  { %4520 = vst [vmem:[#allocation9_spill] sm:$0xff] %v3702_v7  ;;  %935 = vmatmul.mubr.f32.vlgmr.msra.gmra.mxu1 %v3702_v7  ;;  %1006 = vmatmul.mubr.f32.vlgmr.msra.gmra.mxu0 %v3702_v7  ;;  %v4041_v7 = vld [vmem:[#allocation2 + $0x58] sm:$0xff] }
 0x250   :  { %1041 = vmatpush1.msra.mxu1 %v3117_v28  ;;  %1112 = vmatpush1.msra.mxu0 %v3306_v9  ;;  %v4521_v28 = vld [vmem:[#allocation23_spill] sm:$0xff] }
 0x251   :  { %1042 = vmatprep.subr.mxu1 %v3123_v29  ;;  %1113 = vmatprep.subr.mxu0 %v3310_v10  ;;  %v4522_v29 = vld [vmem:[#allocation12_spill] sm:$0xff] }
 0x252   :  { %1043 = vmatpush1.msra.mxu1 %v3126_v30  ;;  %1114 = vmatpush1.msra.mxu0 %v3315_v11  ;;  %v4523_v30 = vld [vmem:[#allocation24_spill] sm:$0xff] }
 0x253   :  { %1044 = vmatprep.subr.mxu1 %v3136_v32  ;;  %1115 = vmatprep.subr.mxu0 %v3319_v12  ;;  %v4524_v32 = vld [vmem:[#allocation13_spill] sm:$0xff] }
 0x254   :  { %1045 = vmatpush1.msra.mxu1 %v3143_v34  ;;  %1116 = vmatpush1.msra.mxu0 %v3322_v13  ;;  %v4525_v34 = vld [vmem:[#allocation25_spill] sm:$0xff] }
 0x255   :  { %1046 = vmatprep.subr.mxu1 %v3149_v35  ;;  %1117 = vmatprep.subr.mxu0 %v3327_v14  ;;  %v4526_v35 = vld [vmem:[#allocation14_spill] sm:$0xff] }
 0x256   :  { %1047 = vmatpush1.msra.mxu1 %v3152_v36  ;;  %1118 = vmatpush1.msra.mxu0 %v3331_v15  ;;  %v4527_v36 = vld [vmem:[#allocation26_spill] sm:$0xff] }
 0x257   :  { %1048 = vmatprep.subr.mxu1 %v3163_v38  ;;  %1119 = vmatprep.subr.mxu0 %v3336_v16  ;;  %v4528_v38 = vld [vmem:[#allocation15_spill] sm:$0xff] }
 0x258   :  { %1049 = vmatpush1.msra.mxu1 %v3166_v39  ;;  %1120 = vmatpush1.msra.mxu0 %v3341_v17  ;;  %v4529_v39 = vld [vmem:[#allocation27_spill] sm:$0xff] }
 0x259   :  { %1050 = vmatprep.subr.mxu1 %v3172_v40  ;;  %1121 = vmatprep.subr.mxu0 %v3345_v18  ;;  %v4530_v40 = vld [vmem:[#allocation16_spill] sm:$0xff] }
 0x25a   :  { %1051 = vmatpush1.msra.mxu1 %v3179_v42  ;;  %1122 = vmatpush1.msra.mxu0 %v3349_v19  ;;  %v4531_v42 = vld [vmem:[#allocation28_spill] sm:$0xff]  ;;  %4566 = vst [vmem:[#allocation16_spill] sm:$0xff] %v4041_v7 }
 0x25b   :  { %1052 = vmatprep.subr.mxu1 %v3189_v44  ;;  %1123 = vmatprep.subr.mxu0 %v3354_v20  ;;  %v4532_v44 = vld [vmem:[#allocation17_spill] sm:$0xff] }
 0x25c   :  { %1053 = vmatpush1.msra.mxu1 %v3194_v45  ;;  %1124 = vmatpush1.msra.mxu0 %v3359_v21  ;;  %v4533_v45 = vld [vmem:[#allocation29_spill] sm:$0xff] }
 0x25d   :  { %1054 = vmatprep.subr.mxu1 %v3198_v46  ;;  %1125 = vmatprep.subr.mxu0 %v3363_v22  ;;  %v4534_v46 = vld [vmem:[#allocation18_spill] sm:$0xff] }
 0x25e   :  { %1055 = vmatpush1.msra.mxu1 %v3207_v48  ;;  %1126 = vmatpush1.msra.mxu0 %v3367_v23  ;;  %v4535_v48 = vld [vmem:[#allocation30_spill] sm:$0xff] }
 0x25f   :  { %1056 = vmatprep.subr.mxu1 %v3214_v50  ;;  %1127 = vmatprep.subr.mxu0 %v3371_v24  ;;  %v4536_v50 = vld [vmem:[#allocation20_spill] sm:$0xff] }
 0x260   :  { %1057 = vmatpush1.msra.mxu1 %v4491_v60  ;;  %1128 = vmatpush1.msra.mxu0 %v3375_v25  ;;  %v4541_v60 = vld [vmem:[#allocation37_spill] sm:$0xff] }
 0x261   :  { %1058 = vmatprep.subr.mxu1 %v3222_v52  ;;  %1129 = vmatprep.subr.mxu0 %v3379_v26  ;;  %v4537_v52 = vmov 0.0  }
 0x262   :  { %1059 = vmatpush1.msra.mxu1 %v3227_v53  ;;  %1130 = vmatpush1.msra.mxu0 %v3383_v31  ;;  %v4538_v53 = vld [vmem:[#allocation31_spill] sm:$0xff] }
 0x263   :  { %1060 = vmatprep.subr.mxu1 %v3237_v55  ;;  %1131 = vmatprep.subr.mxu0 %v3387_v33  ;;  %v3770_v55 = vld [vmem:[#allocation2 + $0x440] sm:$0xff] }
 0x264   :  { %1061 = vmatpush1.msra.mxu1 %v3244_v57  ;;  %1132 = vmatpush1.msra.mxu0 %v4492_v56  ;;  %4539 = vst [vmem:[#allocation21_spill] sm:$0xff] %v3770_v55  ;;  %v4540_v57 = vld [vmem:[#allocation19_spill] sm:$0xff] }
 0x265   :  { %1062 = vmatprep.subr.mxu1 %v4493_v3  ;;  %1133 = vmatprep.subr.mxu0 %v4494_v2 }
 0x266   :  { %1063 = vmatpush1.msra.mxu1 %v4495_v62  ;;  %1134 = vmatpush1.msra.mxu0 %v4521_v28 }
 0x267   :  { %1064 = vmatprep.subr.mxu1 %v4522_v29  ;;  %1135 = vmatprep.subr.mxu0 %v4523_v30 }
 0x268   :  { %1065 = vmatpush1.msra.mxu1 %v4524_v32  ;;  %1136 = vmatpush1.msra.mxu0 %v4525_v34 }
 0x269   :  { %1066 = vmatprep.subr.mxu1 %v4526_v35  ;;  %1137 = vmatprep.subr.mxu0 %v4527_v36 }
 0x26a   :  { %1067 = vmatpush1.msra.mxu1 %v4528_v38  ;;  %1138 = vmatpush1.msra.mxu0 %v4529_v39 }
 0x26b   :  { %1068 = vmatprep.subr.mxu1 %v4530_v40  ;;  %1139 = vmatprep.subr.mxu0 %v4531_v42 }
 0x26c   :  { %1069 = vmatpush1.msra.mxu1 %v4532_v44  ;;  %1140 = vmatpush1.msra.mxu0 %v4533_v45 }
 0x26d   :  { %1070 = vmatprep.subr.mxu1 %v4534_v46  ;;  %1141 = vmatprep.subr.mxu0 %v4535_v48 }
 0x26e   :  { %1071 = vmatpush1.msra.mxu1 %v4536_v50  ;;  %1104 = vmatprep.mubr.f32.mxu1 %v4537_v52 }
 0x26f   :  { %1142 = vmatpush1.msra.mxu0 %v4538_v53  ;;  %1175 = vmatprep.mubr.f32.mxu0 %v4537_v52 }
 0x270   :  { %1210 = vmatprep.subr.mxu1 %v3770_v55  ;;  %1281 = vmatprep.subr.mxu0 %v4540_v57 }
 0x30f   :  { %v936_v37 = vpop.f32.mrf.mxu1  ;;  %v1007_v63 = vpop.f32.mrf.mxu0 }
 0x310   :  { %v1012_v3 = vadd.f32 %v936_v37, %v4541_v60  ;;  %v1014_v58 = vadd.f32 %v1007_v63, %v4544_v61  ;;  %v3786_v60 = vld [vmem:[#allocation2 + $0x438] sm:$0xff]  ;;  %v4556_v63 = vld [vmem:[#allocation43_spill] sm:$0xff] }
 0x311   :  { %v938_v62 = vpop.f32.mrf.mxu1  ;;  %v1009_v1 = vpop.f32.mrf.mxu0 }
 0x312   :  { %v2492_v54 = vmul.f32 -1.442695, %v1012_v3  ;;  %v1013_v4 = vadd.f32 %v938_v62, %v4542_v5  ;;  %v1015_v6 = vadd.f32 %v1009_v1, %v4543_v49  ;;  %v3794_v3 = vld [vmem:[#allocation2 + $0x3f0] sm:$0xff] }
 0x313   :  { %v3798_v62 = vld [vmem:[#allocation2 + $0x3b0] sm:$0xff] }
 0x314   :  { %2774 = vpow2.f32 %v2492_v54  ;;  %v2493_v8 = vmul.f32 -1.442695, %v1013_v4  ;;  %v2494_v47 = vmul.f32 -1.442695, %v1015_v6  ;;  %v3802_v54 = vld [vmem:[#allocation2 + $0x3a8] sm:$0xff] }
 0x315   :  { %v4557_v6 = vld [vmem:[#allocation44_spill] sm:$0xff] }
 0x316   :  { %2776 = vpow2.f32 %v2493_v8 }
 0x317   :  { %2778 = vtanh.f32 %v1014_v58  ;;  %v4558_v58 = vld [vmem:[#allocation42_spill] sm:$0xff] }
 0x318   :  { %2780 = vpow2.f32 %v2494_v47 }
 0x321   :  { %v2775_v43 = vpop.eup %2774 }
 0x322   :  { %v1019_v41 = vadd.f32 1.0, %v2775_v43 }
 0x323   :  { %v2777_v27 = vpop.eup %2776 }
 0x324   :  { %2782 = vrcp.f32 %v1019_v41  ;;  %v1025_v51 = vadd.f32 1.0, %v2777_v27  ;;  %v2779_v0 = vpop.eup %2778 }
 0x325   :  { %v2781_v29 = vpop.eup %2780 }
 0x326   :  { %2784 = vrcp.f32 %v1025_v51  ;;  %v1032_v40 = vadd.f32 1.0, %v2781_v29 }
 0x328   :  { %2786 = vrcp.f32 %v1032_v40 }
 0x331   :  { %v2783_v32 = vpop.eup %2782 }
 0x332   :  { %v1036_v35 = vmul.f32 %v2783_v32, %v2779_v0 }
 0x333   :  { %v2785_v38 = vpop.eup %2784 }
 0x334   :  { %v1035_v44 = vmul.f32 %v2785_v38, %v3699_v59  ;;  %v3790_v59 = vld [vmem:[#allocation2 + $0x3f8] sm:$0xff] }
 0x335   :  { %v2787_v50 = vpop.eup %2786 }
 0x336   :  { %v3779_v46 = vadd.f32 %v1036_v35, %v1035_v44 }
 0x338   :  { %2788 = vtanh.f32 %v3779_v46 }
 0x345   :  { %v2789_v57 = vpop.eup %2788 }
 0x346   :  { %v3782_v37 = vmul.f32 %v2789_v57, %v2787_v50 }
 0x348   :  { %4545 = vst [vmem:[#allocation10_spill] sm:$0xff] %v3782_v37  ;;  %1105 = vmatmul.mubr.f32.vlgmr.msra.gmra.mxu1 %v3782_v37  ;;  %1176 = vmatmul.mubr.f32.vlgmr.msra.gmra.mxu0 %v3782_v37  ;;  %v4037_v37 = vld [vmem:[#allocation2 + $0x60] sm:$0xff] }
 0x349   :  { %1211 = vmatpush1.msra.mxu1 %v3786_v60  ;;  %1282 = vmatpush1.msra.mxu0 %v3306_v9  ;;  %v3806_v9 = vld [vmem:[#allocation2 + $0x368] sm:$0xff]  ;;  %4565 = vst [vmem:[#allocation27_spill] sm:$0xff] %v4037_v37 }
 0x34a   :  { %1212 = vmatprep.subr.mxu1 %v3790_v59  ;;  %1283 = vmatprep.subr.mxu0 %v3310_v10  ;;  %v3810_v10 = vld [vmem:[#allocation2 + $0x360] sm:$0xff] }
 0x34b   :  { %1213 = vmatpush1.msra.mxu1 %v3794_v3  ;;  %1284 = vmatpush1.msra.mxu0 %v3315_v11  ;;  %v3814_v11 = vld [vmem:[#allocation2 + $0x320] sm:$0xff] }
 0x34c   :  { %1214 = vmatprep.subr.mxu1 %v3798_v62  ;;  %1285 = vmatprep.subr.mxu0 %v3319_v12  ;;  %v3818_v12 = vld [vmem:[#allocation2 + $0x318] sm:$0xff] }
 0x34d   :  { %1215 = vmatpush1.msra.mxu1 %v3802_v54  ;;  %1286 = vmatpush1.msra.mxu0 %v3322_v13  ;;  %v3822_v13 = vld [vmem:[#allocation2 + $0x2d8] sm:$0xff] }
 0x34e   :  { %1216 = vmatprep.subr.mxu1 %v3806_v9  ;;  %1287 = vmatprep.subr.mxu0 %v3327_v14  ;;  %v3826_v14 = vld [vmem:[#allocation2 + $0x2d0] sm:$0xff] }
 0x34f   :  { %1217 = vmatpush1.msra.mxu1 %v3810_v10  ;;  %1288 = vmatpush1.msra.mxu0 %v3331_v15  ;;  %v3830_v15 = vld [vmem:[#allocation2 + $0x290] sm:$0xff] }
 0x350   :  { %1218 = vmatprep.subr.mxu1 %v3814_v11  ;;  %1289 = vmatprep.subr.mxu0 %v3336_v16  ;;  %v3834_v16 = vld [vmem:[#allocation2 + $0x288] sm:$0xff] }
 0x351   :  { %1219 = vmatpush1.msra.mxu1 %v3818_v12  ;;  %1290 = vmatpush1.msra.mxu0 %v3341_v17  ;;  %v3838_v17 = vld [vmem:[#allocation2 + $0x248] sm:$0xff] }
 0x352   :  { %1220 = vmatprep.subr.mxu1 %v3822_v13  ;;  %1291 = vmatprep.subr.mxu0 %v3345_v18  ;;  %v3842_v18 = vld [vmem:[#allocation2 + $0x240] sm:$0xff] }
 0x353   :  { %1221 = vmatpush1.msra.mxu1 %v3826_v14  ;;  %1292 = vmatpush1.msra.mxu0 %v3349_v19  ;;  %v3846_v19 = vld [vmem:[#allocation2 + $0x200] sm:$0xff] }
 0x354   :  { %1222 = vmatprep.subr.mxu1 %v3830_v15  ;;  %1293 = vmatprep.subr.mxu0 %v3354_v20  ;;  %v3850_v20 = vld [vmem:[#allocation2 + $0x1f8] sm:$0xff] }
 0x355   :  { %1223 = vmatpush1.msra.mxu1 %v3834_v16  ;;  %1294 = vmatpush1.msra.mxu0 %v3359_v21  ;;  %v3854_v21 = vld [vmem:[#allocation2 + $0x1b8] sm:$0xff] }
 0x356   :  { %1224 = vmatprep.subr.mxu1 %v3838_v17  ;;  %1295 = vmatprep.subr.mxu0 %v3363_v22  ;;  %v3858_v22 = vld [vmem:[#allocation2 + $0x1b0] sm:$0xff] }
 0x357   :  { %1225 = vmatpush1.msra.mxu1 %v3842_v18  ;;  %1296 = vmatpush1.msra.mxu0 %v3367_v23  ;;  %v3862_v23 = vld [vmem:[#allocation2 + $0x170] sm:$0xff] }
 0x358   :  { %1226 = vmatprep.subr.mxu1 %v3846_v19  ;;  %1297 = vmatprep.subr.mxu0 %v3371_v24  ;;  %v3866_v24 = vld [vmem:[#allocation2 + $0x168] sm:$0xff] }
 0x359   :  { %1227 = vmatpush1.msra.mxu1 %v3850_v20  ;;  %1298 = vmatpush1.msra.mxu0 %v3375_v25  ;;  %v3870_v25 = vld [vmem:[#allocation2 + $0x128] sm:$0xff] }
 0x35a   :  { %1228 = vmatprep.subr.mxu1 %v3854_v21  ;;  %1299 = vmatprep.subr.mxu0 %v3379_v26  ;;  %v3874_v26 = vld [vmem:[#allocation2 + $0x120] sm:$0xff] }
 0x35b   :  { %1229 = vmatpush1.msra.mxu1 %v3858_v22  ;;  %1300 = vmatpush1.msra.mxu0 %v3383_v31  ;;  %v3878_v31 = vld [vmem:[#allocation2 + $0xe0] sm:$0xff] }
 0x35c   :  { %1230 = vmatprep.subr.mxu1 %v3862_v23  ;;  %1301 = vmatprep.subr.mxu0 %v3387_v33  ;;  %4546 = vst [vmem:[#allocation22_spill] sm:$0xff] %v3878_v31  ;;  %v3882_v33 = vld [vmem:[#allocation2 + $0xd8] sm:$0xff] }
 0x35d   :  { %1231 = vmatpush1.msra.mxu1 %v3866_v24  ;;  %1302 = vmatpush1.msra.mxu0 %v4492_v56  ;;  %4547 = vst [vmem:[#allocation11_spill] sm:$0xff] %v3882_v33  ;;  %v3886_v56 = vld [vmem:[#allocation2 + $0x98] sm:$0xff] }
 0x35e   :  { %1232 = vmatprep.subr.mxu1 %v3870_v25  ;;  %1303 = vmatprep.subr.mxu0 %v4494_v2  ;;  %4548 = vst [vmem:[#allocation8_spill] sm:$0xff] %v3886_v56  ;;  %v3890_v2 = vld [vmem:[#allocation2 + $0x90] sm:$0xff] }
 0x35f   :  { %1233 = vmatpush1.msra.mxu1 %v3874_v26  ;;  %1304 = vmatpush1.msra.mxu0 %v4521_v28  ;;  %4549 = vst [vmem:[#allocation33_spill] sm:$0xff] %v3890_v2  ;;  %v3894_v28 = vld [vmem:[#allocation2 + $0x50] sm:$0xff] }
 0x360   :  { %1234 = vmatprep.subr.mxu1 %v3878_v31  ;;  %1305 = vmatprep.subr.mxu0 %v4523_v30  ;;  %4550 = vst [vmem:[#allocation35_spill] sm:$0xff] %v3894_v28  ;;  %v3898_v30 = vld [vmem:[#allocation2 + $0x48] sm:$0xff] }
 0x361   :  { %1235 = vmatpush1.msra.mxu1 %v3882_v33  ;;  %1306 = vmatpush1.msra.mxu0 %v4525_v34  ;;  %4551 = vst [vmem:[#allocation36_spill] sm:$0xff] %v3898_v30  ;;  %v3902_v34 = vld [vmem:[#allocation2 + $0x8] sm:$0xff] }
 0x362   :  { %1236 = vmatprep.subr.mxu1 %v3886_v56  ;;  %1307 = vmatprep.subr.mxu0 %v4527_v36  ;;  %4552 = vst [vmem:[#allocation34_spill] sm:$0xff] %v3902_v34  ;;  %v3906_v36 = vld [vmem:[#allocation2] sm:$0xff] }
 0x363   :  { %1237 = vmatpush1.msra.mxu1 %v3890_v2  ;;  %1308 = vmatpush1.msra.mxu0 %v4529_v39  ;;  %4553 = vst [vmem:[#allocation23_spill] sm:$0xff] %v3906_v36  ;;  %v3913_v39 = vld [vmem:[#allocation2 + $0x450] sm:$0xff] }
 0x364   :  { %1238 = vmatprep.subr.mxu1 %v3894_v28  ;;  %1309 = vmatprep.subr.mxu0 %v4531_v42  ;;  %4554 = vst [vmem:[#allocation12_spill] sm:$0xff] %v3913_v39 }
 0x365   :  { %1239 = vmatpush1.msra.mxu1 %v3898_v30  ;;  %1310 = vmatpush1.msra.mxu0 %v4533_v45  ;;  %v4555_v45 = vld [vmem:[#allocation41_spill] sm:$0xff] }
 0x366   :  { %1240 = vmatprep.subr.mxu1 %v3902_v34  ;;  %1311 = vmatprep.subr.mxu0 %v4535_v48 }
 0x367   :  { %1241 = vmatpush1.msra.mxu1 %v3906_v36  ;;  %1274 = vmatprep.mubr.f32.mxu1 %v4537_v52 }
 0x368   :  { %1312 = vmatpush1.msra.mxu0 %v4538_v53  ;;  %1345 = vmatprep.mubr.f32.mxu0 %v4537_v52 }
 0x369   :  { %1380 = vmatprep.subr.mxu1 %v3770_v55  ;;  %1451 = vmatprep.subr.mxu0 %v3913_v39 }
 0x408   :  { %v1106_v42 = vpop.f32.mrf.mxu1  ;;  %v1177_v1 = vpop.f32.mrf.mxu0 }
 0x409   :  { %v1182_v5 = vadd.f32 %v1106_v42, %v4555_v45  ;;  %v1184_v47 = vadd.f32 %v1177_v1, %v4558_v58  ;;  %v3949_v1 = vld [vmem:[#allocation2 + $0x378] sm:$0xff]  ;;  %v3969_v58 = vld [vmem:[#allocation2 + $0x2e0] sm:$0xff] }
 0x40a   :  { %v1108_v48 = vpop.f32.mrf.mxu1  ;;  %v1179_v53 = vpop.f32.mrf.mxu0 }
 0x40b   :  { %v2495_v4 = vmul.f32 -1.442695, %v1182_v5  ;;  %v1183_v8 = vadd.f32 %v1108_v48, %v4556_v63  ;;  %v1185_v61 = vadd.f32 %v1179_v53, %v4557_v6  ;;  %v3929_v48 = vld [vmem:[#allocation2 + $0x448] sm:$0xff]  ;;  %v3941_v63 = vld [vmem:[#allocation2 + $0x3c0] sm:$0xff]  ;;  %v3957_v53 = vld [vmem:[#allocation2 + $0x330] sm:$0xff] }
 0x40c   :  { %v3961_v6 = vld [vmem:[#allocation2 + $0x328] sm:$0xff] }
 0x40d   :  { %2790 = vpow2.f32 %v2495_v4  ;;  %v2496_v49 = vmul.f32 -1.442695, %v1183_v8  ;;  %v2497_v43 = vmul.f32 -1.442695, %v1185_v61  ;;  %v3937_v4 = vld [vmem:[#allocation2 + $0x400] sm:$0xff]  ;;  %v3945_v8 = vld [vmem:[#allocation2 + $0x3b8] sm:$0xff] }
 0x40e   :  { %v3965_v61 = vld [vmem:[#allocation2 + $0x2e8] sm:$0xff] }
 0x40f   :  { %2792 = vpow2.f32 %v2496_v49  ;;  %v3953_v49 = vld [vmem:[#allocation2 + $0x370] sm:$0xff] }
 0x410   :  { %2794 = vtanh.f32 %v1184_v47  ;;  %v3973_v47 = vld [vmem:[#allocation2 + $0x2a0] sm:$0xff] }
 0x411   :  { %2796 = vpow2.f32 %v2497_v43  ;;  %v3977_v43 = vld [vmem:[#allocation2 + $0x298] sm:$0xff] }
 0x41a   :  { %v2791_v41 = vpop.eup %2790 }
 0x41b   :  { %v1189_v27 = vadd.f32 1.0, %v2791_v41  ;;  %v3981_v41 = vld [vmem:[#allocation2 + $0x258] sm:$0xff] }
 0x41c   :  { %v2793_v51 = vpop.eup %2792 }
 0x41d   :  { %2798 = vrcp.f32 %v1189_v27  ;;  %v1195_v0 = vadd.f32 1.0, %v2793_v51  ;;  %v2795_v29 = vpop.eup %2794  ;;  %v3985_v27 = vld [vmem:[#allocation2 + $0x250] sm:$0xff] }
 0x41e   :  { %v2797_v32 = vpop.eup %2796  ;;  %v3989_v51 = vld [vmem:[#allocation2 + $0x210] sm:$0xff] }
 0x41f   :  { %2800 = vrcp.f32 %v1195_v0  ;;  %v1202_v44 = vadd.f32 1.0, %v2797_v32  ;;  %v3993_v0 = vld [vmem:[#allocation2 + $0x208] sm:$0xff]  ;;  %v4001_v32 = vld [vmem:[#allocation2 + $0x1c0] sm:$0xff] }
 0x421   :  { %2802 = vrcp.f32 %v1202_v44  ;;  %v4017_v44 = vld [vmem:[#allocation2 + $0x130] sm:$0xff] }
 0x422   :  { %4560 = vst [vmem:[#allocation13_spill] sm:$0xff] %v4017_v44 }
 0x42a   :  { %v2799_v35 = vpop.eup %2798 }
 0x42b   :  { %v1206_v38 = vmul.f32 %v2799_v35, %v2795_v29  ;;  %v3997_v29 = vld [vmem:[#allocation2 + $0x1c8] sm:$0xff]  ;;  %v4005_v35 = vld [vmem:[#allocation2 + $0x180] sm:$0xff] }
 0x42c   :  { %v2801_v40 = vpop.eup %2800 }
 0x42d   :  { %v1205_v50 = vmul.f32 %v2801_v40, %v3779_v46  ;;  %v3933_v46 = vld [vmem:[#allocation2 + $0x408] sm:$0xff]  ;;  %v4013_v40 = vld [vmem:[#allocation2 + $0x138] sm:$0xff] }
 0x42e   :  { %v2803_v42 = vpop.eup %2802 }
 0x42f   :  { %v3921_v57 = vadd.f32 %v1206_v38, %v1205_v50  ;;  %v4009_v38 = vld [vmem:[#allocation2 + $0x178] sm:$0xff]  ;;  %v4021_v50 = vld [vmem:[#allocation2 + $0xf0] sm:$0xff] }
 0x430   :  { %4561 = vst [vmem:[#allocation25_spill] sm:$0xff] %v4021_v50 }
 0x431   :  { %2804 = vtanh.f32 %v3921_v57 }
 0x43e   :  { %v2805_v45 = vpop.eup %2804 }
 0x43f   :  { %v3924_v5 = vmul.f32 %v2805_v45, %v2803_v42  ;;  %v4025_v42 = vld [vmem:[#allocation2 + $0xe8] sm:$0xff] }
 0x440   :  { %4562 = vst [vmem:[#allocation14_spill] sm:$0xff] %v4025_v42  ;;  %v4029_v45 = vld [vmem:[#allocation2 + $0xa8] sm:$0xff] }
 0x441   :  { %4559 = vst [vmem:[#allocation24_spill] sm:$0xff] %v3924_v5  ;;  %1275 = vmatmul.mubr.f32.vlgmr.msra.gmra.mxu1 %v3924_v5  ;;  %1346 = vmatmul.mubr.f32.vlgmr.msra.gmra.mxu0 %v3924_v5  ;;  %4563 = vst [vmem:[#allocation26_spill] sm:$0xff] %v4029_v45  ;;  %v4033_v5 = vld [vmem:[#allocation2 + $0xa0] sm:$0xff] }
 0x442   :  { %1381 = vmatpush1.msra.mxu1 %v3786_v60  ;;  %1452 = vmatpush1.msra.mxu0 %v3929_v48  ;;  %4564 = vst [vmem:[#allocation15_spill] sm:$0xff] %v4033_v5 }
 0x443   :  { %1382 = vmatprep.subr.mxu1 %v3790_v59  ;;  %1453 = vmatprep.subr.mxu0 %v3933_v46 }
 0x444   :  { %1383 = vmatpush1.msra.mxu1 %v3794_v3  ;;  %1454 = vmatpush1.msra.mxu0 %v3937_v4 }
 0x445   :  { %1384 = vmatprep.subr.mxu1 %v3798_v62  ;;  %1455 = vmatprep.subr.mxu0 %v3941_v63 }
 0x446   :  { %1385 = vmatpush1.msra.mxu1 %v3802_v54  ;;  %1456 = vmatpush1.msra.mxu0 %v3945_v8 }
 0x447   :  { %1386 = vmatprep.subr.mxu1 %v3806_v9  ;;  %1457 = vmatprep.subr.mxu0 %v3949_v1 }
 0x448   :  { %1387 = vmatpush1.msra.mxu1 %v3810_v10  ;;  %1458 = vmatpush1.msra.mxu0 %v3953_v49 }
 0x449   :  { %1388 = vmatprep.subr.mxu1 %v3814_v11  ;;  %1459 = vmatprep.subr.mxu0 %v3957_v53 }
 0x44a   :  { %1389 = vmatpush1.msra.mxu1 %v3818_v12  ;;  %1460 = vmatpush1.msra.mxu0 %v3961_v6 }
 0x44b   :  { %1390 = vmatprep.subr.mxu1 %v3822_v13  ;;  %1461 = vmatprep.subr.mxu0 %v3965_v61 }
 0x44c   :  { %1391 = vmatpush1.msra.mxu1 %v3826_v14  ;;  %1462 = vmatpush1.msra.mxu0 %v3969_v58 }
 0x44d   :  { %1392 = vmatprep.subr.mxu1 %v3830_v15  ;;  %1463 = vmatprep.subr.mxu0 %v3973_v47 }
 0x44e   :  { %1393 = vmatpush1.msra.mxu1 %v3834_v16  ;;  %1464 = vmatpush1.msra.mxu0 %v3977_v43 }
 0x44f   :  { %1394 = vmatprep.subr.mxu1 %v3838_v17  ;;  %1465 = vmatprep.subr.mxu0 %v3981_v41 }
 0x450   :  { %1395 = vmatpush1.msra.mxu1 %v3842_v18  ;;  %1466 = vmatpush1.msra.mxu0 %v3985_v27 }
 0x451   :  { %1396 = vmatprep.subr.mxu1 %v3846_v19  ;;  %1467 = vmatprep.subr.mxu0 %v3989_v51 }
 0x452   :  { %1397 = vmatpush1.msra.mxu1 %v3850_v20  ;;  %1468 = vmatpush1.msra.mxu0 %v3993_v0 }
 0x453   :  { %1398 = vmatprep.subr.mxu1 %v3854_v21  ;;  %1469 = vmatprep.subr.mxu0 %v3997_v29 }
 0x454   :  { %1399 = vmatpush1.msra.mxu1 %v3858_v22  ;;  %1470 = vmatpush1.msra.mxu0 %v4001_v32 }
 0x455   :  { %1400 = vmatprep.subr.mxu1 %v3862_v23  ;;  %1471 = vmatprep.subr.mxu0 %v4005_v35 }
 0x456   :  { %1401 = vmatpush1.msra.mxu1 %v3866_v24  ;;  %1472 = vmatpush1.msra.mxu0 %v4009_v38 }
 0x457   :  { %1402 = vmatprep.subr.mxu1 %v3870_v25  ;;  %1473 = vmatprep.subr.mxu0 %v4013_v40 }
 0x458   :  { %1403 = vmatpush1.msra.mxu1 %v3874_v26  ;;  %1474 = vmatpush1.msra.mxu0 %v4017_v44 }
 0x459   :  { %1404 = vmatprep.subr.mxu1 %v3878_v31  ;;  %1475 = vmatprep.subr.mxu0 %v4021_v50  ;;  %v4572_v50 = vld [vmem:[#allocation46_spill] sm:$0xff] }
 0x45a   :  { %1405 = vmatpush1.msra.mxu1 %v3882_v33  ;;  %1476 = vmatpush1.msra.mxu0 %v4025_v42  ;;  %v4571_v33 = vld [vmem:[#allocation48_spill] sm:$0xff] }
 0x45b   :  { %1406 = vmatprep.subr.mxu1 %v3886_v56  ;;  %1477 = vmatprep.subr.mxu0 %v4029_v45  ;;  %v4045_v45 = vld [vmem:[#allocation2 + $0x18] sm:$0xff] }
 0x45c   :  { %1407 = vmatpush1.msra.mxu1 %v3890_v2  ;;  %1478 = vmatpush1.msra.mxu0 %v4033_v5  ;;  %4567 = vst [vmem:[#allocation28_spill] sm:$0xff] %v4045_v45 }
 0x45d   :  { %1408 = vmatprep.subr.mxu1 %v3894_v28  ;;  %1479 = vmatprep.subr.mxu0 %v4037_v37  ;;  %v4050_v28 = vld [vmem:[#allocation2 + $0x10] sm:$0xff] }
 0x45e   :  { %1409 = vmatpush1.msra.mxu1 %v3898_v30  ;;  %1480 = vmatpush1.msra.mxu0 %v4041_v7  ;;  %4568 = vst [vmem:[#allocation17_spill] sm:$0xff] %v4050_v28 }
 0x45f   :  { %1410 = vmatprep.subr.mxu1 %v3902_v34  ;;  %1481 = vmatprep.subr.mxu0 %v4045_v45  ;;  %v4569_v34 = vld [vmem:[#allocation45_spill] sm:$0xff]  ;;  %v4570_v45 = vld [vmem:[#allocation47_spill] sm:$0xff] }
 0x460   :  { %1411 = vmatpush1.msra.mxu1 %v3906_v36  ;;  %1444 = vmatprep.mubr.f32.mxu1 %v4537_v52 }
 0x461   :  { %1482 = vmatpush1.msra.mxu0 %v4050_v28  ;;  %1515 = vmatprep.mubr.f32.mxu0 %v4537_v52 }
 0x462   :  { %1550 = vmatprep.subr.mxu1 %v3770_v55  ;;  %1621 = vmatprep.subr.mxu0 %v3913_v39 }
 0x501   :  { %v1276_v7 = vpop.f32.mrf.mxu1  ;;  %v1347_v36 = vpop.f32.mrf.mxu0 }
 0x502   :  { %v1352_v30 = vadd.f32 %v1276_v7, %v4569_v34  ;;  %v1354_v52 = vadd.f32 %v1347_v36, %v4572_v50  ;;  %v4575_v36 = vld [vmem:[#allocation22_spill] sm:$0xff]  ;;  %v4579_v50 = vld [vmem:[#allocation8_spill] sm:$0xff] }
 0x503   :  { %v1278_v37 = vpop.f32.mrf.mxu1  ;;  %v1349_v42 = vpop.f32.mrf.mxu0 }
 0x504   :  { %v2498_v5 = vmul.f32 -1.442695, %v1352_v30  ;;  %v1353_v2 = vadd.f32 %v1278_v37, %v4570_v45  ;;  %v1355_v28 = vadd.f32 %v1349_v42, %v4571_v33  ;;  %v4580_v42 = vld [vmem:[#allocation26_spill] sm:$0xff] }
 0x506   :  { %2806 = vpow2.f32 %v2498_v5  ;;  %v2499_v56 = vmul.f32 -1.442695, %v1353_v2  ;;  %v2500_v31 = vmul.f32 -1.442695, %v1355_v28 }
 0x508   :  { %2808 = vpow2.f32 %v2499_v56 }
 0x509   :  { %2810 = vtanh.f32 %v1354_v52 }
 0x50a   :  { %2812 = vpow2.f32 %v2500_v31  ;;  %v4574_v31 = vld [vmem:[#allocation13_spill] sm:$0xff] }
 0x513   :  { %v2807_v55 = vpop.eup %2806 }
 0x514   :  { %v1359_v44 = vadd.f32 1.0, %v2807_v55 }
 0x515   :  { %v2809_v39 = vpop.eup %2808 }
 0x516   :  { %2814 = vrcp.f32 %v1359_v44  ;;  %v1365_v7 = vadd.f32 1.0, %v2809_v39  ;;  %v2811_v30 = vpop.eup %2810  ;;  %v4576_v39 = vld [vmem:[#allocation25_spill] sm:$0xff]  ;;  %v4578_v44 = vld [vmem:[#allocation14_spill] sm:$0xff] }
 0x517   :  { %v2813_v37 = vpop.eup %2812 }
 0x518   :  { %2816 = vrcp.f32 %v1365_v7  ;;  %v1372_v56 = vadd.f32 1.0, %v2813_v37  ;;  %v4581_v7 = vld [vmem:[#allocation33_spill] sm:$0xff]  ;;  %v4583_v37 = vld [vmem:[#allocation35_spill] sm:$0xff] }
 0x51a   :  { %2818 = vrcp.f32 %v1372_v56  ;;  %v4587_v56 = vld [vmem:[#allocation34_spill] sm:$0xff] }
 0x523   :  { %v2815_v34 = vpop.eup %2814 }
 0x524   :  { %v1376_v5 = vmul.f32 %v2815_v34, %v2811_v30  ;;  %v4582_v30 = vld [vmem:[#allocation15_spill] sm:$0xff] }
 0x525   :  { %v2817_v2 = vpop.eup %2816  ;;  %v4584_v34 = vld [vmem:[#allocation27_spill] sm:$0xff] }
 0x526   :  { %v1375_v45 = vmul.f32 %v2817_v2, %v3921_v57  ;;  %v4577_v57 = vld [vmem:[#allocation11_spill] sm:$0xff]  ;;  %v4586_v2 = vld [vmem:[#allocation16_spill] sm:$0xff] }
 0x527   :  { %v2819_v55 = vpop.eup %2818 }
 0x528   :  { %v4061_v33 = vadd.f32 %v1376_v5, %v1375_v45  ;;  %v4585_v5 = vld [vmem:[#allocation36_spill] sm:$0xff] }
 0x529   :  { %v4588_v45 = vld [vmem:[#allocation28_spill] sm:$0xff] }
 0x52a   :  { %2820 = vtanh.f32 %v4061_v33 }
 0x537   :  { %v2821_v52 = vpop.eup %2820 }
 0x538   :  { %v4064_v28 = vmul.f32 %v2821_v52, %v2819_v55  ;;  %v4589_v55 = vld [vmem:[#allocation23_spill] sm:$0xff]  ;;  %v4590_v52 = vmov 0.0  }
 0x53a   :  { %4573 = vst [vmem:[#allocation29_spill] sm:$0xff] %v4064_v28  ;;  %1445 = vmatmul.mubr.f32.vlgmr.msra.gmra.mxu1 %v4064_v28  ;;  %1516 = vmatmul.mubr.f32.vlgmr.msra.gmra.mxu0 %v4064_v28  ;;  %v4591_v28 = vld [vmem:[#allocation17_spill] sm:$0xff] }
 0x53b   :  { %1551 = vmatpush1.msra.mxu1 %v3786_v60  ;;  %1622 = vmatpush1.msra.mxu0 %v3929_v48 }
 0x53c   :  { %1552 = vmatprep.subr.mxu1 %v3790_v59  ;;  %1623 = vmatprep.subr.mxu0 %v3933_v46 }
 0x53d   :  { %1553 = vmatpush1.msra.mxu1 %v3794_v3  ;;  %1624 = vmatpush1.msra.mxu0 %v3937_v4 }
 0x53e   :  { %1554 = vmatprep.subr.mxu1 %v3798_v62  ;;  %1625 = vmatprep.subr.mxu0 %v3941_v63 }
 0x53f   :  { %1555 = vmatpush1.msra.mxu1 %v3802_v54  ;;  %1626 = vmatpush1.msra.mxu0 %v3945_v8 }
 0x540   :  { %1556 = vmatprep.subr.mxu1 %v3806_v9  ;;  %1627 = vmatprep.subr.mxu0 %v3949_v1 }
 0x541   :  { %1557 = vmatpush1.msra.mxu1 %v3810_v10  ;;  %1628 = vmatpush1.msra.mxu0 %v3953_v49 }
 0x542   :  { %1558 = vmatprep.subr.mxu1 %v3814_v11  ;;  %1629 = vmatprep.subr.mxu0 %v3957_v53 }
 0x543   :  { %1559 = vmatpush1.msra.mxu1 %v3818_v12  ;;  %1630 = vmatpush1.msra.mxu0 %v3961_v6 }
 0x544   :  { %1560 = vmatprep.subr.mxu1 %v3822_v13  ;;  %1631 = vmatprep.subr.mxu0 %v3965_v61 }
 0x545   :  { %1561 = vmatpush1.msra.mxu1 %v3826_v14  ;;  %1632 = vmatpush1.msra.mxu0 %v3969_v58 }
 0x546   :  { %1562 = vmatprep.subr.mxu1 %v3830_v15  ;;  %1633 = vmatprep.subr.mxu0 %v3973_v47 }
 0x547   :  { %1563 = vmatpush1.msra.mxu1 %v3834_v16  ;;  %1634 = vmatpush1.msra.mxu0 %v3977_v43 }
 0x548   :  { %1564 = vmatprep.subr.mxu1 %v3838_v17  ;;  %1635 = vmatprep.subr.mxu0 %v3981_v41 }
 0x549   :  { %1565 = vmatpush1.msra.mxu1 %v3842_v18  ;;  %1636 = vmatpush1.msra.mxu0 %v3985_v27 }
 0x54a   :  { %1566 = vmatprep.subr.mxu1 %v3846_v19  ;;  %1637 = vmatprep.subr.mxu0 %v3989_v51 }
 0x54b   :  { %1567 = vmatpush1.msra.mxu1 %v3850_v20  ;;  %1638 = vmatpush1.msra.mxu0 %v3993_v0 }
 0x54c   :  { %1568 = vmatprep.subr.mxu1 %v3854_v21  ;;  %1639 = vmatprep.subr.mxu0 %v3997_v29 }
 0x54d   :  { %1569 = vmatpush1.msra.mxu1 %v3858_v22  ;;  %1640 = vmatpush1.msra.mxu0 %v4001_v32 }
 0x54e   :  { %1570 = vmatprep.subr.mxu1 %v3862_v23  ;;  %1641 = vmatprep.subr.mxu0 %v4005_v35 }
 0x54f   :  { %1571 = vmatpush1.msra.mxu1 %v3866_v24  ;;  %1642 = vmatpush1.msra.mxu0 %v4009_v38 }
 0x550   :  { %1572 = vmatprep.subr.mxu1 %v3870_v25  ;;  %1643 = vmatprep.subr.mxu0 %v4013_v40 }
 0x551   :  { %1573 = vmatpush1.msra.mxu1 %v3874_v26  ;;  %1644 = vmatpush1.msra.mxu0 %v4574_v31 }
 0x552   :  { %1574 = vmatprep.subr.mxu1 %v4575_v36  ;;  %1645 = vmatprep.subr.mxu0 %v4576_v39  ;;  %v4597_v39 = vld [vmem:[#allocation50_spill] sm:$0xff] }
 0x553   :  { %1575 = vmatpush1.msra.mxu1 %v4577_v57  ;;  %1646 = vmatpush1.msra.mxu0 %v4578_v44  ;;  %v4596_v57 = vld [vmem:[#allocation52_spill] sm:$0xff] }
 0x554   :  { %1576 = vmatprep.subr.mxu1 %v4579_v50  ;;  %1647 = vmatprep.subr.mxu0 %v4580_v42 }
 0x555   :  { %1577 = vmatpush1.msra.mxu1 %v4581_v7  ;;  %1648 = vmatpush1.msra.mxu0 %v4582_v30  ;;  %v4592_v30 = vld [vmem:[#allocation21_spill] sm:$0xff] }
 0x556   :  { %1578 = vmatprep.subr.mxu1 %v4583_v37  ;;  %1649 = vmatprep.subr.mxu0 %v4584_v34  ;;  %v4593_v37 = vld [vmem:[#allocation12_spill] sm:$0xff] }
 0x557   :  { %1579 = vmatpush1.msra.mxu1 %v4585_v5  ;;  %1650 = vmatpush1.msra.mxu0 %v4586_v2  ;;  %v4594_v5 = vld [vmem:[#allocation49_spill] sm:$0xff] }
 0x558   :  { %1580 = vmatprep.subr.mxu1 %v4587_v56  ;;  %1651 = vmatprep.subr.mxu0 %v4588_v45  ;;  %v4595_v56 = vld [vmem:[#allocation51_spill] sm:$0xff] }
 0x559   :  { %1581 = vmatpush1.msra.mxu1 %v4589_v55  ;;  %1614 = vmatprep.mubr.f32.mxu1 %v4590_v52 }
 0x55a   :  { %1652 = vmatpush1.msra.mxu0 %v4591_v28  ;;  %1685 = vmatprep.mubr.f32.mxu0 %v4590_v52 }
 0x55b   :  { %1720 = vmatprep.subr.mxu1 %v4592_v30  ;;  %1791 = vmatprep.subr.mxu0 %v4593_v37 }
 0x5fa   :  { %v1446_v34 = vpop.f32.mrf.mxu1  ;;  %v1517_v45 = vpop.f32.mrf.mxu0 }
 0x5fb   :  { %v1522_v7 = vadd.f32 %v1446_v34, %v4594_v5  ;;  %v1524_v52 = vadd.f32 %v1517_v45, %v4597_v39 }
 0x5fc   :  { %v1448_v2 = vpop.f32.mrf.mxu1  ;;  %v1519_v44 = vpop.f32.mrf.mxu0 }
 0x5fd   :  { %v2501_v42 = vmul.f32 -1.442695, %v1522_v7  ;;  %v1523_v50 = vadd.f32 %v1448_v2, %v4595_v56  ;;  %v1525_v28 = vadd.f32 %v1519_v44, %v4596_v57 }
 0x5ff   :  { %2822 = vpow2.f32 %v2501_v42  ;;  %v2502_v55 = vmul.f32 -1.442695, %v1523_v50  ;;  %v2503_v36 = vmul.f32 -1.442695, %v1525_v28 }
 0x601   :  { %2824 = vpow2.f32 %v2502_v55 }
 0x602   :  { %2826 = vtanh.f32 %v1524_v52  ;;  %v1920_v52 = vld [vmem:[#allocation2 + $0x458] sm:$0xff] }
 0x603   :  { %2828 = vpow2.f32 %v2503_v36 }
 0x60c   :  { %v2823_v30 = vpop.eup %2822 }
 0x60d   :  { %v1529_v31 = vadd.f32 1.0, %v2823_v30  ;;  %v1919_v30 = vld [vmem:[#allocation2 + $0x418] sm:$0xff] }
 0x60e   :  { %v2825_v37 = vpop.eup %2824 }
 0x60f   :  { %2830 = vrcp.f32 %v1529_v31  ;;  %v1535_v34 = vadd.f32 1.0, %v2825_v37  ;;  %v2827_v7 = vpop.eup %2826  ;;  %v1918_v37 = vld [vmem:[#allocation2 + $0x410] sm:$0xff] }
 0x610   :  { %v2829_v5 = vpop.eup %2828 }
 0x611   :  { %2832 = vrcp.f32 %v1535_v34  ;;  %v1542_v56 = vadd.f32 1.0, %v2829_v5  ;;  %v1917_v34 = vld [vmem:[#allocation2 + $0x3d0] sm:$0xff]  ;;  %v1915_v5 = vld [vmem:[#allocation2 + $0x388] sm:$0xff] }
 0x613   :  { %2834 = vrcp.f32 %v1542_v56  ;;  %v1911_v56 = vld [vmem:[#allocation2 + $0x2f8] sm:$0xff] }
 0x61c   :  { %v2831_v42 = vpop.eup %2830 }
 0x61d   :  { %v1546_v2 = vmul.f32 %v2831_v42, %v2827_v7  ;;  %v1916_v7 = vld [vmem:[#allocation2 + $0x3c8] sm:$0xff]  ;;  %v1914_v42 = vld [vmem:[#allocation2 + $0x380] sm:$0xff] }
 0x61e   :  { %v2833_v50 = vpop.eup %2832 }
 0x61f   :  { %v1545_v55 = vmul.f32 %v2833_v50, %v4061_v33  ;;  %v1912_v50 = vld [vmem:[#allocation2 + $0x338] sm:$0xff] }
 0x620   :  { %v2835_v28 = vpop.eup %2834 }
 0x621   :  { %v4139_v57 = vadd.f32 %v1546_v2, %v1545_v55  ;;  %v1913_v2 = vld [vmem:[#allocation2 + $0x340] sm:$0xff]  ;;  %v1910_v55 = vld [vmem:[#allocation2 + $0x2f0] sm:$0xff] }
 0x623   :  { %2836 = vtanh.f32 %v4139_v57 }
 0x630   :  { %v2837_v39 = vpop.eup %2836 }
 0x631   :  { %v4142_v44 = vmul.f32 %v2837_v39, %v2835_v28  ;;  %v1908_v28 = vld [vmem:[#allocation2 + $0x2a8] sm:$0xff] }
 0x632   :  { %v1907_v39 = vld [vmem:[#allocation2 + $0x268] sm:$0xff] }
 0x633   :  { %1615 = vmatmul.mubr.f32.vlgmr.msra.gmra.mxu1 %v4142_v44  ;;  %1686 = vmatmul.mubr.f32.vlgmr.msra.gmra.mxu0 %v4142_v44 }
 0x634   :  { %1721 = vmatpush1.msra.mxu1 %v3786_v60  ;;  %1792 = vmatpush1.msra.mxu0 %v3929_v48  ;;  %v4598_v60 = vld [vmem:[#allocation13_spill] sm:$0xff] }
 0x635   :  { %1722 = vmatprep.subr.mxu1 %v3790_v59  ;;  %1793 = vmatprep.subr.mxu0 %v3933_v46  ;;  %v4599_v59 = vld [vmem:[#allocation22_spill] sm:$0xff]  ;;  %v4617_v46 = vld [vmem:[#allocation55_spill] sm:$0xff] }
 0x636   :  { %1723 = vmatpush1.msra.mxu1 %v3794_v3  ;;  %1794 = vmatpush1.msra.mxu0 %v3937_v4  ;;  %v4600_v3 = vld [vmem:[#allocation25_spill] sm:$0xff] }
 0x637   :  { %1724 = vmatprep.subr.mxu1 %v3798_v62  ;;  %1795 = vmatprep.subr.mxu0 %v3941_v63  ;;  %v4601_v62 = vld [vmem:[#allocation11_spill] sm:$0xff] }
 0x638   :  { %1725 = vmatpush1.msra.mxu1 %v3802_v54  ;;  %1796 = vmatpush1.msra.mxu0 %v3945_v8  ;;  %v4602_v54 = vld [vmem:[#allocation14_spill] sm:$0xff] }
 0x639   :  { %1726 = vmatprep.subr.mxu1 %v3806_v9  ;;  %1797 = vmatprep.subr.mxu0 %v3949_v1  ;;  %v4603_v9 = vld [vmem:[#allocation8_spill] sm:$0xff] }
 0x63a   :  { %1727 = vmatpush1.msra.mxu1 %v3810_v10  ;;  %1798 = vmatpush1.msra.mxu0 %v3953_v49  ;;  %v4604_v10 = vld [vmem:[#allocation26_spill] sm:$0xff]  ;;  %v4618_v49 = vld [vmem:[#allocation56_spill] sm:$0xff] }
 0x63b   :  { %1728 = vmatprep.subr.mxu1 %v3814_v11  ;;  %1799 = vmatprep.subr.mxu0 %v3957_v53  ;;  %v4605_v11 = vld [vmem:[#allocation33_spill] sm:$0xff] }
 0x63c   :  { %1729 = vmatpush1.msra.mxu1 %v3818_v12  ;;  %1800 = vmatpush1.msra.mxu0 %v3961_v6  ;;  %v4606_v12 = vld [vmem:[#allocation15_spill] sm:$0xff]  ;;  %v4619_v6 = vld [vmem:[#allocation54_spill] sm:$0xff] }
 0x63d   :  { %1730 = vmatprep.subr.mxu1 %v3822_v13  ;;  %1801 = vmatprep.subr.mxu0 %v3965_v61  ;;  %v4607_v13 = vld [vmem:[#allocation35_spill] sm:$0xff] }
 0x63e   :  { %1731 = vmatpush1.msra.mxu1 %v3826_v14  ;;  %1802 = vmatpush1.msra.mxu0 %v3969_v58  ;;  %v4608_v14 = vld [vmem:[#allocation27_spill] sm:$0xff] }
 0x63f   :  { %1732 = vmatprep.subr.mxu1 %v3830_v15  ;;  %1803 = vmatprep.subr.mxu0 %v3973_v47  ;;  %v4609_v15 = vld [vmem:[#allocation36_spill] sm:$0xff] }
 0x640   :  { %1733 = vmatpush1.msra.mxu1 %v3834_v16  ;;  %1804 = vmatpush1.msra.mxu0 %v3977_v43  ;;  %v4610_v16 = vld [vmem:[#allocation16_spill] sm:$0xff] }
 0x641   :  { %1734 = vmatprep.subr.mxu1 %v3838_v17  ;;  %1805 = vmatprep.subr.mxu0 %v3981_v41  ;;  %v4611_v17 = vld [vmem:[#allocation34_spill] sm:$0xff] }
 0x642   :  { %1735 = vmatpush1.msra.mxu1 %v3842_v18  ;;  %1806 = vmatpush1.msra.mxu0 %v3985_v27  ;;  %v4612_v18 = vld [vmem:[#allocation28_spill] sm:$0xff] }
 0x643   :  { %1736 = vmatprep.subr.mxu1 %v3846_v19  ;;  %1807 = vmatprep.subr.mxu0 %v3989_v51  ;;  %v4613_v19 = vld [vmem:[#allocation23_spill] sm:$0xff] }
 0x644   :  { %1737 = vmatpush1.msra.mxu1 %v3850_v20  ;;  %1808 = vmatpush1.msra.mxu0 %v3993_v0  ;;  %v4614_v20 = vmov 0.0  }
 0x645   :  { %1738 = vmatprep.subr.mxu1 %v3854_v21  ;;  %1809 = vmatprep.subr.mxu0 %v3997_v29  ;;  %v4615_v21 = vld [vmem:[#allocation17_spill] sm:$0xff] }
 0x646   :  { %1739 = vmatpush1.msra.mxu1 %v3858_v22  ;;  %1810 = vmatpush1.msra.mxu0 %v4001_v32  ;;  %v1921_v22 = vld [vmem:[#allocation2 + $0x460] sm:$0xff] }
 0x647   :  { %1740 = vmatprep.subr.mxu1 %v3862_v23  ;;  %1811 = vmatprep.subr.mxu0 %v4005_v35 }
 0x648   :  { %1741 = vmatpush1.msra.mxu1 %v3866_v24  ;;  %1812 = vmatpush1.msra.mxu0 %v4009_v38  ;;  %v4616_v24 = vld [vmem:[#allocation53_spill] sm:$0xff] }
 0x649   :  { %1742 = vmatprep.subr.mxu1 %v3870_v25  ;;  %1813 = vmatprep.subr.mxu0 %v4013_v40 }
 0x64a   :  { %1743 = vmatpush1.msra.mxu1 %v3874_v26  ;;  %1814 = vmatpush1.msra.mxu0 %v4598_v60  ;;  %v1906_v60 = vld [vmem:[#allocation2 + $0x260] sm:$0xff] }
 0x64b   :  { %1744 = vmatprep.subr.mxu1 %v4599_v59  ;;  %1815 = vmatprep.subr.mxu0 %v4600_v3  ;;  %v1905_v59 = vld [vmem:[#allocation2 + $0x220] sm:$0xff]  ;;  %v1904_v3 = vld [vmem:[#allocation2 + $0x218] sm:$0xff] }
 0x64c   :  { %1745 = vmatpush1.msra.mxu1 %v4601_v62  ;;  %1816 = vmatpush1.msra.mxu0 %v4602_v54  ;;  %v1903_v62 = vld [vmem:[#allocation2 + $0x1d8] sm:$0xff]  ;;  %v1902_v54 = vld [vmem:[#allocation2 + $0x1d0] sm:$0xff] }
 0x64d   :  { %1746 = vmatprep.subr.mxu1 %v4603_v9  ;;  %1817 = vmatprep.subr.mxu0 %v4604_v10  ;;  %v1901_v9 = vld [vmem:[#allocation2 + $0x190] sm:$0xff]  ;;  %v1900_v10 = vld [vmem:[#allocation2 + $0x188] sm:$0xff] }
 0x64e   :  { %1747 = vmatpush1.msra.mxu1 %v4605_v11  ;;  %1818 = vmatpush1.msra.mxu0 %v4606_v12  ;;  %v1899_v11 = vld [vmem:[#allocation2 + $0x148] sm:$0xff]  ;;  %v1898_v12 = vld [vmem:[#allocation2 + $0x140] sm:$0xff] }
 0x64f   :  { %1748 = vmatprep.subr.mxu1 %v4607_v13  ;;  %1819 = vmatprep.subr.mxu0 %v4608_v14  ;;  %v1897_v13 = vld [vmem:[#allocation2 + $0x100] sm:$0xff]  ;;  %v1896_v14 = vld [vmem:[#allocation2 + $0xf8] sm:$0xff] }
 0x650   :  { %1749 = vmatpush1.msra.mxu1 %v4609_v15  ;;  %1820 = vmatpush1.msra.mxu0 %v4610_v16  ;;  %v1895_v15 = vld [vmem:[#allocation2 + $0xb8] sm:$0xff]  ;;  %v1894_v16 = vld [vmem:[#allocation2 + $0xb0] sm:$0xff] }
 0x651   :  { %1750 = vmatprep.subr.mxu1 %v4611_v17  ;;  %1821 = vmatprep.subr.mxu0 %v4612_v18  ;;  %v1893_v17 = vld [vmem:[#allocation2 + $0x70] sm:$0xff]  ;;  %v1892_v18 = vld [vmem:[#allocation2 + $0x68] sm:$0xff] }
 0x652   :  { %1751 = vmatpush1.msra.mxu1 %v4613_v19  ;;  %1784 = vmatprep.mubr.f32.mxu1 %v4614_v20  ;;  %v1891_v19 = vld [vmem:[#allocation2 + $0x28] sm:$0xff] }
 0x653   :  { %1822 = vmatpush1.msra.mxu0 %v4615_v21  ;;  %1855 = vmatprep.mubr.f32.mxu0 %v4614_v20  ;;  %v1890_v21 = vld [vmem:[#allocation2 + $0x20] sm:$0xff] }
 0x654   :  { %1935 = vmatprep.subr.mxu1 %v1921_v22  ;;  %v4620_v22 = vld [vmem:[#allocation70_spill] sm:$0xff] }
 0x6f3   :  { %v1616_v23 = vpop.f32.mrf.mxu1  ;;  %v1687_v63 = vpop.f32.mrf.mxu0 }
 0x6f4   :  { %v1692_v25 = vadd.f32 %v1616_v23, %v4616_v24  ;;  %v1694_v61 = vadd.f32 %v1687_v63, %v4619_v6  ;;  %v4621_v23 = vld [vmem:[#allocation9_spill] sm:$0xff]  ;;  %v4622_v24 = vld [vmem:[#allocation10_spill] sm:$0xff]  ;;  %v2054_v6 = vld [vmem:[#allocation2 + $0x1e8] sm:$0xff] }
 0x6f5   :  { %v1618_v26 = vpop.f32.mrf.mxu1  ;;  %v1689_v1 = vpop.f32.mrf.mxu0  ;;  %v2060_v63 = vld [vmem:[#allocation2 + $0x398] sm:$0xff] }
 0x6f6   :  { %v2504_v48 = vmul.f32 -1.442695, %v1692_v25  ;;  %v1693_v4 = vadd.f32 %v1618_v26, %v4617_v46  ;;  %v1695_v53 = vadd.f32 %v1689_v1, %v4618_v49  ;;  %v4623_v25 = vld [vmem:[#allocation24_spill] sm:$0xff]  ;;  %v4624_v26 = vld [vmem:[#allocation29_spill] sm:$0xff]  ;;  %v2057_v1 = vld [vmem:[#allocation2 + $0x2c0] sm:$0xff] }
 0x6f7   :  { %v2062_v46 = vld [vmem:[#allocation2 + $0x428] sm:$0xff]  ;;  %v2056_v49 = vld [vmem:[#allocation2 + $0x278] sm:$0xff] }
 0x6f8   :  { %2838 = vpow2.f32 %v2504_v48  ;;  %v2505_v8 = vmul.f32 -1.442695, %v1693_v4  ;;  %v2506_v58 = vmul.f32 -1.442695, %v1695_v53  ;;  %v2063_v48 = vld [vmem:[#allocation2 + $0x470] sm:$0xff]  ;;  %v2061_v4 = vld [vmem:[#allocation2 + $0x3e0] sm:$0xff] }
 0x6f9   :  { %2613 = vmatprep.subr.mxu0 %v2063_v48  ;;  %v2055_v53 = vld [vmem:[#allocation2 + $0x230] sm:$0xff] }
 0x6fa   :  { %2840 = vpow2.f32 %v2505_v8  ;;  %v2059_v8 = vld [vmem:[#allocation2 + $0x350] sm:$0xff] }
 0x6fb   :  { %2842 = vtanh.f32 %v1694_v61  ;;  %v2053_v61 = vld [vmem:[#allocation2 + $0x1a0] sm:$0xff] }
 0x6fc   :  { %2844 = vpow2.f32 %v2506_v58  ;;  %v2052_v58 = vld [vmem:[#allocation2 + $0x158] sm:$0xff] }
 0x705   :  { %v2839_v47 = vpop.eup %2838 }
 0x706   :  { %v1699_v43 = vadd.f32 1.0, %v2839_v47  ;;  %v2051_v47 = vld [vmem:[#allocation2 + $0x110] sm:$0xff] }
 0x707   :  { %v2841_v41 = vpop.eup %2840 }
 0x708   :  { %2846 = vrcp.f32 %v1699_v43  ;;  %v1705_v27 = vadd.f32 1.0, %v2841_v41  ;;  %v2843_v51 = vpop.eup %2842  ;;  %v2050_v43 = vld [vmem:[#allocation2 + $0xc8] sm:$0xff]  ;;  %v2049_v41 = vld [vmem:[#allocation2 + $0x80] sm:$0xff] }
 0x709   :  { %v2845_v0 = vpop.eup %2844 }
 0x70a   :  { %2848 = vrcp.f32 %v1705_v27  ;;  %v1712_v38 = vadd.f32 1.0, %v2845_v0  ;;  %v2048_v27 = vld [vmem:[#allocation2 + $0x38] sm:$0xff]  ;;  %v4625_v0 = vld [vmem:[#allocation57_spill] sm:$0xff] }
 0x70c   :  { %2850 = vrcp.f32 %v1712_v38  ;;  %v4626_v38 = vld [vmem:[#allocation59_spill] sm:$0xff] }
 0x715   :  { %v2847_v29 = vpop.eup %2846 }
 0x716   :  { %v1716_v32 = vmul.f32 %v2847_v29, %v2843_v51 }
 0x717   :  { %v2849_v35 = vpop.eup %2848 }
 0x718   :  { %v1715_v40 = vmul.f32 %v2849_v35, %v4139_v57  ;;  %v1909_v57 = vld [vmem:[#allocation2 + $0x2b0] sm:$0xff] }
 0x719   :  { %v2851_v31 = vpop.eup %2850 }
 0x71a   :  { %v4215_v33 = vadd.f32 %v1716_v32, %v1715_v40 }
 0x71c   :  { %2852 = vtanh.f32 %v4215_v33 }
 0x729   :  { %v2853_v36 = vpop.eup %2852 }
 0x72a   :  { %v4218_v45 = vmul.f32 %v2853_v36, %v2851_v31 }
 0x72c   :  { %1785 = vmatmul.mubr.f32.vlgmr.msra.gmra.mxu1 %v4218_v45  ;;  %1856 = vmatmul.mubr.f32.vlgmr.msra.gmra.mxu0 %v4218_v45 }
 0x72d   :  { %1936 = vmatpush1.msra.mxu1 %v1920_v52  ;;  %1999 = vmatprep.mubr.f32.mxu1 %v4614_v20  ;;  %v4627_v52 = vld [vmem:[#allocation60_spill] sm:$0xff] }
 0x72e   :  { %1937 = vmatprep.subr.mxu1 %v1919_v30  ;;  %2614 = vmatpush3.msra.mxu0 %v2063_v48 }
 0x72f   :  { %1938 = vmatpush1.msra.mxu1 %v1918_v37  ;;  %2615 = vmatprep.subr.mxu0 %v2062_v46  ;;  %v4628_v37 = vld [vmem:[#allocation58_spill] sm:$0xff] }
 0x730   :  { %1939 = vmatprep.subr.mxu1 %v1917_v34  ;;  %2616 = vmatpush3.msra.mxu0 %v2062_v46 }
 0x731   :  { %1940 = vmatpush1.msra.mxu1 %v1916_v7  ;;  %2617 = vmatprep.subr.mxu0 %v2061_v4 }
 0x732   :  { %1941 = vmatprep.subr.mxu1 %v1915_v5  ;;  %2618 = vmatpush3.msra.mxu0 %v2061_v4 }
 0x733   :  { %1942 = vmatpush1.msra.mxu1 %v1914_v42  ;;  %2619 = vmatprep.subr.mxu0 %v2060_v63 }
 0x734   :  { %1943 = vmatprep.subr.mxu1 %v1913_v2  ;;  %2620 = vmatpush3.msra.mxu0 %v2060_v63 }
 0x735   :  { %1944 = vmatpush1.msra.mxu1 %v1912_v50  ;;  %2621 = vmatprep.subr.mxu0 %v2059_v8 }
 0x736   :  { %1945 = vmatprep.subr.mxu1 %v1911_v56  ;;  %2622 = vmatpush3.msra.mxu0 %v2059_v8  ;;  %v1923_v56 = vld [vmem:[#allocation4 + $0x1] ss:$8 sm:$0x3] }
 0x737   :  { %1946 = vmatpush1.msra.mxu1 %v1910_v55  ;;  %v4629_v55 = vld [vmem:[#allocation67_spill] sm:$0xff] }
 0x738   :  { %1947 = vmatprep.subr.mxu1 %v1909_v57  ;;  %v4630_v57 = vld [vmem:[#allocation62_spill] sm:$0xff] }
 0x739   :  { %1948 = vmatpush1.msra.mxu1 %v1908_v28  ;;  %v428_v28 = vadd.f32 %v4630_v57, %v4629_v55 }
 0x73a   :  { %1949 = vmatprep.subr.mxu1 %v1907_v39  ;;  %v4631_v39 = vld [vmem:[#allocation32_spill] sm:$0xff] }
 0x73b   :  { %1950 = vmatpush1.msra.mxu1 %v1906_v60  ;;  %v4632_v60 = vsub.s32 0, %v4631_v39 }
 0x73c   :  { %1951 = vmatprep.subr.mxu1 %v1905_v59 }
 0x73d   :  { %1952 = vmatpush1.msra.mxu1 %v1904_v3  ;;  %v4246_v59 = vrot.slane %v1923_v56, %v4632_v60  ;;  %v4633_v3 = vsub.s32 1, %v4631_v39 }
 0x73e   :  { %1953 = vmatprep.subr.mxu1 %v1903_v62 }
 0x73f   :  { %1954 = vmatpush1.msra.mxu1 %v1902_v54  ;;  %v4250_v62 = vrot.slane %v1923_v56, %v4633_v3 }
 0x740   :  { %1955 = vmatprep.subr.mxu1 %v1901_v9 }
 0x741   :  { %1956 = vmatpush1.msra.mxu1 %v1900_v10 }
 0x742   :  { %1957 = vmatprep.subr.mxu1 %v1899_v11  ;;  %v4634_v11 = vld [vmem:[#allocation61_spill] sm:$0xff] }
 0x743   :  { %1958 = vmatpush1.msra.mxu1 %v1898_v12  ;;  %v433_v12 = vadd.f32 %v4634_v11, %v4629_v55 }
 0x744   :  { %1959 = vmatprep.subr.mxu1 %v1897_v13  ;;  %v2080_v13 = vmul.f32 0.2, %v428_v28 }
 0x745   :  { %1960 = vmatpush1.msra.mxu1 %v1896_v14 }
 0x746   :  { %1961 = vmatprep.subr.mxu1 %v1895_v15 }
 0x747   :  { %1962 = vmatpush1.msra.mxu1 %v1894_v16 }
 0x748   :  { %1963 = vmatprep.subr.mxu1 %v1893_v17 }
 0x749   :  { %1964 = vmatpush1.msra.mxu1 %v1892_v18 }
 0x74a   :  { %1965 = vmatprep.subr.mxu1 %v1891_v19 }
 0x74b   :  { %1966 = vmatpush1.msra.mxu1 %v1890_v21 }
 0x74c   :  { %2000 = vmatmul.mubr.f32.vlgmr.msra.gmra.mxu1 %v4620_v22 }
 0x74d   :  { %2005 = vmatprep.mubr.f32.mxu1 %v4614_v20 }
 0x750   :  { %2006 = vmatmul.mubr.f32.gmra.mxu1 %v4621_v23 }
 0x751   :  { %2011 = vmatprep.mubr.f32.mxu1 %v4614_v20 }
 0x754   :  { %2012 = vmatmul.mubr.f32.gmra.mxu1 %v4622_v24  ;;  %v2081_v24 = vmul.f32 0.2, %v433_v12  ;;  %v4640_v12 = vld [vmem:[#allocation68_spill] sm:$0xff] }
 0x755   :  { %2017 = vmatprep.mubr.f32.mxu1 %v4614_v20 }
 0x758   :  { %2018 = vmatmul.mubr.f32.gmra.mxu1 %v4623_v25  ;;  %v4635_v25 = vld [vmem:[#allocation64_spill] sm:$0xff] }
 0x759   :  { %2023 = vmatprep.mubr.f32.mxu1 %v4614_v20 }
 0x75c   :  { %2024 = vmatmul.mubr.f32.gmra.mxu1 %v4624_v26  ;;  %v438_v26 = vadd.f32 %v4635_v25, %v4629_v55  ;;  %v2071_v25 = vld [vmem:[#allocation2 + $0x238] sm:$0xff] }
 0x75d   :  { %2029 = vmatprep.mubr.f32.mxu1 %v4614_v20 }
 0x760   :  { %2030 = vmatmul.mubr.f32.gmra.mxu1 %v4142_v44  ;;  %v2058_v44 = vld [vmem:[#allocation2 + $0x308] sm:$0xff] }
 0x761   :  { %2035 = vmatprep.mubr.f32.mxu1 %v4614_v20  ;;  %2623 = vmatprep.subr.mxu0 %v2058_v44 }
 0x762   :  { %2624 = vmatpush3.msra.mxu0 %v2058_v44 }
 0x763   :  { %2625 = vmatprep.subr.mxu0 %v2057_v1 }
 0x764   :  { %2036 = vmatmul.mubr.f32.gmra.mxu1 %v4218_v45  ;;  %2626 = vmatpush3.msra.mxu0 %v2057_v1 }
 0x765   :  { %2041 = vmatprep.mubr.f32.mxu1 %v4614_v20  ;;  %2627 = vmatprep.subr.mxu0 %v2056_v49 }
 0x766   :  { %2628 = vmatpush3.msra.mxu0 %v2056_v49  ;;  %v4636_v49 = vld [vmem:[#allocation63_spill] sm:$0xff] }
 0x767   :  { %2629 = vmatprep.subr.mxu0 %v2055_v53 }
 0x768   :  { %2630 = vmatpush3.msra.mxu0 %v2055_v53  ;;  %v443_v53 = vadd.f32 %v4636_v49, %v4629_v55  ;;  %v2383_v49 = vld [vmem:[#allocation2 + $0x468] sm:$0xff] }
 0x769   :  { %2631 = vmatprep.subr.mxu0 %v2054_v6 }
 0x76a   :  { %2632 = vmatpush3.msra.mxu0 %v2054_v6  ;;  %v2082_v6 = vmul.f32 0.2, %v438_v26  ;;  %v2070_v26 = vld [vmem:[#allocation2 + $0x1f0] sm:$0xff] }
 0x76b   :  { %2633 = vmatprep.subr.mxu0 %v2053_v61 }
 0x76c   :  { %2634 = vmatpush3.msra.mxu0 %v2053_v61 }
 0x76d   :  { %2635 = vmatprep.subr.mxu0 %v2052_v58 }
 0x76e   :  { %2636 = vmatpush3.msra.mxu0 %v2052_v58 }
 0x76f   :  { %2637 = vmatprep.subr.mxu0 %v2051_v47 }
 0x770   :  { %2638 = vmatpush3.msra.mxu0 %v2051_v47 }
 0x771   :  { %2639 = vmatprep.subr.mxu0 %v2050_v43 }
 0x772   :  { %2640 = vmatpush3.msra.mxu0 %v2050_v43 }
 0x773   :  { %2641 = vmatprep.subr.mxu0 %v2049_v41 }
 0x774   :  { %2642 = vmatpush3.msra.mxu0 %v2049_v41  ;;  %v2083_v41 = vmul.f32 0.2, %v443_v53  ;;  %v2382_v53 = vld [vmem:[#allocation2 + $0x420] sm:$0xff] }
 0x775   :  { %2643 = vmatprep.subr.mxu0 %v2048_v27 }
 0x776   :  { %2644 = vmatpush3.msra.mxu0 %v2048_v27  ;;  %v4637_v27 = vld [vmem:[#allocation66_spill] sm:$0xff] }
 0x777   :  { %2701 = vmatprep.subr.mxu0 %v4614_v20 }
 0x7ec   :  { %v1786_v51 = vpop.f32.mrf.mxu1  ;;  %v1857_v31 = vpop.f32.mrf.mxu0 }
 0x7ed   :  { %v1862_v29 = vadd.f32 %v1786_v51, %v4625_v0  ;;  %v1864_v34 = vadd.f32 %v1857_v31, %v4628_v37  ;;  %v448_v51 = vadd.f32 %v4637_v27, %v4629_v55 }
 0x7ee   :  { %v1788_v32 = vpop.f32.mrf.mxu1  ;;  %v1859_v45 = vpop.f32.mrf.mxu0 }
 0x7ef   :  { %v2507_v35 = vmul.f32 -1.442695, %v1862_v29  ;;  %v1863_v40 = vadd.f32 %v1788_v32, %v4626_v38  ;;  %v1865_v30 = vadd.f32 %v1859_v45, %v4627_v52 }
 0x7f1   :  { %2854 = vpow2.f32 %v2507_v35  ;;  %v2508_v36 = vmul.f32 -1.442695, %v1863_v40  ;;  %v2509_v7 = vmul.f32 -1.442695, %v1865_v30  ;;  %v4638_v40 = vld [vmem:[#allocation65_spill] sm:$0xff] }
 0x7f2   :  { %v453_v31 = vadd.f32 %v4638_v40, %v4629_v55 }
 0x7f3   :  { %2856 = vpow2.f32 %v2508_v36  ;;  %v2084_v36 = vmul.f32 0.2, %v448_v51 }
 0x7f4   :  { %2858 = vtanh.f32 %v1864_v34 }
 0x7f5   :  { %2860 = vpow2.f32 %v2509_v7 }
 0x7fe   :  { %v2855_v5 = vpop.eup %2854 }
 0x7ff   :  { %v1869_v42 = vadd.f32 1.0, %v2855_v5  ;;  %v2085_v5 = vmul.f32 0.2, %v453_v31 }
 0x800   :  { %v2857_v2 = vpop.eup %2856 }
 0x801   :  { %2862 = vrcp.f32 %v1869_v42  ;;  %v1875_v50 = vadd.f32 1.0, %v2857_v2  ;;  %v2859_v54 = vpop.eup %2858  ;;  %v4639_v42 = vld [vmem:[#allocation69_spill] sm:$0xff] }
 0x802   :  { %v2861_v10 = vpop.eup %2860  ;;  %v458_v2 = vadd.f32 %v4639_v42, %v4629_v55 }
 0x803   :  { %2864 = vrcp.f32 %v1875_v50  ;;  %v1882_v22 = vadd.f32 1.0, %v2861_v10 }
 0x805   :  { %2866 = vrcp.f32 %v1882_v22  ;;  %v2075_v22 = vld [vmem:[#allocation2 + $0x358] sm:$0xff] }
 0x80c   :  { %v2001_v9 = vpop.f32.mrf.mxu1 }
 0x80d   :  { %v2002_v14 = vadd.f32 %v2001_v9, %v4246_v59 }
 0x80e   :  { %v2863_v15 = vpop.eup %2862  ;;  %v2003_v16 = vpop.f32.mrf.mxu1 }
 0x80f   :  { %v1886_v17 = vmul.f32 %v2863_v15, %v2859_v54  ;;  %v2088_v18 = vmul.f32 %v2080_v13, %v2002_v14  ;;  %v4256_v19 = vadd.f32 %v2003_v16, %v4250_v62  ;;  %v2086_v54 = vmul.f32 0.2, %v458_v2  ;;  %v2079_v16 = vld [vmem:[#allocation2 + $0x478] sm:$0xff] }
 0x810   :  { %v2865_v21 = vpop.eup %2864  ;;  %v2007_v23 = vpop.f32.mrf.mxu1  ;;  %v2087_v13 = vmul.f32 0.2, %v4640_v12  ;;  %2657 = vmatprep.subr.mxu1 %v2079_v16 }
 0x811   :  { %v1885_v48 = vmul.f32 %v2865_v21, %v4215_v33  ;;  %v2008_v46 = vadd.f32 %v2007_v23, %v4246_v59  ;;  %2645 = vmatprep.mubr.f32.mxu0 %v2088_v18  ;;  %2658 = vmatpush3.msra.mxu1 %v2079_v16  ;;  %v2077_v18 = vld [vmem:[#allocation2 + $0x3e8] sm:$0xff]  ;;  %v2076_v21 = vld [vmem:[#allocation2 + $0x3a0] sm:$0xff]  ;;  %v2074_v23 = vld [vmem:[#allocation2 + $0x310] sm:$0xff] }
 0x812   :  { %v2009_v4 = vpop.f32.mrf.mxu1  ;;  %v2867_v7 = vpop.eup %2866 }
 0x813   :  { %v2089_v63 = vmul.f32 %v2081_v24, %v2008_v46  ;;  %v4263_v8 = vadd.f32 %v2009_v4, %v4250_v62  ;;  %v1887_v44 = vadd.f32 %v1886_v17, %v1885_v48  ;;  %v2078_v17 = vld [vmem:[#allocation2 + $0x430] sm:$0xff]  ;;  %v2073_v24 = vld [vmem:[#allocation2 + $0x2c8] sm:$0xff]  ;;  %v2068_v46 = vld [vmem:[#allocation2 + $0x160] sm:$0xff] }
 0x814   :  { %v2013_v1 = vpop.f32.mrf.mxu1  ;;  %2659 = vmatprep.subr.mxu1 %v2078_v17  ;;  %v2069_v48 = vld [vmem:[#allocation2 + $0x1a8] sm:$0xff]  ;;  %v2067_v4 = vld [vmem:[#allocation2 + $0x118] sm:$0xff] }
 0x815   :  { %v2014_v61 = vadd.f32 %v2013_v1, %v4246_v59  ;;  %2646 = vmatmul.mubr.f32.vlgmr.msra.gmra.mxu0 %v2089_v63  ;;  %2868 = vtanh.f32 %v1887_v44  ;;  %2660 = vmatpush3.msra.mxu1 %v2078_v17  ;;  %v2066_v63 = vld [vmem:[#allocation2 + $0xd0] sm:$0xff]  ;;  %v2065_v44 = vld [vmem:[#allocation2 + $0x88] sm:$0xff]  ;;  %v2064_v1 = vld [vmem:[#allocation2 + $0x40] sm:$0xff] }
 0x816   :  { %v2015_v33 = vpop.f32.mrf.mxu1  ;;  %2661 = vmatprep.subr.mxu1 %v2077_v18  ;;  %2702 = vmatpush3.msra.mxu0 %v2383_v49 }
 0x817   :  { %v2090_v58 = vmul.f32 %v2082_v6, %v2014_v61  ;;  %v4269_v47 = vadd.f32 %v2015_v33, %v4250_v62  ;;  %2662 = vmatpush3.msra.mxu1 %v2077_v18  ;;  %2703 = vmatprep.subr.mxu0 %v4614_v20  ;;  %v2381_v6 = vld [vmem:[#allocation2 + $0x3d8] sm:$0xff]  ;;  %v2380_v61 = vld [vmem:[#allocation2 + $0x390] sm:$0xff]  ;;  %v2379_v33 = vld [vmem:[#allocation2 + $0x348] sm:$0xff] }
 0x818   :  { %v2019_v43 = vpop.f32.mrf.mxu1  ;;  %2663 = vmatprep.subr.mxu1 %v2076_v21  ;;  %2704 = vmatpush3.msra.mxu0 %v2382_v53 }
 0x819   :  { %v2020_v0 = vadd.f32 %v2019_v43, %v4246_v59  ;;  %2648 = vmatprep.mubr.f32.mxu0 %v2090_v58  ;;  %2664 = vmatpush3.msra.mxu1 %v2076_v21 }
 0x81a   :  { %v2021_v29 = vpop.f32.mrf.mxu1  ;;  %2665 = vmatprep.subr.mxu1 %v2075_v22  ;;  %2705 = vmatprep.subr.mxu0 %v4614_v20 }
 0x81b   :  { %v2091_v32 = vmul.f32 %v2083_v41, %v2020_v0  ;;  %v4275_v35 = vadd.f32 %v2021_v29, %v4250_v62  ;;  %2666 = vmatpush3.msra.mxu1 %v2075_v22  ;;  %2706 = vmatpush3.msra.mxu0 %v2381_v6 }
 0x81c   :  { %v2025_v38 = vpop.f32.mrf.mxu1  ;;  %2667 = vmatprep.subr.mxu1 %v2074_v23  ;;  %2707 = vmatprep.subr.mxu0 %v4614_v20 }
 0x81d   :  { %v2026_v45 = vadd.f32 %v2025_v38, %v4246_v59  ;;  %2649 = vmatmul.mubr.f32.gmra.mxu0 %v2091_v32  ;;  %2668 = vmatpush3.msra.mxu1 %v2074_v23 }
 0x81e   :  { %v2027_v52 = vpop.f32.mrf.mxu1  ;;  %2669 = vmatprep.subr.mxu1 %v2073_v24  ;;  %2708 = vmatpush3.msra.mxu0 %v2380_v61 }
 0x81f   :  { %v2092_v30 = vmul.f32 %v2084_v36, %v2026_v45  ;;  %v4281_v37 = vadd.f32 %v2027_v52, %v4250_v62  ;;  %2670 = vmatpush3.msra.mxu1 %v2073_v24  ;;  %2709 = vmatprep.subr.mxu0 %v4614_v20 }
 0x820   :  { %v2031_v34 = vpop.f32.mrf.mxu1  ;;  %2710 = vmatpush3.msra.mxu0 %v2379_v33 }
 0x821   :  { %v2032_v50 = vadd.f32 %v2031_v34, %v4246_v59  ;;  %2651 = vmatprep.mubr.f32.mxu0 %v2092_v30  ;;  %2711 = vmatprep.subr.mxu0 %v4614_v20 }
 0x822   :  { %v2869_v56 = vpop.eup %2868  ;;  %v2033_v57 = vpop.f32.mrf.mxu1 }
 0x823   :  { %v2093_v28 = vmul.f32 %v2085_v5, %v2032_v50  ;;  %v4287_v39 = vadd.f32 %v2033_v57, %v4250_v62  ;;  %v1889_v60 = vmul.f32 %v2869_v56, %v2867_v7 }
 0x824   :  { %v2037_v3 = vpop.f32.mrf.mxu1 }
 0x825   :  { %v2038_v9 = vadd.f32 %v2037_v3, %v4246_v59  ;;  %2652 = vmatmul.mubr.f32.gmra.mxu0 %v2093_v28  ;;  %2042 = vmatmul.mubr.f32.gmra.mxu1 %v1889_v60 }
 0x826   :  { %v4290_v11 = vpop.f32.mrf.mxu1 }
 0x827   :  { %v2094_v10 = vmul.f32 %v2086_v54, %v2038_v9 }
 0x829   :  { %2654 = vmatprep.mubr.f32.mxu0 %v2094_v10 }
 0x8d5   :  { %v2647_v58 = vpop.f32.mrf.mxu0 }
 0x8d7   :  { %v2162_v43 = vpop.f32.mrf.mxu0 }
 0x8d8   :  { %v2201_v51 = vmax.f32 %v2162_v43, %v2647_v58 }
 0x8dd   :  { %v2650_v41 = vpop.f32.mrf.mxu0 }
 0x8df   :  { %v2172_v27 = vpop.f32.mrf.mxu0 }
 0x8e0   :  { %v2202_v29 = vmax.f32 %v2201_v51, %v2172_v27  ;;  %v2374_v51 = vld [vmem:[#allocation2 + $0x1e0] sm:$0xff] }
 0x8e2   :  { %v2203_v38 = vmax.f32 %v2202_v29, %v2650_v41  ;;  %v2372_v29 = vld [vmem:[#allocation2 + $0x150] sm:$0xff] }
 0x8e5   :  { %v2043_v55 = vpop.f32.mrf.mxu1  ;;  %v2653_v0 = vpop.f32.mrf.mxu0 }
 0x8e6   :  { %v2044_v14 = vadd.f32 %v2043_v55, %v4246_v59  ;;  %v2072_v59 = vld [vmem:[#allocation2 + $0x280] sm:$0xff] }
 0x8e7   :  { %2671 = vmatprep.subr.mxu1 %v2072_v59  ;;  %v2182_v32 = vpop.f32.mrf.mxu0 }
 0x8e8   :  { %v2095_v15 = vmul.f32 %v2087_v13, %v2044_v14  ;;  %2672 = vmatpush3.msra.mxu1 %v2072_v59  ;;  %v2204_v40 = vmax.f32 %v2203_v38, %v2182_v32  ;;  %v2370_v38 = vld [vmem:[#allocation2 + $0xc0] sm:$0xff] }
 0x8e9   :  { %2673 = vmatprep.subr.mxu1 %v2071_v25 }
 0x8ea   :  { %2655 = vmatmul.mubr.f32.gmra.mxu0 %v2095_v15  ;;  %2674 = vmatpush3.msra.mxu1 %v2071_v25  ;;  %v2205_v36 = vmax.f32 %v2204_v40, %v2653_v0  ;;  %v2369_v40 = vld [vmem:[#allocation2 + $0x78] sm:$0xff] }
 0x8eb   :  { %2675 = vmatprep.subr.mxu1 %v2070_v26  ;;  %2733 = vmatprep.mubr.msk.f32.mxu0 %vm3001_vm1, %v4614_v20 }
 0x8ec   :  { %2676 = vmatpush3.msra.mxu1 %v2070_v26 }
 0x8ed   :  { %2677 = vmatprep.subr.mxu1 %v2069_v48 }
 0x8ee   :  { %2678 = vmatpush3.msra.mxu1 %v2069_v48 }
 0x8ef   :  { %2679 = vmatprep.subr.mxu1 %v2068_v46 }
 0x8f0   :  { %2680 = vmatpush3.msra.mxu1 %v2068_v46 }
 0x8f1   :  { %2681 = vmatprep.subr.mxu1 %v2067_v4 }
 0x8f2   :  { %2682 = vmatpush3.msra.mxu1 %v2067_v4 }
 0x8f3   :  { %2683 = vmatprep.subr.mxu1 %v2066_v63 }
 0x8f4   :  { %2684 = vmatpush3.msra.mxu1 %v2066_v63 }
 0x8f5   :  { %2685 = vmatprep.subr.mxu1 %v2065_v44 }
 0x8f6   :  { %2686 = vmatpush3.msra.mxu1 %v2065_v44 }
 0x8f7   :  { %2687 = vmatprep.subr.mxu1 %v2064_v1 }
 0x8f8   :  { %2688 = vmatpush3.msra.mxu1 %v2064_v1 }
 0x9aa   :  { %v2656_v31 = vpop.f32.mrf.mxu0 }
 0x9ac   :  { %v2192_v45 = vpop.f32.mrf.mxu0 }
 0x9ad   :  { %v2206_v52 = vmax.f32 %v2205_v36, %v2192_v45  ;;  %v2045_v36 = vpop.f32.mrf.mxu1 }
 0x9af   :  { %v2207_v30 = vmax.f32 %v2206_v52, %v2656_v31 }
 0x9b1   :  { %v2208_v34 = vsub.f32 %v2162_v43, %v2207_v30  ;;  %v2211_v7 = vsub.f32 %v2647_v58, %v2207_v30  ;;  %v2214_v5 = vsub.f32 %v2172_v27, %v2207_v30  ;;  %v2217_v42 = vsub.f32 %v2650_v41, %v2207_v30  ;;  %v2378_v58 = vld [vmem:[#allocation2 + $0x300] sm:$0xff]  ;;  %v2377_v43 = vld [vmem:[#allocation2 + $0x2b8] sm:$0xff]  ;;  %v2376_v41 = vld [vmem:[#allocation2 + $0x270] sm:$0xff] }
 0x9b2   :  { %v2220_v57 = vsub.f32 %v2182_v32, %v2207_v30  ;;  %v2223_v60 = vsub.f32 %v2653_v0, %v2207_v30  ;;  %v2226_v54 = vsub.f32 %v2192_v45, %v2207_v30  ;;  %v2229_v10 = vsub.f32 %v2656_v31, %v2207_v30  ;;  %2712 = vmatpush3.msra.mxu0 %v2378_v58  ;;  %v2375_v27 = vld [vmem:[#allocation2 + $0x228] sm:$0xff]  ;;  %v2373_v0 = vld [vmem:[#allocation2 + $0x198] sm:$0xff]  ;;  %v2368_v31 = vld [vmem:[#allocation2 + $0x30] sm:$0xff] }
 0x9b3   :  { %v2209_v2 = vmul.f32 1.442695, %v2208_v34  ;;  %v2212_v50 = vmul.f32 1.442695, %v2211_v7  ;;  %v2215_v56 = vmul.f32 1.442695, %v2214_v5  ;;  %2713 = vmatprep.subr.mxu0 %v4614_v20 }
 0x9b4   :  { %v2218_v28 = vmul.f32 1.442695, %v2217_v42  ;;  %v2221_v3 = vmul.f32 1.442695, %v2220_v57  ;;  %v2224_v9 = vmul.f32 1.442695, %v2223_v60  ;;  %2714 = vmatpush3.msra.mxu0 %v2377_v43 }
 0x9b5   :  { %2870 = vpow2.f32 %v2209_v2  ;;  %v2227_v55 = vmul.f32 1.442695, %v2226_v54  ;;  %v2230_v12 = vmul.f32 1.442695, %v2229_v10  ;;  %2715 = vmatprep.subr.mxu0 %v4614_v20  ;;  %v2371_v32 = vld [vmem:[#allocation2 + $0x108] sm:$0xff]  ;;  %v2040_v54 = vadd.f32 %v4290_v11, %v4250_v62 }
 0x9b6   :  { %2872 = vpow2.f32 %v2212_v50  ;;  %2716 = vmatpush3.msra.mxu0 %v2376_v41  ;;  %v2046_v10 = vadd.f32 %v2045_v36, %v4250_v62 }
 0x9b7   :  { %2874 = vpow2.f32 %v2215_v56  ;;  %2717 = vmatprep.subr.mxu0 %v4614_v20 }
 0x9b8   :  { %2876 = vpow2.f32 %v2218_v28  ;;  %2718 = vmatpush3.msra.mxu0 %v2375_v27 }
 0x9b9   :  { %2878 = vpow2.f32 %v2221_v3  ;;  %2719 = vmatprep.subr.mxu0 %v4614_v20 }
 0x9ba   :  { %2880 = vpow2.f32 %v2224_v9  ;;  %2720 = vmatpush3.msra.mxu0 %v2374_v51 }
 0x9bb   :  { %2882 = vpow2.f32 %v2227_v55  ;;  %2721 = vmatprep.subr.mxu0 %v4614_v20 }
 0x9bc   :  { %2884 = vpow2.f32 %v2230_v12  ;;  %2722 = vmatpush3.msra.mxu0 %v2373_v0 }
 0x9bd   :  { %2723 = vmatprep.subr.mxu0 %v4614_v20 }
 0x9be   :  { %2724 = vmatpush3.msra.mxu0 %v2372_v29 }
 0x9bf   :  { %2725 = vmatprep.subr.mxu0 %v4614_v20 }
 0x9c0   :  { %2726 = vmatpush3.msra.mxu0 %v2371_v32 }
 0x9c1   :  { %2727 = vmatprep.subr.mxu0 %v4614_v20 }
 0x9c2   :  { %v2871_v13 = vpop.eup %2870  ;;  %2728 = vmatpush3.msra.mxu0 %v2370_v38 }
 0x9c3   :  { %v2873_v14 = vpop.eup %2872  ;;  %2729 = vmatprep.subr.mxu0 %v4614_v20 }
 0x9c4   :  { %v2232_v15 = vadd.f32 %v2873_v14, %v2871_v13  ;;  %v2875_v16 = vpop.eup %2874  ;;  %2730 = vmatpush3.msra.mxu0 %v2369_v40 }
 0x9c5   :  { %v2877_v18 = vpop.eup %2876  ;;  %2731 = vmatprep.subr.mxu0 %v4614_v20 }
 0x9c6   :  { %v2233_v17 = vadd.f32 %v2875_v16, %v2232_v15  ;;  %v2879_v22 = vpop.eup %2878  ;;  %2732 = vmatpush3.msra.mxu0 %v2368_v31 }
 0x9c7   :  { %v2881_v24 = vpop.eup %2880 }
 0x9c8   :  { %v2234_v21 = vadd.f32 %v2877_v18, %v2233_v17  ;;  %v2883_v25 = vpop.eup %2882 }
 0x9c9   :  { %v2885_v48 = vpop.eup %2884 }
 0x9ca   :  { %v2235_v23 = vadd.f32 %v2879_v22, %v2234_v21 }
 0x9cc   :  { %v2236_v59 = vadd.f32 %v2881_v24, %v2235_v23 }
 0x9ce   :  { %v2237_v26 = vadd.f32 %v2883_v25, %v2236_v59 }
 0x9d0   :  { %v2238_v46 = vadd.f32 %v2885_v48, %v2237_v26 }
 0x9d2   :  { %2886 = vrcp.f32 %v2238_v46 }
 0x9df   :  { %v2887_v4 = vpop.eup %2886 }
 0x9e0   :  { %v2240_v63 = vmul.f32 %v2887_v4, %v2871_v13  ;;  %v2241_v44 = vmul.f32 %v2887_v4, %v2873_v14  ;;  %v2242_v1 = vmul.f32 %v2887_v4, %v2875_v16  ;;  %v2243_v49 = vmul.f32 %v2887_v4, %v2877_v18  ;;  %v2384_v14 = vld [vmem:[#allocation4 + $0x11] ss:$0 sm:$0xff] }
 0x9e1   :  { %v2244_v53 = vmul.f32 %v2887_v4, %v2879_v22  ;;  %v2245_v6 = vmul.f32 %v2887_v4, %v2881_v24  ;;  %v2246_v61 = vmul.f32 %v2887_v4, %v2883_v25  ;;  %v2247_v33 = vmul.f32 %v2887_v4, %v2885_v48 }
 0x9e2   :  { %2689 = vmatprep.mubr.f32.mxu1 %v2240_v63 }
 0x9e3   :  { %2690 = vmatmul.mubr.f32.vlgmr.msra.gmra.mxu1 %v2241_v44 }
 0x9e4   :  { %2692 = vmatprep.mubr.f32.mxu1 %v2242_v1 }
 0x9e7   :  { %2693 = vmatmul.mubr.f32.gmra.mxu1 %v2243_v49 }
 0x9e8   :  { %2695 = vmatprep.mubr.f32.mxu1 %v2244_v53 }
 0x9eb   :  { %2696 = vmatmul.mubr.f32.gmra.mxu1 %v2245_v6 }
 0x9ec   :  { %2698 = vmatprep.mubr.f32.mxu1 %v2246_v61 }
 0x9ef   :  { %2699 = vmatmul.mubr.f32.gmra.mxu1 %v2247_v33 }
 0xaa3   :  { %v2691_v45 = vpop.f32.mrf.mxu1 }
 0xaa4   :  { %v2354_v30 = vmul.f32 %v2691_v45, %v4263_v8 }
 0xaa5   :  { %v2314_v52 = vpop.f32.mrf.mxu1 }
 0xaa6   :  { %v2353_v34 = vmul.f32 %v2314_v52, %v4256_v19 }
 0xaa7   :  { %v2694_v7 = vpop.f32.mrf.mxu1 }
 0xaa8   :  { %v2361_v5 = vadd.f32 %v2354_v30, %v2353_v34  ;;  %v2356_v56 = vmul.f32 %v2694_v7, %v4275_v35 }
 0xaa9   :  { %v2324_v42 = vpop.f32.mrf.mxu1 }
 0xaaa   :  { %v2355_v2 = vmul.f32 %v2324_v42, %v4269_v47 }
 0xaab   :  { %v2697_v50 = vpop.f32.mrf.mxu1 }
 0xaac   :  { %v2362_v57 = vadd.f32 %v2361_v5, %v2355_v2  ;;  %v2358_v8 = vmul.f32 %v2697_v50, %v4287_v39 }
 0xaad   :  { %v2334_v28 = vpop.f32.mrf.mxu1 }
 0xaae   :  { %v2357_v20 = vmul.f32 %v2334_v28, %v4281_v37  ;;  %v2363_v60 = vadd.f32 %v2362_v57, %v2356_v56 }
 0xaaf   :  { %v2700_v3 = vpop.f32.mrf.mxu1 }
 0xab0   :  { %v2364_v19 = vadd.f32 %v2363_v60, %v2357_v20  ;;  %v2360_v12 = vmul.f32 %v2700_v3, %v2046_v10 }
 0xab1   :  { %v2344_v9 = vpop.f32.mrf.mxu1 }
 0xab2   :  { %v2359_v55 = vmul.f32 %v2344_v9, %v2040_v54  ;;  %v2365_v47 = vadd.f32 %v2364_v19, %v2358_v8 }
 0xab4   :  { %v2366_v13 = vadd.f32 %v2365_v47, %v2359_v55 }
 0xab6   :  { %v2367_v35 = vadd.f32 %v2366_v13, %v2360_v12 }
 0xab8   :  { %2734 = vmatmul.mubr.f32.vlgmr.msra.gmra.mxu0 %v2367_v35 }
 0xb78   :  { %v2451_v15 = vpop.f32.mrf.mxu0 }
 0xb79   :  { %v2452_v37 = vadd.f32 %v2451_v15, %v2384_v14 }
 0xb7a   :  { %v2735_v16 = vpop.f32.mrf.mxu0 }
 0xb7b   :  { %2455 = vst [vmem:[%s4326_s4] sm:$0xff] %v2452_v37 }
 0xb7c   :  { %2460 = vsyncpa [#allocation3], 1 }
 0xb7d   :  { %2461 = vsyncpa [#allocation5], 1 }

</bundles_post_ra>
